<compile_context>
chip_gen: v5e
topology: v5e:2x2
jax: 0.10.0
libtpu: 0.0.40
codegen_flags: <defaults>
</compile_context>

<pallas_src>
import jax
import jax.numpy as jnp
from jax.experimental import pallas as pl
from jax.experimental.pallas import tpu as pltpu

COUT_PAD = 128      # lane-dense conv output channels
FC1_PAD = 512       # lane-dense fc1 width (500 -> 512)
FC2_PAD = 128       # lane-dense fc2 width (10  -> 128)
ROW_TILE = 512      # target rows per grid step (multiple of 16 for bf16 tiles)

_COMPILER_PARAMS = pltpu.CompilerParams(
    dimension_semantics=("parallel",),
    vmem_limit_bytes=32 * 1024 * 1024,
)


# ----------------------------------------------------------------------------
# Pallas kernels
# ----------------------------------------------------------------------------
def conv_pool_kernel(x_ref, w_ref, b_ref, o_ref):
    """Fused im2col-GEMM + bias + relu + 2x2 maxpool.

    x_ref: (4, TM, K) bf16 -- the 4 pool-window taps of TM pooled outputs
    w_ref: (K, 128)  bf16  -- conv weight, Cout zero-padded to 128 lanes
    b_ref: (1, 128)  f32   -- bias, zero-padded
    o_ref: (TM, 128) bf16  -- pooled activations (lane-dense)
    """
    w = w_ref[...]
    b = b_ref[...]

    def tap(i):
        acc = jnp.dot(x_ref[i], w, preferred_element_type=jnp.float32)
        return jnp.maximum(acc + b, 0.0)

    pooled = jnp.maximum(jnp.maximum(tap(0), tap(1)),
                         jnp.maximum(tap(2), tap(3)))
    o_ref[...] = pooled.astype(o_ref.dtype)


def fc_fused_kernel(x_ref, w1_ref, b1_ref, w2_ref, b2_ref, o_ref):
    """fc1 + bias + relu + fc2 + bias in one kernel (weights VMEM-resident)."""
    h = jnp.dot(x_ref[...], w1_ref[...], preferred_element_type=jnp.float32)
    h = jnp.maximum(h + b1_ref[...], 0.0)
    o = jnp.dot(h.astype(jnp.bfloat16), w2_ref[...],
                preferred_element_type=jnp.float32)
    o_ref[...] = (o + b2_ref[...]).astype(o_ref.dtype)


# ----------------------------------------------------------------------------
# Tiling helpers + wrappers
# ----------------------------------------------------------------------------
def _round_up(a, b):
    return (a + b - 1) // b * b


def _row_tiling(m, target=ROW_TILE):
    """(tile_rows, padded_rows): tile multiple of 16, padded % tile == 0."""
    m16 = _round_up(m, 16)
    if m16 <= target:
        return m16, m16
    return target, _round_up(m, target)


def conv_relu_pool(x, w_pad, b_pad, cout, kh=5, kw=5):
    """Valid 5x5 conv (stride 1) + bias + relu + 2x2/2 maxpool. NHWC bf16."""
    N, H, W, Cin = x.shape
    Ho, Wo = H - kh + 1, W - kw + 1
    Hp, Wp = Ho // 2, Wo // 2
    K = kh * kw * Cin

    # im2col (XLA glue). Rows are grouped so the 4 taps of each pooled output
    # sit on the leading axis: cols[t, (n,ph,pw), :] with t = di*2 + dj and
    # conv-output position (2*ph + di, 2*pw + dj).
    taps = []
    for i in range(kh):
        for j in range(kw):
            taps.append(x[:, i:i + Ho, j:j + Wo, :])
    cols = jnp.concatenate(taps, axis=-1)                    # (N, Ho, Wo, K)
    cols = cols.reshape(N, Hp, 2, Wp, 2, K)
    cols = jnp.transpose(cols, (2, 4, 0, 1, 3, 5)).reshape(4, N * Hp * Wp, K)

    M = N * Hp * Wp
    tm, mp = _row_tiling(M)
    if mp != M:
        cols = jnp.pad(cols, ((0, 0), (0, mp - M), (0, 0)))

    out = pl.pallas_call(
        conv_pool_kernel,
        out_shape=jax.ShapeDtypeStruct((mp, COUT_PAD), jnp.bfloat16),
        grid=(mp // tm,),
        in_specs=[
            pl.BlockSpec((4, tm, K), lambda i: (0, i, 0)),
            pl.BlockSpec((K, COUT_PAD), lambda i: (0, 0)),
            pl.BlockSpec((1, COUT_PAD), lambda i: (0, 0)),
        ],
        out_specs=pl.BlockSpec((tm, COUT_PAD), lambda i: (i, 0)),
        compiler_params=_COMPILER_PARAMS,
        cost_estimate=pl.CostEstimate(
            flops=2 * 4 * mp * K * COUT_PAD,
            transcendentals=0,
            bytes_accessed=4 * mp * K * 2 + K * COUT_PAD * 2 + mp * COUT_PAD * 2,
        ),
    )(cols, w_pad, b_pad)

    return out[:M].reshape(N, Hp, Wp, COUT_PAD)[..., :cout]


def fc_fused(x, w1, b1, w2, b2):
    """x:(N,800)bf16 @ w1:(800,512) +b1, relu, @ w2:(512,128) +b2 -> (N,128)f32."""
    N, K = x.shape
    tm, mp = _row_tiling(N)
    if mp != N:
        x = jnp.pad(x, ((0, mp - N), (0, 0)))
    H1, O = w1.shape[1], w2.shape[1]

    out = pl.pallas_call(
        fc_fused_kernel,
        out_shape=jax.ShapeDtypeStruct((mp, O), jnp.float32),
        grid=(mp // tm,),
        in_specs=[
            pl.BlockSpec((tm, K), lambda i: (i, 0)),
            pl.BlockSpec((K, H1), lambda i: (0, 0)),
            pl.BlockSpec((1, H1), lambda i: (0, 0)),
            pl.BlockSpec((H1, O), lambda i: (0, 0)),
            pl.BlockSpec((1, O), lambda i: (0, 0)),
        ],
        out_specs=pl.BlockSpec((tm, O), lambda i: (i, 0)),
        compiler_params=_COMPILER_PARAMS,
        cost_estimate=pl.CostEstimate(
            flops=2 * mp * K * H1 + 2 * mp * H1 * O,
            transcendentals=0,
            bytes_accessed=mp * K * 2 + K * H1 * 2 + H1 * O * 2 + mp * O * 4,
        ),
    )(x, w1, b1, w2, b2)
    return out[:N]


# ----------------------------------------------------------------------------
# Parameters
# ----------------------------------------------------------------------------
def init_torch_params(key):
    """Synthetic params in PyTorch layouts (OIHW conv, (out,in) linear)."""
    ks = jax.random.split(key, 8)

    def u(k, shape, fan_in):
        bound = 1.0 / float(fan_in) ** 0.5
        return jax.random.uniform(k, shape, jnp.float32, -bound, bound)

    return {
        "conv1_w": u(ks[0], (20, 1, 5, 5), 1 * 25),
        "conv1_b": u(ks[1], (20,), 1 * 25),
        "conv2_w": u(ks[2], (50, 20, 5, 5), 20 * 25),
        "conv2_b": u(ks[3], (50,), 20 * 25),
        "fc1_w":   u(ks[4], (500, 800), 800),
        "fc1_b":   u(ks[5], (500,), 800),
        "fc2_w":   u(ks[6], (10, 500), 500),
        "fc2_b":   u(ks[7], (10,), 500),
    }


def prepare_params(tp):
    """One-time prep: conv OIHW -> im2col GEMM layout, lane padding (128/512),
    bf16 matmul operands, and an fc1 row permutation that absorbs PyTorch's
    NCHW flatten (view(-1, 800)) so the forward needs no activation transpose."""
    def conv_prep(w_oihw, b):
        cout = w_oihw.shape[0]
        wm = jnp.transpose(w_oihw, (2, 3, 1, 0)).reshape(-1, cout)   # (K, Cout)
        wm = jnp.pad(wm, ((0, 0), (0, COUT_PAD - cout))).astype(jnp.bfloat16)
        bm = jnp.pad(b, (0, COUT_PAD - cout)).astype(jnp.float32).reshape(1, -1)
        return wm, bm

    c1w, c1b = conv_prep(tp["conv1_w"], tp["conv1_b"])
    c2w, c2b = conv_prep(tp["conv2_w"], tp["conv2_b"])

    # fc1: reorder rows from PyTorch's (c, h, w) flatten order to NHWC (h, w, c)
    w1 = tp["fc1_w"].T                                       # (800, 500), rows (c,h,w)
    perm = jnp.arange(800).reshape(50, 4, 4).transpose((1, 2, 0)).reshape(-1)
    w1 = w1[perm]                                            # rows now (h, w, c)
    w1 = jnp.pad(w1, ((0, 0), (0, FC1_PAD - 500))).astype(jnp.bfloat16)
    b1 = jnp.pad(tp["fc1_b"], (0, FC1_PAD - 500)).astype(jnp.float32).reshape(1, -1)

    w2 = tp["fc2_w"].T                                       # (500, 10)
    w2 = jnp.pad(w2, ((0, FC1_PAD - 500), (0, FC2_PAD - 10))).astype(jnp.bfloat16)
    b2 = jnp.pad(tp["fc2_b"], (0, FC2_PAD - 10)).astype(jnp.float32).reshape(1, -1)

    return {"conv1_w": c1w, "conv1_b": c1b, "conv2_w": c2w, "conv2_b": c2b,
            "fc1_w": w1, "fc1_b": b1, "fc2_w": w2, "fc2_b": b2}


# ----------------------------------------------------------------------------
# Model forward
# ----------------------------------------------------------------------------
@jax.jit
def quantized_model_forward(params, x_nchw):
    # QuantStub / DeQuantStub: identity for a non-converted (float) module.
    x = jnp.transpose(x_nchw, (0, 2, 3, 1)).astype(jnp.bfloat16)          # NHWC
    x = conv_relu_pool(x, params["conv1_w"], params["conv1_b"], cout=20)  # (N,12,12,20)
    x = conv_relu_pool(x, params["conv2_w"], params["conv2_b"], cout=50)  # (N, 4, 4,50)
    n = x.shape[0]
    x = x.reshape(n, 4 * 4 * 50)          # NHWC flatten; fc1 rows pre-permuted
    out = fc_fused(x, params["fc1_w"], params["fc1_b"],
                   params["fc2_w"], params["fc2_b"])                      # (N,128) f32
    return out[:, :10]


if __name__ == "__main__":
    key = jax.random.PRNGKey(0)
    k_param, k_input = jax.random.split(key)
    params = prepare_params(init_torch_params(k_param))
    # fc1 expects 4*4*50 features => spatial input must be 28x28 (MNIST-sized).
    x = jax.random.normal(k_input, (2, 1, 28, 28), dtype=jnp.float32)

    out = quantized_model_forward(params, x)
    out = jax.block_until_ready(out)
    assert out.shape == (2, 10) and out.dtype == jnp.float32
    print("KERNEL_OK")
</pallas_src>

<mosaic_0001>
module attributes {stable_mosaic.version = 11 : i64} {
  func.func @conv_pool_kernel(%arg0: i32, %arg1: memref<4x288x25xbf16, #tpu.memory_space<vmem>>, %arg2: memref<25x128xbf16, #tpu.memory_space<vmem>>, %arg3: memref<1x128xf32, #tpu.memory_space<vmem>>, %arg4: memref<288x128xbf16, #tpu.memory_space<vmem>>) attributes {dimension_semantics = [#tpu.dimension_semantics<parallel>], iteration_bounds = array<i64: 1>, scalar_prefetch = 0 : i64, scratch_operands = 0 : i64, tpu.core_type = #tpu.core_type<tc>, window_params = [{transform_indices = @transform_0, window_bounds = array<i64: 4, 288, 25>}, {pipeline_mode = #tpu.pipeline_mode<synchronous>, transform_indices = @transform_1, window_bounds = array<i64: 25, 128>}, {pipeline_mode = #tpu.pipeline_mode<synchronous>, transform_indices = @transform_2, window_bounds = array<i64: 1, 128>}, {transform_indices = @transform_3, window_bounds = array<i64: 288, 128>}]} {
    %c0 = arith.constant 0 : index
    %c0_0 = arith.constant 0 : index
    %0 = vector.load %arg2[%c0, %c0_0] : memref<25x128xbf16, #tpu.memory_space<vmem>>, vector<25x128xbf16>
    %c0_1 = arith.constant 0 : index
    %c0_2 = arith.constant 0 : index
    %1 = vector.load %arg3[%c0_1, %c0_2] : memref<1x128xf32, #tpu.memory_space<vmem>>, vector<1x128xf32>
    %c0_3 = arith.constant 0 : index
    %c0_4 = arith.constant 0 : index
    %c0_5 = arith.constant 0 : index
    %2 = vector.load %arg1[%c0_3, %c0_4, %c0_5] : memref<4x288x25xbf16, #tpu.memory_space<vmem>>, vector<1x288x25xbf16>
    %3 = vector.shape_cast %2 : vector<1x288x25xbf16> to vector<288x25xbf16>
    %cst = arith.constant dense<0.000000e+00> : vector<288x128xf32>
    %4 = tpu.matmul %3, %0, %cst {dimension_numbers = #tpu.dot_dimension_numbers<[1], [0], [0], [1], [0, 0, 1, 1], [], []>} : vector<288x25xbf16>, vector<25x128xbf16>, vector<288x128xf32> -> vector<288x128xf32>
    %5 = vector.broadcast %1 : vector<1x128xf32> to vector<288x128xf32>
    %6 = arith.addf %4, %5 : vector<288x128xf32>
    %cst_6 = arith.constant 0.000000e+00 : f32
    %7 = vector.broadcast %cst_6 : f32 to vector<288x128xf32>
    %8 = arith.maximumf %6, %7 : vector<288x128xf32>
    %c1 = arith.constant 1 : index
    %c0_7 = arith.constant 0 : index
    %c0_8 = arith.constant 0 : index
    %9 = vector.load %arg1[%c1, %c0_7, %c0_8] : memref<4x288x25xbf16, #tpu.memory_space<vmem>>, vector<1x288x25xbf16>
    %10 = vector.shape_cast %9 : vector<1x288x25xbf16> to vector<288x25xbf16>
    %cst_9 = arith.constant dense<0.000000e+00> : vector<288x128xf32>
    %11 = tpu.matmul %10, %0, %cst_9 {dimension_numbers = #tpu.dot_dimension_numbers<[1], [0], [0], [1], [0, 0, 1, 1], [], []>} : vector<288x25xbf16>, vector<25x128xbf16>, vector<288x128xf32> -> vector<288x128xf32>
    %12 = vector.broadcast %1 : vector<1x128xf32> to vector<288x128xf32>
    %13 = arith.addf %11, %12 : vector<288x128xf32>
    %cst_10 = arith.constant 0.000000e+00 : f32
    %14 = vector.broadcast %cst_10 : f32 to vector<288x128xf32>
    %15 = arith.maximumf %13, %14 : vector<288x128xf32>
    %16 = arith.maximumf %8, %15 : vector<288x128xf32>
    %c2 = arith.constant 2 : index
    %c0_11 = arith.constant 0 : index
    %c0_12 = arith.constant 0 : index
    %17 = vector.load %arg1[%c2, %c0_11, %c0_12] : memref<4x288x25xbf16, #tpu.memory_space<vmem>>, vector<1x288x25xbf16>
    %18 = vector.shape_cast %17 : vector<1x288x25xbf16> to vector<288x25xbf16>
    %cst_13 = arith.constant dense<0.000000e+00> : vector<288x128xf32>
    %19 = tpu.matmul %18, %0, %cst_13 {dimension_numbers = #tpu.dot_dimension_numbers<[1], [0], [0], [1], [0, 0, 1, 1], [], []>} : vector<288x25xbf16>, vector<25x128xbf16>, vector<288x128xf32> -> vector<288x128xf32>
    %20 = vector.broadcast %1 : vector<1x128xf32> to vector<288x128xf32>
    %21 = arith.addf %19, %20 : vector<288x128xf32>
    %cst_14 = arith.constant 0.000000e+00 : f32
    %22 = vector.broadcast %cst_14 : f32 to vector<288x128xf32>
    %23 = arith.maximumf %21, %22 : vector<288x128xf32>
    %c3 = arith.constant 3 : index
    %c0_15 = arith.constant 0 : index
    %c0_16 = arith.constant 0 : index
    %24 = vector.load %arg1[%c3, %c0_15, %c0_16] : memref<4x288x25xbf16, #tpu.memory_space<vmem>>, vector<1x288x25xbf16>
    %25 = vector.shape_cast %24 : vector<1x288x25xbf16> to vector<288x25xbf16>
    %cst_17 = arith.constant dense<0.000000e+00> : vector<288x128xf32>
    %26 = tpu.matmul %25, %0, %cst_17 {dimension_numbers = #tpu.dot_dimension_numbers<[1], [0], [0], [1], [0, 0, 1, 1], [], []>} : vector<288x25xbf16>, vector<25x128xbf16>, vector<288x128xf32> -> vector<288x128xf32>
    %27 = vector.broadcast %1 : vector<1x128xf32> to vector<288x128xf32>
    %28 = arith.addf %26, %27 : vector<288x128xf32>
    %cst_18 = arith.constant 0.000000e+00 : f32
    %29 = vector.broadcast %cst_18 : f32 to vector<288x128xf32>
    %30 = arith.maximumf %28, %29 : vector<288x128xf32>
    %31 = arith.maximumf %23, %30 : vector<288x128xf32>
    %32 = arith.maximumf %16, %31 : vector<288x128xf32>
    %33 = arith.truncf %32 : vector<288x128xf32> to vector<288x128xbf16>
    %c0_19 = arith.constant 0 : index
    %c0_20 = arith.constant 0 : index
    %34 = vector.load %arg4[%c0_19, %c0_20] : memref<288x128xbf16, #tpu.memory_space<vmem>>, vector<288x128xbf16>
    tpu.vector_store %arg4[%c0_19, %c0_20], %33 {strides = array<i32>} : memref<288x128xbf16, #tpu.memory_space<vmem>>, vector<288x128xbf16>,
    return
  }
  func.func @transform_0(%arg0: i32) -> (i32, i32, i32) {
    %c0_i32 = arith.constant 0 : i32
    %c0_i32_0 = arith.constant 0 : i32
    %c0_i32_1 = arith.constant 0 : i32
    return %c0_i32, %arg0, %c0_i32_0 : i32, i32, i32
  }
  func.func @transform_1(%arg0: i32) -> (i32, i32) {
    %c0_i32 = arith.constant 0 : i32
    %c0_i32_0 = arith.constant 0 : i32
    %c0_i32_1 = arith.constant 0 : i32
    return %c0_i32, %c0_i32_0 : i32, i32
  }
  func.func @transform_2(%arg0: i32) -> (i32, i32) {
    %c0_i32 = arith.constant 0 : i32
    %c0_i32_0 = arith.constant 0 : i32
    %c0_i32_1 = arith.constant 0 : i32
    return %c0_i32, %c0_i32_0 : i32, i32
  }
  func.func @transform_3(%arg0: i32) -> (i32, i32) {
    %c0_i32 = arith.constant 0 : i32
    %c0_i32_0 = arith.constant 0 : i32
    return %arg0, %c0_i32 : i32, i32
  }
}

module attributes {stable_mosaic.version = 11 : i64} {
  func.func @conv_pool_kernel(%arg0: i32, %arg1: memref<4x32x500xbf16, #tpu.memory_space<vmem>>, %arg2: memref<500x128xbf16, #tpu.memory_space<vmem>>, %arg3: memref<1x128xf32, #tpu.memory_space<vmem>>, %arg4: memref<32x128xbf16, #tpu.memory_space<vmem>>) attributes {dimension_semantics = [#tpu.dimension_semantics<parallel>], iteration_bounds = array<i64: 1>, scalar_prefetch = 0 : i64, scratch_operands = 0 : i64, tpu.core_type = #tpu.core_type<tc>, window_params = [{transform_indices = @transform_0, window_bounds = array<i64: 4, 32, 500>}, {pipeline_mode = #tpu.pipeline_mode<synchronous>, transform_indices = @transform_1, window_bounds = array<i64: 500, 128>}, {pipeline_mode = #tpu.pipeline_mode<synchronous>, transform_indices = @transform_2, window_bounds = array<i64: 1, 128>}, {transform_indices = @transform_3, window_bounds = array<i64: 32, 128>}]} {
    %c0 = arith.constant 0 : index
    %c0_0 = arith.constant 0 : index
    %0 = vector.load %arg2[%c0, %c0_0] : memref<500x128xbf16, #tpu.memory_space<vmem>>, vector<500x128xbf16>
    %c0_1 = arith.constant 0 : index
    %c0_2 = arith.constant 0 : index
    %1 = vector.load %arg3[%c0_1, %c0_2] : memref<1x128xf32, #tpu.memory_space<vmem>>, vector<1x128xf32>
    %c0_3 = arith.constant 0 : index
    %c0_4 = arith.constant 0 : index
    %c0_5 = arith.constant 0 : index
    %2 = vector.load %arg1[%c0_3, %c0_4, %c0_5] : memref<4x32x500xbf16, #tpu.memory_space<vmem>>, vector<1x32x500xbf16>
    %3 = vector.shape_cast %2 : vector<1x32x500xbf16> to vector<32x500xbf16>
    %cst = arith.constant dense<0.000000e+00> : vector<32x128xf32>
    %4 = tpu.matmul %3, %0, %cst {dimension_numbers = #tpu.dot_dimension_numbers<[1], [0], [0], [1], [0, 0, 1, 1], [], []>} : vector<32x500xbf16>, vector<500x128xbf16>, vector<32x128xf32> -> vector<32x128xf32>
    %5 = vector.broadcast %1 : vector<1x128xf32> to vector<32x128xf32>
    %6 = arith.addf %4, %5 : vector<32x128xf32>
    %cst_6 = arith.constant 0.000000e+00 : f32
    %7 = vector.broadcast %cst_6 : f32 to vector<32x128xf32>
    %8 = arith.maximumf %6, %7 : vector<32x128xf32>
    %c1 = arith.constant 1 : index
    %c0_7 = arith.constant 0 : index
    %c0_8 = arith.constant 0 : index
    %9 = vector.load %arg1[%c1, %c0_7, %c0_8] : memref<4x32x500xbf16, #tpu.memory_space<vmem>>, vector<1x32x500xbf16>
    %10 = vector.shape_cast %9 : vector<1x32x500xbf16> to vector<32x500xbf16>
    %cst_9 = arith.constant dense<0.000000e+00> : vector<32x128xf32>
    %11 = tpu.matmul %10, %0, %cst_9 {dimension_numbers = #tpu.dot_dimension_numbers<[1], [0], [0], [1], [0, 0, 1, 1], [], []>} : vector<32x500xbf16>, vector<500x128xbf16>, vector<32x128xf32> -> vector<32x128xf32>
    %12 = vector.broadcast %1 : vector<1x128xf32> to vector<32x128xf32>
    %13 = arith.addf %11, %12 : vector<32x128xf32>
    %cst_10 = arith.constant 0.000000e+00 : f32
    %14 = vector.broadcast %cst_10 : f32 to vector<32x128xf32>
    %15 = arith.maximumf %13, %14 : vector<32x128xf32>
    %16 = arith.maximumf %8, %15 : vector<32x128xf32>
    %c2 = arith.constant 2 : index
    %c0_11 = arith.constant 0 : index
    %c0_12 = arith.constant 0 : index
    %17 = vector.load %arg1[%c2, %c0_11, %c0_12] : memref<4x32x500xbf16, #tpu.memory_space<vmem>>, vector<1x32x500xbf16>
    %18 = vector.shape_cast %17 : vector<1x32x500xbf16> to vector<32x500xbf16>
    %cst_13 = arith.constant dense<0.000000e+00> : vector<32x128xf32>
    %19 = tpu.matmul %18, %0, %cst_13 {dimension_numbers = #tpu.dot_dimension_numbers<[1], [0], [0], [1], [0, 0, 1, 1], [], []>} : vector<32x500xbf16>, vector<500x128xbf16>, vector<32x128xf32> -> vector<32x128xf32>
    %20 = vector.broadcast %1 : vector<1x128xf32> to vector<32x128xf32>
    %21 = arith.addf %19, %20 : vector<32x128xf32>
    %cst_14 = arith.constant 0.000000e+00 : f32
    %22 = vector.broadcast %cst_14 : f32 to vector<32x128xf32>
    %23 = arith.maximumf %21, %22 : vector<32x128xf32>
    %c3 = arith.constant 3 : index
    %c0_15 = arith.constant 0 : index
    %c0_16 = arith.constant 0 : index
    %24 = vector.load %arg1[%c3, %c0_15, %c0_16] : memref<4x32x500xbf16, #tpu.memory_space<vmem>>, vector<1x32x500xbf16>
    %25 = vector.shape_cast %24 : vector<1x32x500xbf16> to vector<32x500xbf16>
    %cst_17 = arith.constant dense<0.000000e+00> : vector<32x128xf32>
    %26 = tpu.matmul %25, %0, %cst_17 {dimension_numbers = #tpu.dot_dimension_numbers<[1], [0], [0], [1], [0, 0, 1, 1], [], []>} : vector<32x500xbf16>, vector<500x128xbf16>, vector<32x128xf32> -> vector<32x128xf32>
    %27 = vector.broadcast %1 : vector<1x128xf32> to vector<32x128xf32>
    %28 = arith.addf %26, %27 : vector<32x128xf32>
    %cst_18 = arith.constant 0.000000e+00 : f32
    %29 = vector.broadcast %cst_18 : f32 to vector<32x128xf32>
    %30 = arith.maximumf %28, %29 : vector<32x128xf32>
    %31 = arith.maximumf %23, %30 : vector<32x128xf32>
    %32 = arith.maximumf %16, %31 : vector<32x128xf32>
    %33 = arith.truncf %32 : vector<32x128xf32> to vector<32x128xbf16>
    %c0_19 = arith.constant 0 : index
    %c0_20 = arith.constant 0 : index
    %34 = vector.load %arg4[%c0_19, %c0_20] : memref<32x128xbf16, #tpu.memory_space<vmem>>, vector<32x128xbf16>
    tpu.vector_store %arg4[%c0_19, %c0_20], %33 {strides = array<i32>} : memref<32x128xbf16, #tpu.memory_space<vmem>>, vector<32x128xbf16>,
    return
  }
  func.func @transform_0(%arg0: i32) -> (i32, i32, i32) {
    %c0_i32 = arith.constant 0 : i32
    %c0_i32_0 = arith.constant 0 : i32
    %c0_i32_1 = arith.constant 0 : i32
    return %c0_i32, %arg0, %c0_i32_0 : i32, i32, i32
  }
  func.func @transform_1(%arg0: i32) -> (i32, i32) {
    %c0_i32 = arith.constant 0 : i32
    %c0_i32_0 = arith.constant 0 : i32
    %c0_i32_1 = arith.constant 0 : i32
    return %c0_i32, %c0_i32_0 : i32, i32
  }
  func.func @transform_2(%arg0: i32) -> (i32, i32) {
    %c0_i32 = arith.constant 0 : i32
    %c0_i32_0 = arith.constant 0 : i32
    %c0_i32_1 = arith.constant 0 : i32
    return %c0_i32, %c0_i32_0 : i32, i32
  }
  func.func @transform_3(%arg0: i32) -> (i32, i32) {
    %c0_i32 = arith.constant 0 : i32
    %c0_i32_0 = arith.constant 0 : i32
    return %arg0, %c0_i32 : i32, i32
  }
}

module attributes {stable_mosaic.version = 11 : i64} {
  func.func @fc_fused_kernel(%arg0: i32, %arg1: memref<16x800xbf16, #tpu.memory_space<vmem>>, %arg2: memref<800x512xbf16, #tpu.memory_space<vmem>>, %arg3: memref<1x512xf32, #tpu.memory_space<vmem>>, %arg4: memref<512x128xbf16, #tpu.memory_space<vmem>>, %arg5: memref<1x128xf32, #tpu.memory_space<vmem>>, %arg6: memref<16x128xf32, #tpu.memory_space<vmem>>) attributes {dimension_semantics = [#tpu.dimension_semantics<parallel>], iteration_bounds = array<i64: 1>, scalar_prefetch = 0 : i64, scratch_operands = 0 : i64, tpu.core_type = #tpu.core_type<tc>, window_params = [{transform_indices = @transform_0, window_bounds = array<i64: 16, 800>}, {pipeline_mode = #tpu.pipeline_mode<synchronous>, transform_indices = @transform_1, window_bounds = array<i64: 800, 512>}, {pipeline_mode = #tpu.pipeline_mode<synchronous>, transform_indices = @transform_2, window_bounds = array<i64: 1, 512>}, {pipeline_mode = #tpu.pipeline_mode<synchronous>, transform_indices = @transform_3, window_bounds = array<i64: 512, 128>}, {pipeline_mode = #tpu.pipeline_mode<synchronous>, transform_indices = @transform_4, window_bounds = array<i64: 1, 128>}, {transform_indices = @transform_5, window_bounds = array<i64: 16, 128>}]} {
    %c0 = arith.constant 0 : index
    %c0_0 = arith.constant 0 : index
    %0 = vector.load %arg1[%c0, %c0_0] : memref<16x800xbf16, #tpu.memory_space<vmem>>, vector<16x800xbf16>
    %c0_1 = arith.constant 0 : index
    %c0_2 = arith.constant 0 : index
    %1 = vector.load %arg2[%c0_1, %c0_2] : memref<800x512xbf16, #tpu.memory_space<vmem>>, vector<800x512xbf16>
    %cst = arith.constant dense<0.000000e+00> : vector<16x512xf32>
    %2 = tpu.matmul %0, %1, %cst {dimension_numbers = #tpu.dot_dimension_numbers<[1], [0], [0], [1], [0, 0, 1, 1], [], []>} : vector<16x800xbf16>, vector<800x512xbf16>, vector<16x512xf32> -> vector<16x512xf32>
    %c0_3 = arith.constant 0 : index
    %c0_4 = arith.constant 0 : index
    %3 = vector.load %arg3[%c0_3, %c0_4] : memref<1x512xf32, #tpu.memory_space<vmem>>, vector<1x512xf32>
    %4 = vector.broadcast %3 : vector<1x512xf32> to vector<16x512xf32>
    %5 = arith.addf %2, %4 : vector<16x512xf32>
    %cst_5 = arith.constant 0.000000e+00 : f32
    %6 = vector.broadcast %cst_5 : f32 to vector<16x512xf32>
    %7 = arith.maximumf %5, %6 : vector<16x512xf32>
    %8 = arith.truncf %7 : vector<16x512xf32> to vector<16x512xbf16>
    %c0_6 = arith.constant 0 : index
    %c0_7 = arith.constant 0 : index
    %9 = vector.load %arg4[%c0_6, %c0_7] : memref<512x128xbf16, #tpu.memory_space<vmem>>, vector<512x128xbf16>
    %cst_8 = arith.constant dense<0.000000e+00> : vector<16x128xf32>
    %10 = tpu.matmul %8, %9, %cst_8 {dimension_numbers = #tpu.dot_dimension_numbers<[1], [0], [0], [1], [0, 0, 1, 1], [], []>} : vector<16x512xbf16>, vector<512x128xbf16>, vector<16x128xf32> -> vector<16x128xf32>
    %c0_9 = arith.constant 0 : index
    %c0_10 = arith.constant 0 : index
    %11 = vector.load %arg5[%c0_9, %c0_10] : memref<1x128xf32, #tpu.memory_space<vmem>>, vector<1x128xf32>
    %12 = vector.broadcast %11 : vector<1x128xf32> to vector<16x128xf32>
    %13 = arith.addf %10, %12 : vector<16x128xf32>
    %c0_11 = arith.constant 0 : index
    %c0_12 = arith.constant 0 : index
    %14 = vector.load %arg6[%c0_11, %c0_12] : memref<16x128xf32, #tpu.memory_space<vmem>>, vector<16x128xf32>
    tpu.vector_store %arg6[%c0_11, %c0_12], %13 {strides = array<i32>} : memref<16x128xf32, #tpu.memory_space<vmem>>, vector<16x128xf32>,
    return
  }
  func.func @transform_0(%arg0: i32) -> (i32, i32) {
    %c0_i32 = arith.constant 0 : i32
    %c0_i32_0 = arith.constant 0 : i32
    return %arg0, %c0_i32 : i32, i32
  }
  func.func @transform_1(%arg0: i32) -> (i32, i32) {
    %c0_i32 = arith.constant 0 : i32
    %c0_i32_0 = arith.constant 0 : i32
    %c0_i32_1 = arith.constant 0 : i32
    return %c0_i32, %c0_i32_0 : i32, i32
  }
  func.func @transform_2(%arg0: i32) -> (i32, i32) {
    %c0_i32 = arith.constant 0 : i32
    %c0_i32_0 = arith.constant 0 : i32
    %c0_i32_1 = arith.constant 0 : i32
    return %c0_i32, %c0_i32_0 : i32, i32
  }
  func.func @transform_3(%arg0: i32) -> (i32, i32) {
    %c0_i32 = arith.constant 0 : i32
    %c0_i32_0 = arith.constant 0 : i32
    %c0_i32_1 = arith.constant 0 : i32
    return %c0_i32, %c0_i32_0 : i32, i32
  }
  func.func @transform_4(%arg0: i32) -> (i32, i32) {
    %c0_i32 = arith.constant 0 : i32
    %c0_i32_0 = arith.constant 0 : i32
    %c0_i32_1 = arith.constant 0 : i32
    return %c0_i32, %c0_i32_0 : i32, i32
  }
  func.func @transform_5(%arg0: i32) -> (i32, i32) {
    %c0_i32 = arith.constant 0 : i32
    %c0_i32_0 = arith.constant 0 : i32
    return %arg0, %c0_i32 : i32, i32
  }
}

</mosaic_0001>

<bundles_post_ra>
// kernel: quantized_model_forward.3
= control target key start
LH: loop header
LB: loop body
LE: loop exit
PB: predicated region body
PF: predicated region fallthrough
CT: control target
= control target key end

     0   :  { %vm215_vm0 = vcmask 1043456   ;;  %vm216_vm1 = vcmask 1044480   ;;  %v2149_v2 = vmov 65535   ;;  %vm160_vm2 = vcmask 203776   ;;  %s2675_s1 = inlined_call_operand.vmem [shape: bf16[25,128], index: 1, kind: input, shape index: {}]   ;;  %s2676_s2 = inlined_call_operand.vmem [shape: f32[1,128], index: 2, kind: input, shape index: {}]   ;;  %s2677_s0 = inlined_call_operand.vmem [shape: bf16[4,288,25], index: 0, kind: input, shape index: {}]   ;;  %s2678_s3 = inlined_call_operand.vmem [shape: bf16[288,128], index: 3, kind: output, shape index: {}]  }
   0x1   :  { %v1567_v0 = vld [vmem:[%s2675_s1 + $0x8] sm:$0xf]  ;;  %v1966_v1 = vld [vmem:[%s2675_s1 + $0x8] sm:$0x10]  ;;  %v217_v3 = vsel %vm215_vm0, 4294967295, %v2149_v2  ;;  %v1965_v7 = vld [vmem:[%s2675_s1] sm:$0xff] }
   0x2   :  { %v1568_v4 = vor.u32 %v1966_v1, %v1567_v0  ;;  %v218_v5 = vsel %vm216_vm1, %v217_v3, 0  ;;  %v1967_v8 = vld [vmem:[%s2677_s0] sm:$0xff]  ;;  %v1985_v9 = vld [vmem:[%s2677_s0 + $0x90] sm:$0xff]  ;;  %v1968_v12 = vld [vmem:[%s2677_s0 + $0x8] sm:$0xff] }
   0x3   :  { %v2003_v10 = vld [vmem:[%s2677_s0 + $0x120] sm:$0xff]  ;;  %v2021_v11 = vld [vmem:[%s2677_s0 + $0x1b0] sm:$0xff]  ;;  %v1986_v13 = vld [vmem:[%s2677_s0 + $0x98] sm:$0xff] }
   0x4   :  { %v220_v6 = vand.u32 %v1568_v4, %v218_v5  ;;  %v2004_v14 = vld [vmem:[%s2677_s0 + $0x128] sm:$0xff]  ;;  %v2022_v15 = vld [vmem:[%s2677_s0 + $0x1b8] sm:$0xff]  ;;  %v1969_v16 = vld [vmem:[%s2677_s0 + $0x10] sm:$0xff] }
   0x5   :  { %v1987_v17 = vld [vmem:[%s2677_s0 + $0xa0] sm:$0xff]  ;;  %v2005_v18 = vld [vmem:[%s2677_s0 + $0x130] sm:$0xff]  ;;  %v1970_v20 = vld [vmem:[%s2677_s0 + $0x18] sm:$0xff] }
   0x6   :  { %228 = vmatpush.bf16.msra.mxu0 %v220_v6  ;;  %544 = vmatpush.bf16.msra.mxu1 %v220_v6  ;;  %v2023_v19 = vld [vmem:[%s2677_s0 + $0x1c0] sm:$0xff]  ;;  %v1988_v21 = vld [vmem:[%s2677_s0 + $0xa8] sm:$0xff]  ;;  %v2006_v22 = vld [vmem:[%s2677_s0 + $0x138] sm:$0xff] }
   0x7   :  { %896 = vmatpush.bf16.msra.mxu2 %v220_v6  ;;  %1212 = vmatpush.bf16.msra.mxu3 %v220_v6  ;;  %v2024_v23 = vld [vmem:[%s2677_s0 + $0x1c8] sm:$0xff]  ;;  %v1971_v24 = vld [vmem:[%s2677_s0 + $0x20] sm:$0xff]  ;;  %v1989_v25 = vld [vmem:[%s2677_s0 + $0xb0] sm:$0xff] }
   0x8   :  { %v2007_v26 = vld [vmem:[%s2677_s0 + $0x140] sm:$0xff]  ;;  %v2025_v27 = vld [vmem:[%s2677_s0 + $0x1d0] sm:$0xff]  ;;  %v1972_v28 = vld [vmem:[%s2677_s0 + $0x28] sm:$0xff] }
   0x9   :  { %v1990_v29 = vld [vmem:[%s2677_s0 + $0xb8] sm:$0xff]  ;;  %v2008_v30 = vld [vmem:[%s2677_s0 + $0x148] sm:$0xff]  ;;  %v1973_v32 = vld [vmem:[%s2677_s0 + $0x30] sm:$0xff] }
   0xa   :  { %229 = vmatpush.bf16.msra.mxu0 %v1965_v7  ;;  %545 = vmatpush.bf16.msra.mxu1 %v1965_v7  ;;  %v2026_v31 = vld [vmem:[%s2677_s0 + $0x1d8] sm:$0xff]  ;;  %v1991_v33 = vld [vmem:[%s2677_s0 + $0xc0] sm:$0xff]  ;;  %v2009_v34 = vld [vmem:[%s2677_s0 + $0x150] sm:$0xff] }
   0xb   :  { %897 = vmatpush.bf16.msra.mxu2 %v1965_v7  ;;  %1213 = vmatpush.bf16.msra.mxu3 %v1965_v7  ;;  %v2027_v35 = vld [vmem:[%s2677_s0 + $0x1e0] sm:$0xff]  ;;  %v1974_v36 = vld [vmem:[%s2677_s0 + $0x38] sm:$0xff]  ;;  %v1992_v37 = vld [vmem:[%s2677_s0 + $0xc8] sm:$0xff] }
   0xc   :  { %v2010_v38 = vld [vmem:[%s2677_s0 + $0x158] sm:$0xff]  ;;  %v2028_v39 = vld [vmem:[%s2677_s0 + $0x1e8] sm:$0xff]  ;;  %v1975_v40 = vld [vmem:[%s2677_s0 + $0x40] sm:$0xff] }
   0xd   :  { %1569 = vmatmul.msk.bf16.vlgmr.msra.gmra.mxu0 %vm160_vm2, %v1967_v8  ;;  %1695 = vmatmul.msk.bf16.vlgmr.msra.gmra.mxu1 %vm160_vm2, %v1985_v9  ;;  %v1993_v41 = vld [vmem:[%s2677_s0 + $0xd0] sm:$0xff]  ;;  %v2011_v44 = vld [vmem:[%s2677_s0 + $0x160] sm:$0xff]  ;;  %v1976_v63 = vld [vmem:[%s2677_s0 + $0x48] sm:$0xff] }
   0xe   :  { %1821 = vmatmul.msk.bf16.vlgmr.msra.gmra.mxu2 %vm160_vm2, %v2003_v10  ;;  %1947 = vmatmul.msk.bf16.vlgmr.msra.gmra.mxu3 %vm160_vm2, %v2021_v11  ;;  %v2029_v45 = vld [vmem:[%s2677_s0 + $0x1f0] sm:$0xff]  ;;  %v2326_v46 = vld [vmem:[%s2676_s2] ss:$0 sm:$0xff]  ;;  %v1994_v0 = vld [vmem:[%s2677_s0 + $0xd8] sm:$0xff] }
   0xf   :  { %v2012_v7 = vld [vmem:[%s2677_s0 + $0x168] sm:$0xff]  ;;  %v2030_v8 = vld [vmem:[%s2677_s0 + $0x1f8] sm:$0xff] }
  0x1d   :  { %1570 = vmatmul.msk.bf16.gmra.mxu0 %vm160_vm2, %v1968_v12  ;;  %1696 = vmatmul.msk.bf16.gmra.mxu1 %vm160_vm2, %v1986_v13 }
  0x1e   :  { %1822 = vmatmul.msk.bf16.gmra.mxu2 %vm160_vm2, %v2004_v14  ;;  %1948 = vmatmul.msk.bf16.gmra.mxu3 %vm160_vm2, %v2022_v15 }
  0x2d   :  { %1571 = vmatmul.msk.bf16.gmra.mxu0 %vm160_vm2, %v1969_v16  ;;  %1697 = vmatmul.msk.bf16.gmra.mxu1 %vm160_vm2, %v1987_v17 }
  0x2e   :  { %1823 = vmatmul.msk.bf16.gmra.mxu2 %vm160_vm2, %v2005_v18  ;;  %1949 = vmatmul.msk.bf16.gmra.mxu3 %vm160_vm2, %v2023_v19 }
  0x3d   :  { %1572 = vmatmul.msk.bf16.gmra.mxu0 %vm160_vm2, %v1970_v20  ;;  %1698 = vmatmul.msk.bf16.gmra.mxu1 %vm160_vm2, %v1988_v21 }
  0x3e   :  { %1824 = vmatmul.msk.bf16.gmra.mxu2 %vm160_vm2, %v2006_v22  ;;  %1950 = vmatmul.msk.bf16.gmra.mxu3 %vm160_vm2, %v2024_v23 }
  0x4d   :  { %1573 = vmatmul.msk.bf16.gmra.mxu0 %vm160_vm2, %v1971_v24  ;;  %1699 = vmatmul.msk.bf16.gmra.mxu1 %vm160_vm2, %v1989_v25 }
  0x4e   :  { %1825 = vmatmul.msk.bf16.gmra.mxu2 %vm160_vm2, %v2007_v26  ;;  %1951 = vmatmul.msk.bf16.gmra.mxu3 %vm160_vm2, %v2025_v27 }
  0x5d   :  { %1574 = vmatmul.msk.bf16.gmra.mxu0 %vm160_vm2, %v1972_v28  ;;  %1700 = vmatmul.msk.bf16.gmra.mxu1 %vm160_vm2, %v1990_v29 }
  0x5e   :  { %1826 = vmatmul.msk.bf16.gmra.mxu2 %vm160_vm2, %v2008_v30  ;;  %1952 = vmatmul.msk.bf16.gmra.mxu3 %vm160_vm2, %v2026_v31 }
  0x6d   :  { %1575 = vmatmul.msk.bf16.gmra.mxu0 %vm160_vm2, %v1973_v32  ;;  %1701 = vmatmul.msk.bf16.gmra.mxu1 %vm160_vm2, %v1991_v33 }
  0x6e   :  { %1827 = vmatmul.msk.bf16.gmra.mxu2 %vm160_vm2, %v2009_v34  ;;  %1953 = vmatmul.msk.bf16.gmra.mxu3 %vm160_vm2, %v2027_v35  ;;  %v1977_v34 = vld [vmem:[%s2677_s0 + $0x50] sm:$0xff]  ;;  %v1995_v35 = vld [vmem:[%s2677_s0 + $0xe0] sm:$0xff] }
  0x7d   :  { %1576 = vmatmul.msk.bf16.gmra.mxu0 %vm160_vm2, %v1974_v36  ;;  %1702 = vmatmul.msk.bf16.gmra.mxu1 %vm160_vm2, %v1992_v37 }
  0x7e   :  { %1828 = vmatmul.msk.bf16.gmra.mxu2 %vm160_vm2, %v2010_v38  ;;  %1954 = vmatmul.msk.bf16.gmra.mxu3 %vm160_vm2, %v2028_v39 }
  0x8a   :  { %v231_v42 = vpop.f32.mrf.mxu0  ;;  %v547_v43 = vpop.f32.mrf.mxu1 }
  0x8b   :  { %v232_v51 = vadd.f32 %v2326_v46, %v231_v42  ;;  %v548_v52 = vadd.f32 %v2326_v46, %v547_v43  ;;  %v2013_v42 = vld [vmem:[%s2677_s0 + $0x170] sm:$0xff]  ;;  %v2031_v43 = vld [vmem:[%s2677_s0 + $0x200] sm:$0xff] }
  0x8d   :  { %1577 = vmatmul.msk.bf16.gmra.mxu0 %vm160_vm2, %v1975_v40  ;;  %1703 = vmatmul.msk.bf16.gmra.mxu1 %vm160_vm2, %v1993_v41  ;;  %v321_v57 = vmax.f32 %v232_v51, 0.0  ;;  %v637_v58 = vmax.f32 %v548_v52, 0.0 }
  0x8e   :  { %1829 = vmatmul.msk.bf16.gmra.mxu2 %vm160_vm2, %v2011_v44  ;;  %1955 = vmatmul.msk.bf16.gmra.mxu3 %vm160_vm2, %v2029_v45 }
  0x8f   :  { %v673_v9 = vmax.f32 %v321_v57, %v637_v58 }
  0x91   :  { %v899_v47 = vpop.f32.mrf.mxu2  ;;  %v1215_v48 = vpop.f32.mrf.mxu3 }
  0x92   :  { %v233_v49 = vpop.f32.mrf.mxu0  ;;  %v549_v50 = vpop.f32.mrf.mxu1  ;;  %v900_v53 = vadd.f32 %v2326_v46, %v899_v47  ;;  %v1216_v54 = vadd.f32 %v2326_v46, %v1215_v48 }
  0x93   :  { %v234_v55 = vadd.f32 %v2326_v46, %v233_v49  ;;  %v550_v56 = vadd.f32 %v2326_v46, %v549_v50 }
  0x94   :  { %v989_v59 = vmax.f32 %v900_v53, 0.0  ;;  %v1305_v60 = vmax.f32 %v1216_v54, 0.0 }
  0x95   :  { %v322_v1 = vmax.f32 %v234_v55, 0.0  ;;  %v638_v2 = vmax.f32 %v550_v56, 0.0 }
  0x96   :  { %v1341_v10 = vmax.f32 %v989_v59, %v1305_v60 }
  0x97   :  { %v674_v13 = vmax.f32 %v322_v1, %v638_v2 }
  0x98   :  { %v1377_v15 = vmax.f32 %v673_v9, %v1341_v10 }
  0x99   :  { %v901_v61 = vpop.f32.mrf.mxu2  ;;  %v1217_v62 = vpop.f32.mrf.mxu3 }
  0x9a   :  { %v902_v3 = vadd.f32 %v2326_v46, %v901_v61  ;;  %v1218_v4 = vadd.f32 %v2326_v46, %v1217_v62  ;;  %v236_v5 = vpop.f32.mrf.mxu0  ;;  %v552_v6 = vpop.f32.mrf.mxu1 }
  0x9b   :  { %v237_v22 = vadd.f32 %v2326_v46, %v236_v5  ;;  %v553_v23 = vadd.f32 %v2326_v46, %v552_v6  ;;  %v1978_v6 = vld [vmem:[%s2677_s0 + $0x58] sm:$0xff] }
  0x9c   :  { %v990_v11 = vmax.f32 %v902_v3, 0.0  ;;  %v1306_v12 = vmax.f32 %v1218_v4, 0.0 }
  0x9d   :  { %1578 = vmatmul.msk.bf16.gmra.mxu0 %vm160_vm2, %v1976_v63  ;;  %1704 = vmatmul.msk.bf16.gmra.mxu1 %vm160_vm2, %v1994_v0  ;;  %v323_v28 = vmax.f32 %v237_v22, 0.0  ;;  %v639_v29 = vmax.f32 %v553_v23, 0.0 }
  0x9e   :  { %v1342_v14 = vmax.f32 %v990_v11, %v1306_v12  ;;  %1830 = vmatmul.msk.bf16.gmra.mxu2 %vm160_vm2, %v2012_v7  ;;  %1956 = vmatmul.msk.bf16.gmra.mxu3 %vm160_vm2, %v2030_v8  ;;  %v1996_v7 = vld [vmem:[%s2677_s0 + $0xe8] sm:$0xff] }
  0x9f   :  { %v675_v44 = vmax.f32 %v323_v28, %v639_v29 }
  0xa0   :  { %v1378_v16 = vmax.f32 %v674_v13, %v1342_v14  ;;  %v2014_v14 = vld [vmem:[%s2677_s0 + $0x178] sm:$0xff] }
  0xa1   :  { %v904_v17 = vpop.f32.mrf.mxu2  ;;  %v1220_v18 = vpop.f32.mrf.mxu3 }
  0xa2   :  { %v2042_v19 = vpack.c.bf16 %v1378_v16, %v1377_v15  ;;  %v238_v20 = vpop.f32.mrf.mxu0  ;;  %v554_v21 = vpop.f32.mrf.mxu1  ;;  %v905_v24 = vadd.f32 %v2326_v46, %v904_v17  ;;  %v1221_v25 = vadd.f32 %v2326_v46, %v1220_v18  ;;  %v2032_v15 = vld [vmem:[%s2677_s0 + $0x208] sm:$0xff] }
  0xa3   :  { %v239_v26 = vadd.f32 %v2326_v46, %v238_v20  ;;  %v555_v27 = vadd.f32 %v2326_v46, %v554_v21 }
  0xa4   :  { %2043 = vst [vmem:[%s2678_s3] sm:$0xff] %v2042_v19   ;;  %v991_v30 = vmax.f32 %v905_v24, 0.0  ;;  %v1307_v31 = vmax.f32 %v1221_v25, 0.0 }
  0xa5   :  { %v324_v36 = vmax.f32 %v239_v26, 0.0  ;;  %v640_v37 = vmax.f32 %v555_v27, 0.0 }
  0xa6   :  { %v1343_v45 = vmax.f32 %v991_v30, %v1307_v31 }
  0xa7   :  { %v676_v49 = vmax.f32 %v324_v36, %v640_v37 }
  0xa8   :  { %v1379_v51 = vmax.f32 %v675_v44, %v1343_v45 }
  0xa9   :  { %v906_v32 = vpop.f32.mrf.mxu2  ;;  %v1222_v33 = vpop.f32.mrf.mxu3 }
  0xaa   :  { %v907_v38 = vadd.f32 %v2326_v46, %v906_v32  ;;  %v1223_v39 = vadd.f32 %v2326_v46, %v1222_v33  ;;  %v241_v40 = vpop.f32.mrf.mxu0  ;;  %v557_v41 = vpop.f32.mrf.mxu1 }
  0xab   :  { %v242_v58 = vadd.f32 %v2326_v46, %v241_v40  ;;  %v558_v59 = vadd.f32 %v2326_v46, %v557_v41  ;;  %v1979_v41 = vld [vmem:[%s2677_s0 + $0x60] sm:$0xff] }
  0xac   :  { %v992_v47 = vmax.f32 %v907_v38, 0.0  ;;  %v1308_v48 = vmax.f32 %v1223_v39, 0.0 }
  0xad   :  { %1579 = vmatmul.msk.bf16.gmra.mxu0 %vm160_vm2, %v1977_v34  ;;  %1705 = vmatmul.msk.bf16.gmra.mxu1 %vm160_vm2, %v1995_v35  ;;  %v325_v0 = vmax.f32 %v242_v58, 0.0  ;;  %v641_v1 = vmax.f32 %v558_v59, 0.0 }
  0xae   :  { %v1344_v50 = vmax.f32 %v992_v47, %v1308_v48  ;;  %1831 = vmatmul.msk.bf16.gmra.mxu2 %vm160_vm2, %v2013_v42  ;;  %1957 = vmatmul.msk.bf16.gmra.mxu3 %vm160_vm2, %v2031_v43  ;;  %v1997_v42 = vld [vmem:[%s2677_s0 + $0xf0] sm:$0xff] }
  0xaf   :  { %v677_v16 = vmax.f32 %v325_v0, %v641_v1 }
  0xb0   :  { %v1380_v52 = vmax.f32 %v676_v49, %v1344_v50  ;;  %v2015_v50 = vld [vmem:[%s2677_s0 + $0x180] sm:$0xff] }
  0xb1   :  { %v909_v53 = vpop.f32.mrf.mxu2  ;;  %v1225_v54 = vpop.f32.mrf.mxu3 }
  0xb2   :  { %v2047_v55 = vpack.c.bf16 %v1380_v52, %v1379_v51  ;;  %v243_v56 = vpop.f32.mrf.mxu0  ;;  %v559_v57 = vpop.f32.mrf.mxu1  ;;  %v910_v60 = vadd.f32 %v2326_v46, %v909_v53  ;;  %v1226_v61 = vadd.f32 %v2326_v46, %v1225_v54  ;;  %v2033_v51 = vld [vmem:[%s2677_s0 + $0x210] sm:$0xff] }
  0xb3   :  { %v244_v62 = vadd.f32 %v2326_v46, %v243_v56  ;;  %v560_v63 = vadd.f32 %v2326_v46, %v559_v57 }
  0xb4   :  { %2129 = vst [vmem:[%s2678_s3 + $0x8] sm:$0xff] %v2047_v55   ;;  %v993_v2 = vmax.f32 %v910_v60, 0.0  ;;  %v1309_v3 = vmax.f32 %v1226_v61, 0.0 }
  0xb5   :  { %v326_v8 = vmax.f32 %v244_v62, 0.0  ;;  %v642_v9 = vmax.f32 %v560_v63, 0.0 }
  0xb6   :  { %v1345_v17 = vmax.f32 %v993_v2, %v1309_v3 }
  0xb7   :  { %v678_v20 = vmax.f32 %v326_v8, %v642_v9 }
  0xb8   :  { %v1381_v22 = vmax.f32 %v677_v16, %v1345_v17 }
  0xb9   :  { %v911_v4 = vpop.f32.mrf.mxu2  ;;  %v1227_v5 = vpop.f32.mrf.mxu3 }
  0xba   :  { %v912_v10 = vadd.f32 %v2326_v46, %v911_v4  ;;  %v1228_v11 = vadd.f32 %v2326_v46, %v1227_v5  ;;  %v246_v12 = vpop.f32.mrf.mxu0  ;;  %v562_v13 = vpop.f32.mrf.mxu1 }
  0xbb   :  { %v247_v29 = vadd.f32 %v2326_v46, %v246_v12  ;;  %v563_v30 = vadd.f32 %v2326_v46, %v562_v13  ;;  %v1980_v13 = vld [vmem:[%s2677_s0 + $0x68] sm:$0xff] }
  0xbc   :  { %v994_v18 = vmax.f32 %v912_v10, 0.0  ;;  %v1310_v19 = vmax.f32 %v1228_v11, 0.0 }
  0xbd   :  { %1580 = vmatmul.msk.bf16.gmra.mxu0 %vm160_vm2, %v1978_v6  ;;  %1706 = vmatmul.msk.bf16.gmra.mxu1 %vm160_vm2, %v1996_v7  ;;  %v327_v35 = vmax.f32 %v247_v29, 0.0  ;;  %v643_v36 = vmax.f32 %v563_v30, 0.0 }
  0xbe   :  { %v1346_v21 = vmax.f32 %v994_v18, %v1310_v19  ;;  %1832 = vmatmul.msk.bf16.gmra.mxu2 %vm160_vm2, %v2014_v14  ;;  %1958 = vmatmul.msk.bf16.gmra.mxu3 %vm160_vm2, %v2032_v15  ;;  %v1998_v14 = vld [vmem:[%s2677_s0 + $0xf8] sm:$0xff] }
  0xbf   :  { %v679_v52 = vmax.f32 %v327_v35, %v643_v36 }
  0xc0   :  { %v1382_v23 = vmax.f32 %v678_v20, %v1346_v21  ;;  %v2016_v21 = vld [vmem:[%s2677_s0 + $0x188] sm:$0xff] }
  0xc1   :  { %v914_v24 = vpop.f32.mrf.mxu2  ;;  %v1230_v25 = vpop.f32.mrf.mxu3 }
  0xc2   :  { %v2052_v26 = vpack.c.bf16 %v1382_v23, %v1381_v22  ;;  %v248_v27 = vpop.f32.mrf.mxu0  ;;  %v564_v28 = vpop.f32.mrf.mxu1  ;;  %v915_v31 = vadd.f32 %v2326_v46, %v914_v24  ;;  %v1231_v32 = vadd.f32 %v2326_v46, %v1230_v25  ;;  %v2034_v22 = vld [vmem:[%s2677_s0 + $0x218] sm:$0xff] }
  0xc3   :  { %v249_v33 = vadd.f32 %v2326_v46, %v248_v27  ;;  %v565_v34 = vadd.f32 %v2326_v46, %v564_v28 }
  0xc4   :  { %2130 = vst [vmem:[%s2678_s3 + $0x10] sm:$0xff] %v2052_v26   ;;  %v995_v37 = vmax.f32 %v915_v31, 0.0  ;;  %v1311_v38 = vmax.f32 %v1231_v32, 0.0 }
  0xc5   :  { %v328_v43 = vmax.f32 %v249_v33, 0.0  ;;  %v644_v44 = vmax.f32 %v565_v34, 0.0 }
  0xc6   :  { %v1347_v53 = vmax.f32 %v995_v37, %v1311_v38 }
  0xc7   :  { %v680_v56 = vmax.f32 %v328_v43, %v644_v44 }
  0xc8   :  { %v1383_v58 = vmax.f32 %v679_v52, %v1347_v53 }
  0xc9   :  { %v916_v39 = vpop.f32.mrf.mxu2  ;;  %v1232_v40 = vpop.f32.mrf.mxu3 }
  0xca   :  { %v917_v45 = vadd.f32 %v2326_v46, %v916_v39  ;;  %v1233_v47 = vadd.f32 %v2326_v46, %v1232_v40  ;;  %v251_v48 = vpop.f32.mrf.mxu0  ;;  %v567_v49 = vpop.f32.mrf.mxu1 }
  0xcb   :  { %v252_v1 = vadd.f32 %v2326_v46, %v251_v48  ;;  %v568_v2 = vadd.f32 %v2326_v46, %v567_v49  ;;  %v1981_v49 = vld [vmem:[%s2677_s0 + $0x70] sm:$0xff] }
  0xcc   :  { %v996_v54 = vmax.f32 %v917_v45, 0.0  ;;  %v1312_v55 = vmax.f32 %v1233_v47, 0.0 }
  0xcd   :  { %1581 = vmatmul.msk.bf16.gmra.mxu0 %vm160_vm2, %v1979_v41  ;;  %1707 = vmatmul.msk.bf16.gmra.mxu1 %vm160_vm2, %v1997_v42  ;;  %v329_v7 = vmax.f32 %v252_v1, 0.0  ;;  %v645_v8 = vmax.f32 %v568_v2, 0.0 }
  0xce   :  { %v1348_v57 = vmax.f32 %v996_v54, %v1312_v55  ;;  %1833 = vmatmul.msk.bf16.gmra.mxu2 %vm160_vm2, %v2015_v50  ;;  %1959 = vmatmul.msk.bf16.gmra.mxu3 %vm160_vm2, %v2033_v51  ;;  %v1999_v50 = vld [vmem:[%s2677_s0 + $0x100] sm:$0xff] }
  0xcf   :  { %v681_v23 = vmax.f32 %v329_v7, %v645_v8 }
  0xd0   :  { %v1384_v59 = vmax.f32 %v680_v56, %v1348_v57  ;;  %v2017_v57 = vld [vmem:[%s2677_s0 + $0x190] sm:$0xff] }
  0xd1   :  { %v919_v60 = vpop.f32.mrf.mxu2  ;;  %v1235_v61 = vpop.f32.mrf.mxu3 }
  0xd2   :  { %v2057_v62 = vpack.c.bf16 %v1384_v59, %v1383_v58  ;;  %v253_v63 = vpop.f32.mrf.mxu0  ;;  %v569_v0 = vpop.f32.mrf.mxu1  ;;  %v920_v3 = vadd.f32 %v2326_v46, %v919_v60  ;;  %v1236_v4 = vadd.f32 %v2326_v46, %v1235_v61  ;;  %v2035_v58 = vld [vmem:[%s2677_s0 + $0x220] sm:$0xff] }
  0xd3   :  { %v254_v5 = vadd.f32 %v2326_v46, %v253_v63  ;;  %v570_v6 = vadd.f32 %v2326_v46, %v569_v0 }
  0xd4   :  { %2131 = vst [vmem:[%s2678_s3 + $0x18] sm:$0xff] %v2057_v62   ;;  %v997_v9 = vmax.f32 %v920_v3, 0.0  ;;  %v1313_v10 = vmax.f32 %v1236_v4, 0.0 }
  0xd5   :  { %v330_v15 = vmax.f32 %v254_v5, 0.0  ;;  %v646_v16 = vmax.f32 %v570_v6, 0.0 }
  0xd6   :  { %v1349_v24 = vmax.f32 %v997_v9, %v1313_v10 }
  0xd7   :  { %v682_v27 = vmax.f32 %v330_v15, %v646_v16 }
  0xd8   :  { %v1385_v29 = vmax.f32 %v681_v23, %v1349_v24 }
  0xd9   :  { %v921_v11 = vpop.f32.mrf.mxu2  ;;  %v1237_v12 = vpop.f32.mrf.mxu3 }
  0xda   :  { %v922_v17 = vadd.f32 %v2326_v46, %v921_v11  ;;  %v1238_v18 = vadd.f32 %v2326_v46, %v1237_v12  ;;  %v256_v19 = vpop.f32.mrf.mxu0  ;;  %v572_v20 = vpop.f32.mrf.mxu1 }
  0xdb   :  { %v257_v36 = vadd.f32 %v2326_v46, %v256_v19  ;;  %v573_v37 = vadd.f32 %v2326_v46, %v572_v20  ;;  %v1982_v20 = vld [vmem:[%s2677_s0 + $0x78] sm:$0xff] }
  0xdc   :  { %v998_v25 = vmax.f32 %v922_v17, 0.0  ;;  %v1314_v26 = vmax.f32 %v1238_v18, 0.0 }
  0xdd   :  { %1582 = vmatmul.msk.bf16.gmra.mxu0 %vm160_vm2, %v1980_v13  ;;  %1708 = vmatmul.msk.bf16.gmra.mxu1 %vm160_vm2, %v1998_v14  ;;  %v331_v42 = vmax.f32 %v257_v36, 0.0  ;;  %v647_v43 = vmax.f32 %v573_v37, 0.0 }
  0xde   :  { %v1350_v28 = vmax.f32 %v998_v25, %v1314_v26  ;;  %1834 = vmatmul.msk.bf16.gmra.mxu2 %vm160_vm2, %v2016_v21  ;;  %1960 = vmatmul.msk.bf16.gmra.mxu3 %vm160_vm2, %v2034_v22  ;;  %v2000_v21 = vld [vmem:[%s2677_s0 + $0x108] sm:$0xff] }
  0xdf   :  { %v683_v59 = vmax.f32 %v331_v42, %v647_v43 }
  0xe0   :  { %v1386_v30 = vmax.f32 %v682_v27, %v1350_v28  ;;  %v2018_v28 = vld [vmem:[%s2677_s0 + $0x198] sm:$0xff] }
  0xe1   :  { %v924_v31 = vpop.f32.mrf.mxu2  ;;  %v1240_v32 = vpop.f32.mrf.mxu3 }
  0xe2   :  { %v2062_v33 = vpack.c.bf16 %v1386_v30, %v1385_v29  ;;  %v258_v34 = vpop.f32.mrf.mxu0  ;;  %v574_v35 = vpop.f32.mrf.mxu1  ;;  %v925_v38 = vadd.f32 %v2326_v46, %v924_v31  ;;  %v1241_v39 = vadd.f32 %v2326_v46, %v1240_v32  ;;  %v2036_v29 = vld [vmem:[%s2677_s0 + $0x228] sm:$0xff] }
  0xe3   :  { %v259_v40 = vadd.f32 %v2326_v46, %v258_v34  ;;  %v575_v41 = vadd.f32 %v2326_v46, %v574_v35 }
  0xe4   :  { %2132 = vst [vmem:[%s2678_s3 + $0x20] sm:$0xff] %v2062_v33   ;;  %v999_v44 = vmax.f32 %v925_v38, 0.0  ;;  %v1315_v45 = vmax.f32 %v1241_v39, 0.0 }
  0xe5   :  { %v332_v51 = vmax.f32 %v259_v40, 0.0  ;;  %v648_v52 = vmax.f32 %v575_v41, 0.0 }
  0xe6   :  { %v1351_v60 = vmax.f32 %v999_v44, %v1315_v45 }
  0xe7   :  { %v684_v63 = vmax.f32 %v332_v51, %v648_v52 }
  0xe8   :  { %v1387_v1 = vmax.f32 %v683_v59, %v1351_v60 }
  0xe9   :  { %v926_v47 = vpop.f32.mrf.mxu2  ;;  %v1242_v48 = vpop.f32.mrf.mxu3 }
  0xea   :  { %v927_v53 = vadd.f32 %v2326_v46, %v926_v47  ;;  %v1243_v54 = vadd.f32 %v2326_v46, %v1242_v48  ;;  %v261_v55 = vpop.f32.mrf.mxu0  ;;  %v577_v56 = vpop.f32.mrf.mxu1 }
  0xeb   :  { %v262_v8 = vadd.f32 %v2326_v46, %v261_v55  ;;  %v578_v9 = vadd.f32 %v2326_v46, %v577_v56  ;;  %v1983_v56 = vld [vmem:[%s2677_s0 + $0x80] sm:$0xff] }
  0xec   :  { %v1000_v61 = vmax.f32 %v927_v53, 0.0  ;;  %v1316_v62 = vmax.f32 %v1243_v54, 0.0 }
  0xed   :  { %1583 = vmatmul.msk.bf16.gmra.mxu0 %vm160_vm2, %v1981_v49  ;;  %1709 = vmatmul.msk.bf16.gmra.mxu1 %vm160_vm2, %v1999_v50  ;;  %v333_v14 = vmax.f32 %v262_v8, 0.0  ;;  %v649_v15 = vmax.f32 %v578_v9, 0.0 }
  0xee   :  { %v1352_v0 = vmax.f32 %v1000_v61, %v1316_v62  ;;  %1835 = vmatmul.msk.bf16.gmra.mxu2 %vm160_vm2, %v2017_v57  ;;  %1961 = vmatmul.msk.bf16.gmra.mxu3 %vm160_vm2, %v2035_v58  ;;  %v2001_v57 = vld [vmem:[%s2677_s0 + $0x110] sm:$0xff] }
  0xef   :  { %v685_v30 = vmax.f32 %v333_v14, %v649_v15 }
  0xf0   :  { %v1388_v2 = vmax.f32 %v684_v63, %v1352_v0  ;;  %v2019_v0 = vld [vmem:[%s2677_s0 + $0x1a0] sm:$0xff] }
  0xf1   :  { %v929_v3 = vpop.f32.mrf.mxu2  ;;  %v1245_v4 = vpop.f32.mrf.mxu3 }
  0xf2   :  { %v2067_v5 = vpack.c.bf16 %v1388_v2, %v1387_v1  ;;  %v263_v6 = vpop.f32.mrf.mxu0  ;;  %v579_v7 = vpop.f32.mrf.mxu1  ;;  %v930_v10 = vadd.f32 %v2326_v46, %v929_v3  ;;  %v1246_v11 = vadd.f32 %v2326_v46, %v1245_v4  ;;  %v2037_v1 = vld [vmem:[%s2677_s0 + $0x230] sm:$0xff] }
  0xf3   :  { %v264_v12 = vadd.f32 %v2326_v46, %v263_v6  ;;  %v580_v13 = vadd.f32 %v2326_v46, %v579_v7 }
  0xf4   :  { %2133 = vst [vmem:[%s2678_s3 + $0x28] sm:$0xff] %v2067_v5   ;;  %v1001_v16 = vmax.f32 %v930_v10, 0.0  ;;  %v1317_v17 = vmax.f32 %v1246_v11, 0.0 }
  0xf5   :  { %v334_v22 = vmax.f32 %v264_v12, 0.0  ;;  %v650_v23 = vmax.f32 %v580_v13, 0.0 }
  0xf6   :  { %v1353_v31 = vmax.f32 %v1001_v16, %v1317_v17 }
  0xf7   :  { %v686_v34 = vmax.f32 %v334_v22, %v650_v23 }
  0xf8   :  { %v1389_v36 = vmax.f32 %v685_v30, %v1353_v31 }
  0xf9   :  { %v931_v18 = vpop.f32.mrf.mxu2  ;;  %v1247_v19 = vpop.f32.mrf.mxu3 }
  0xfa   :  { %v932_v24 = vadd.f32 %v2326_v46, %v931_v18  ;;  %v1248_v25 = vadd.f32 %v2326_v46, %v1247_v19  ;;  %v266_v26 = vpop.f32.mrf.mxu0  ;;  %v582_v27 = vpop.f32.mrf.mxu1 }
  0xfb   :  { %v267_v43 = vadd.f32 %v2326_v46, %v266_v26  ;;  %v583_v44 = vadd.f32 %v2326_v46, %v582_v27  ;;  %v1984_v27 = vld [vmem:[%s2677_s0 + $0x88] sm:$0xff] }
  0xfc   :  { %v1002_v32 = vmax.f32 %v932_v24, 0.0  ;;  %v1318_v33 = vmax.f32 %v1248_v25, 0.0 }
  0xfd   :  { %1584 = vmatmul.msk.bf16.gmra.mxu0 %vm160_vm2, %v1982_v20  ;;  %1710 = vmatmul.msk.bf16.gmra.mxu1 %vm160_vm2, %v2000_v21  ;;  %v335_v50 = vmax.f32 %v267_v43, 0.0  ;;  %v651_v51 = vmax.f32 %v583_v44, 0.0 }
  0xfe   :  { %v1354_v35 = vmax.f32 %v1002_v32, %v1318_v33  ;;  %1836 = vmatmul.msk.bf16.gmra.mxu2 %vm160_vm2, %v2018_v28  ;;  %1962 = vmatmul.msk.bf16.gmra.mxu3 %vm160_vm2, %v2036_v29  ;;  %v2002_v28 = vld [vmem:[%s2677_s0 + $0x118] sm:$0xff] }
  0xff   :  { %v687_v2 = vmax.f32 %v335_v50, %v651_v51 }
 0x100   :  { %v1390_v37 = vmax.f32 %v686_v34, %v1354_v35  ;;  %v2020_v35 = vld [vmem:[%s2677_s0 + $0x1a8] sm:$0xff] }
 0x101   :  { %v934_v38 = vpop.f32.mrf.mxu2  ;;  %v1250_v39 = vpop.f32.mrf.mxu3 }
 0x102   :  { %v2072_v40 = vpack.c.bf16 %v1390_v37, %v1389_v36  ;;  %v268_v41 = vpop.f32.mrf.mxu0  ;;  %v584_v42 = vpop.f32.mrf.mxu1  ;;  %v935_v45 = vadd.f32 %v2326_v46, %v934_v38  ;;  %v1251_v47 = vadd.f32 %v2326_v46, %v1250_v39  ;;  %v2038_v36 = vld [vmem:[%s2677_s0 + $0x238] sm:$0xff] }
 0x103   :  { %v269_v48 = vadd.f32 %v2326_v46, %v268_v41  ;;  %v585_v49 = vadd.f32 %v2326_v46, %v584_v42 }
 0x104   :  { %2134 = vst [vmem:[%s2678_s3 + $0x30] sm:$0xff] %v2072_v40   ;;  %v1003_v52 = vmax.f32 %v935_v45, 0.0  ;;  %v1319_v53 = vmax.f32 %v1251_v47, 0.0 }
 0x105   :  { %v336_v58 = vmax.f32 %v269_v48, 0.0  ;;  %v652_v59 = vmax.f32 %v585_v49, 0.0 }
 0x106   :  { %v1355_v3 = vmax.f32 %v1003_v52, %v1319_v53 }
 0x107   :  { %v688_v6 = vmax.f32 %v336_v58, %v652_v59 }
 0x108   :  { %v1391_v8 = vmax.f32 %v687_v2, %v1355_v3 }
 0x109   :  { %v936_v54 = vpop.f32.mrf.mxu2  ;;  %v1252_v55 = vpop.f32.mrf.mxu3 }
 0x10a   :  { %v937_v60 = vadd.f32 %v2326_v46, %v936_v54  ;;  %v1253_v61 = vadd.f32 %v2326_v46, %v1252_v55  ;;  %v271_v62 = vpop.f32.mrf.mxu0  ;;  %v587_v63 = vpop.f32.mrf.mxu1 }
 0x10b   :  { %v272_v15 = vadd.f32 %v2326_v46, %v271_v62  ;;  %v588_v16 = vadd.f32 %v2326_v46, %v587_v63 }
 0x10c   :  { %v1004_v4 = vmax.f32 %v937_v60, 0.0  ;;  %v1320_v5 = vmax.f32 %v1253_v61, 0.0 }
 0x10d   :  { %1585 = vmatmul.msk.bf16.gmra.mxu0 %vm160_vm2, %v1983_v56  ;;  %1711 = vmatmul.msk.bf16.gmra.mxu1 %vm160_vm2, %v2001_v57  ;;  %v337_v21 = vmax.f32 %v272_v15, 0.0  ;;  %v653_v22 = vmax.f32 %v588_v16, 0.0 }
 0x10e   :  { %v1356_v7 = vmax.f32 %v1004_v4, %v1320_v5  ;;  %1837 = vmatmul.msk.bf16.gmra.mxu2 %vm160_vm2, %v2019_v0  ;;  %1963 = vmatmul.msk.bf16.gmra.mxu3 %vm160_vm2, %v2037_v1 }
 0x10f   :  { %v689_v37 = vmax.f32 %v337_v21, %v653_v22 }
 0x110   :  { %v1392_v9 = vmax.f32 %v688_v6, %v1356_v7 }
 0x111   :  { %v939_v10 = vpop.f32.mrf.mxu2  ;;  %v1255_v11 = vpop.f32.mrf.mxu3 }
 0x112   :  { %v2077_v12 = vpack.c.bf16 %v1392_v9, %v1391_v8  ;;  %v273_v13 = vpop.f32.mrf.mxu0  ;;  %v589_v14 = vpop.f32.mrf.mxu1  ;;  %v940_v17 = vadd.f32 %v2326_v46, %v939_v10  ;;  %v1256_v18 = vadd.f32 %v2326_v46, %v1255_v11 }
 0x113   :  { %v274_v19 = vadd.f32 %v2326_v46, %v273_v13  ;;  %v590_v20 = vadd.f32 %v2326_v46, %v589_v14 }
 0x114   :  { %2135 = vst [vmem:[%s2678_s3 + $0x38] sm:$0xff] %v2077_v12   ;;  %v1005_v23 = vmax.f32 %v940_v17, 0.0  ;;  %v1321_v24 = vmax.f32 %v1256_v18, 0.0 }
 0x115   :  { %v338_v29 = vmax.f32 %v274_v19, 0.0  ;;  %v654_v30 = vmax.f32 %v590_v20, 0.0 }
 0x116   :  { %v1357_v38 = vmax.f32 %v1005_v23, %v1321_v24 }
 0x117   :  { %v690_v41 = vmax.f32 %v338_v29, %v654_v30 }
 0x118   :  { %v1393_v43 = vmax.f32 %v689_v37, %v1357_v38 }
 0x119   :  { %v941_v25 = vpop.f32.mrf.mxu2  ;;  %v1257_v26 = vpop.f32.mrf.mxu3 }
 0x11a   :  { %v942_v31 = vadd.f32 %v2326_v46, %v941_v25  ;;  %v1258_v32 = vadd.f32 %v2326_v46, %v1257_v26  ;;  %v276_v33 = vpop.f32.mrf.mxu0  ;;  %v592_v34 = vpop.f32.mrf.mxu1 }
 0x11b   :  { %v277_v51 = vadd.f32 %v2326_v46, %v276_v33  ;;  %v593_v52 = vadd.f32 %v2326_v46, %v592_v34 }
 0x11c   :  { %v1006_v39 = vmax.f32 %v942_v31, 0.0  ;;  %v1322_v40 = vmax.f32 %v1258_v32, 0.0 }
 0x11d   :  { %1586 = vmatmul.msk.bf16.gmra.mxu0 %vm160_vm2, %v1984_v27  ;;  %1712 = vmatmul.msk.bf16.gmra.mxu1 %vm160_vm2, %v2002_v28  ;;  %v339_v57 = vmax.f32 %v277_v51, 0.0  ;;  %v655_v58 = vmax.f32 %v593_v52, 0.0 }
 0x11e   :  { %v1358_v42 = vmax.f32 %v1006_v39, %v1322_v40  ;;  %1838 = vmatmul.msk.bf16.gmra.mxu2 %vm160_vm2, %v2020_v35  ;;  %1964 = vmatmul.msk.bf16.gmra.mxu3 %vm160_vm2, %v2038_v36 }
 0x11f   :  { %v691_v5 = vmax.f32 %v339_v57, %v655_v58 }
 0x120   :  { %v1394_v44 = vmax.f32 %v690_v41, %v1358_v42 }
 0x121   :  { %v944_v45 = vpop.f32.mrf.mxu2  ;;  %v1260_v47 = vpop.f32.mrf.mxu3 }
 0x122   :  { %v2082_v48 = vpack.c.bf16 %v1394_v44, %v1393_v43  ;;  %v278_v49 = vpop.f32.mrf.mxu0  ;;  %v594_v50 = vpop.f32.mrf.mxu1  ;;  %v945_v53 = vadd.f32 %v2326_v46, %v944_v45  ;;  %v1261_v54 = vadd.f32 %v2326_v46, %v1260_v47 }
 0x123   :  { %v279_v55 = vadd.f32 %v2326_v46, %v278_v49  ;;  %v595_v56 = vadd.f32 %v2326_v46, %v594_v50 }
 0x124   :  { %2136 = vst [vmem:[%s2678_s3 + $0x40] sm:$0xff] %v2082_v48   ;;  %v1007_v59 = vmax.f32 %v945_v53, 0.0  ;;  %v1323_v60 = vmax.f32 %v1261_v54, 0.0 }
 0x125   :  { %v340_v63 = vmax.f32 %v279_v55, 0.0  ;;  %v656_v0 = vmax.f32 %v595_v56, 0.0 }
 0x126   :  { %v1359_v6 = vmax.f32 %v1007_v59, %v1323_v60 }
 0x127   :  { %v692_v9 = vmax.f32 %v340_v63, %v656_v0 }
 0x128   :  { %v1395_v11 = vmax.f32 %v691_v5, %v1359_v6 }
 0x129   :  { %v946_v61 = vpop.f32.mrf.mxu2  ;;  %v1262_v62 = vpop.f32.mrf.mxu3 }
 0x12a   :  { %v947_v1 = vadd.f32 %v2326_v46, %v946_v61  ;;  %v1263_v2 = vadd.f32 %v2326_v46, %v1262_v62  ;;  %v281_v3 = vpop.f32.mrf.mxu0  ;;  %v597_v4 = vpop.f32.mrf.mxu1 }
 0x12b   :  { %v282_v18 = vadd.f32 %v2326_v46, %v281_v3  ;;  %v598_v19 = vadd.f32 %v2326_v46, %v597_v4 }
 0x12c   :  { %v1008_v7 = vmax.f32 %v947_v1, 0.0  ;;  %v1324_v8 = vmax.f32 %v1263_v2, 0.0 }
 0x12d   :  { %v341_v24 = vmax.f32 %v282_v18, 0.0  ;;  %v657_v25 = vmax.f32 %v598_v19, 0.0 }
 0x12e   :  { %v1360_v10 = vmax.f32 %v1008_v7, %v1324_v8 }
 0x12f   :  { %v693_v36 = vmax.f32 %v341_v24, %v657_v25 }
 0x130   :  { %v1396_v12 = vmax.f32 %v692_v9, %v1360_v10 }
 0x131   :  { %v949_v13 = vpop.f32.mrf.mxu2  ;;  %v1265_v14 = vpop.f32.mrf.mxu3 }
 0x132   :  { %v2087_v15 = vpack.c.bf16 %v1396_v12, %v1395_v11  ;;  %v283_v16 = vpop.f32.mrf.mxu0  ;;  %v599_v17 = vpop.f32.mrf.mxu1  ;;  %v950_v20 = vadd.f32 %v2326_v46, %v949_v13  ;;  %v1266_v21 = vadd.f32 %v2326_v46, %v1265_v14 }
 0x133   :  { %v284_v22 = vadd.f32 %v2326_v46, %v283_v16  ;;  %v600_v23 = vadd.f32 %v2326_v46, %v599_v17 }
 0x134   :  { %2137 = vst [vmem:[%s2678_s3 + $0x48] sm:$0xff] %v2087_v15   ;;  %v1009_v26 = vmax.f32 %v950_v20, 0.0  ;;  %v1325_v27 = vmax.f32 %v1266_v21, 0.0 }
 0x135   :  { %v342_v30 = vmax.f32 %v284_v22, 0.0  ;;  %v658_v31 = vmax.f32 %v600_v23, 0.0 }
 0x136   :  { %v1361_v37 = vmax.f32 %v1009_v26, %v1325_v27 }
 0x137   :  { %v694_v40 = vmax.f32 %v342_v30, %v658_v31 }
 0x138   :  { %v1397_v42 = vmax.f32 %v693_v36, %v1361_v37 }
 0x139   :  { %v951_v28 = vpop.f32.mrf.mxu2  ;;  %v1267_v29 = vpop.f32.mrf.mxu3 }
 0x13a   :  { %v952_v32 = vadd.f32 %v2326_v46, %v951_v28  ;;  %v1268_v33 = vadd.f32 %v2326_v46, %v1267_v29  ;;  %v286_v34 = vpop.f32.mrf.mxu0  ;;  %v602_v35 = vpop.f32.mrf.mxu1 }
 0x13b   :  { %v287_v50 = vadd.f32 %v2326_v46, %v286_v34  ;;  %v603_v51 = vadd.f32 %v2326_v46, %v602_v35 }
 0x13c   :  { %v1010_v38 = vmax.f32 %v952_v32, 0.0  ;;  %v1326_v39 = vmax.f32 %v1268_v33, 0.0 }
 0x13d   :  { %v343_v56 = vmax.f32 %v287_v50, 0.0  ;;  %v659_v57 = vmax.f32 %v603_v51, 0.0 }
 0x13e   :  { %v1362_v41 = vmax.f32 %v1010_v38, %v1326_v39 }
 0x13f   :  { %v695_v4 = vmax.f32 %v343_v56, %v659_v57 }
 0x140   :  { %v1398_v43 = vmax.f32 %v694_v40, %v1362_v41 }
 0x141   :  { %v954_v44 = vpop.f32.mrf.mxu2  ;;  %v1270_v45 = vpop.f32.mrf.mxu3 }
 0x142   :  { %v2092_v47 = vpack.c.bf16 %v1398_v43, %v1397_v42  ;;  %v288_v48 = vpop.f32.mrf.mxu0  ;;  %v604_v49 = vpop.f32.mrf.mxu1  ;;  %v955_v52 = vadd.f32 %v2326_v46, %v954_v44  ;;  %v1271_v53 = vadd.f32 %v2326_v46, %v1270_v45 }
 0x143   :  { %v289_v54 = vadd.f32 %v2326_v46, %v288_v48  ;;  %v605_v55 = vadd.f32 %v2326_v46, %v604_v49 }
 0x144   :  { %2138 = vst [vmem:[%s2678_s3 + $0x50] sm:$0xff] %v2092_v47   ;;  %v1011_v58 = vmax.f32 %v955_v52, 0.0  ;;  %v1327_v59 = vmax.f32 %v1271_v53, 0.0 }
 0x145   :  { %v344_v62 = vmax.f32 %v289_v54, 0.0  ;;  %v660_v63 = vmax.f32 %v605_v55, 0.0 }
 0x146   :  { %v1363_v5 = vmax.f32 %v1011_v58, %v1327_v59 }
 0x147   :  { %v696_v8 = vmax.f32 %v344_v62, %v660_v63 }
 0x148   :  { %v1399_v10 = vmax.f32 %v695_v4, %v1363_v5 }
 0x149   :  { %v956_v60 = vpop.f32.mrf.mxu2  ;;  %v1272_v61 = vpop.f32.mrf.mxu3 }
 0x14a   :  { %v957_v0 = vadd.f32 %v2326_v46, %v956_v60  ;;  %v1273_v1 = vadd.f32 %v2326_v46, %v1272_v61  ;;  %v291_v2 = vpop.f32.mrf.mxu0  ;;  %v607_v3 = vpop.f32.mrf.mxu1 }
 0x14b   :  { %v292_v17 = vadd.f32 %v2326_v46, %v291_v2  ;;  %v608_v18 = vadd.f32 %v2326_v46, %v607_v3 }
 0x14c   :  { %v1012_v6 = vmax.f32 %v957_v0, 0.0  ;;  %v1328_v7 = vmax.f32 %v1273_v1, 0.0 }
 0x14d   :  { %v345_v23 = vmax.f32 %v292_v17, 0.0  ;;  %v661_v24 = vmax.f32 %v608_v18, 0.0 }
 0x14e   :  { %v1364_v9 = vmax.f32 %v1012_v6, %v1328_v7 }
 0x14f   :  { %v697_v35 = vmax.f32 %v345_v23, %v661_v24 }
 0x150   :  { %v1400_v11 = vmax.f32 %v696_v8, %v1364_v9 }
 0x151   :  { %v959_v12 = vpop.f32.mrf.mxu2  ;;  %v1275_v13 = vpop.f32.mrf.mxu3 }
 0x152   :  { %v2097_v14 = vpack.c.bf16 %v1400_v11, %v1399_v10  ;;  %v293_v15 = vpop.f32.mrf.mxu0  ;;  %v609_v16 = vpop.f32.mrf.mxu1  ;;  %v960_v19 = vadd.f32 %v2326_v46, %v959_v12  ;;  %v1276_v20 = vadd.f32 %v2326_v46, %v1275_v13 }
 0x153   :  { %v294_v21 = vadd.f32 %v2326_v46, %v293_v15  ;;  %v610_v22 = vadd.f32 %v2326_v46, %v609_v16 }
 0x154   :  { %2139 = vst [vmem:[%s2678_s3 + $0x58] sm:$0xff] %v2097_v14   ;;  %v1013_v25 = vmax.f32 %v960_v19, 0.0  ;;  %v1329_v26 = vmax.f32 %v1276_v20, 0.0 }
 0x155   :  { %v346_v29 = vmax.f32 %v294_v21, 0.0  ;;  %v662_v30 = vmax.f32 %v610_v22, 0.0 }
 0x156   :  { %v1365_v36 = vmax.f32 %v1013_v25, %v1329_v26 }
 0x157   :  { %v698_v39 = vmax.f32 %v346_v29, %v662_v30 }
 0x158   :  { %v1401_v41 = vmax.f32 %v697_v35, %v1365_v36 }
 0x159   :  { %v961_v27 = vpop.f32.mrf.mxu2  ;;  %v1277_v28 = vpop.f32.mrf.mxu3 }
 0x15a   :  { %v962_v31 = vadd.f32 %v2326_v46, %v961_v27  ;;  %v1278_v32 = vadd.f32 %v2326_v46, %v1277_v28  ;;  %v296_v33 = vpop.f32.mrf.mxu0  ;;  %v612_v34 = vpop.f32.mrf.mxu1 }
 0x15b   :  { %v297_v49 = vadd.f32 %v2326_v46, %v296_v33  ;;  %v613_v50 = vadd.f32 %v2326_v46, %v612_v34 }
 0x15c   :  { %v1014_v37 = vmax.f32 %v962_v31, 0.0  ;;  %v1330_v38 = vmax.f32 %v1278_v32, 0.0 }
 0x15d   :  { %v347_v55 = vmax.f32 %v297_v49, 0.0  ;;  %v663_v56 = vmax.f32 %v613_v50, 0.0 }
 0x15e   :  { %v1366_v40 = vmax.f32 %v1014_v37, %v1330_v38 }
 0x15f   :  { %v699_v3 = vmax.f32 %v347_v55, %v663_v56 }
 0x160   :  { %v1402_v42 = vmax.f32 %v698_v39, %v1366_v40 }
 0x161   :  { %v964_v43 = vpop.f32.mrf.mxu2  ;;  %v1280_v44 = vpop.f32.mrf.mxu3 }
 0x162   :  { %v2102_v45 = vpack.c.bf16 %v1402_v42, %v1401_v41  ;;  %v298_v47 = vpop.f32.mrf.mxu0  ;;  %v614_v48 = vpop.f32.mrf.mxu1  ;;  %v965_v51 = vadd.f32 %v2326_v46, %v964_v43  ;;  %v1281_v52 = vadd.f32 %v2326_v46, %v1280_v44 }
 0x163   :  { %v299_v53 = vadd.f32 %v2326_v46, %v298_v47  ;;  %v615_v54 = vadd.f32 %v2326_v46, %v614_v48 }
 0x164   :  { %2140 = vst [vmem:[%s2678_s3 + $0x60] sm:$0xff] %v2102_v45   ;;  %v1015_v57 = vmax.f32 %v965_v51, 0.0  ;;  %v1331_v58 = vmax.f32 %v1281_v52, 0.0 }
 0x165   :  { %v348_v61 = vmax.f32 %v299_v53, 0.0  ;;  %v664_v62 = vmax.f32 %v615_v54, 0.0 }
 0x166   :  { %v1367_v4 = vmax.f32 %v1015_v57, %v1331_v58 }
 0x167   :  { %v700_v7 = vmax.f32 %v348_v61, %v664_v62 }
 0x168   :  { %v1403_v9 = vmax.f32 %v699_v3, %v1367_v4 }
 0x169   :  { %v966_v59 = vpop.f32.mrf.mxu2  ;;  %v1282_v60 = vpop.f32.mrf.mxu3 }
 0x16a   :  { %v967_v63 = vadd.f32 %v2326_v46, %v966_v59  ;;  %v1283_v0 = vadd.f32 %v2326_v46, %v1282_v60  ;;  %v301_v1 = vpop.f32.mrf.mxu0  ;;  %v617_v2 = vpop.f32.mrf.mxu1  ;;  %v2629_v46 = vld [vmem:[%s2676_s2] ss:$0 sm:$0xff] }
 0x16b   :  { %v302_v16 = vadd.f32 %v2629_v46, %v301_v1  ;;  %v618_v17 = vadd.f32 %v2629_v46, %v617_v2 }
 0x16c   :  { %v1016_v5 = vmax.f32 %v967_v63, 0.0  ;;  %v1332_v6 = vmax.f32 %v1283_v0, 0.0 }
 0x16d   :  { %v349_v22 = vmax.f32 %v302_v16, 0.0  ;;  %v665_v23 = vmax.f32 %v618_v17, 0.0 }
 0x16e   :  { %v1368_v8 = vmax.f32 %v1016_v5, %v1332_v6 }
 0x16f   :  { %v701_v34 = vmax.f32 %v349_v22, %v665_v23 }
 0x170   :  { %v1404_v10 = vmax.f32 %v700_v7, %v1368_v8 }
 0x171   :  { %v969_v11 = vpop.f32.mrf.mxu2  ;;  %v1285_v12 = vpop.f32.mrf.mxu3 }
 0x172   :  { %v2107_v13 = vpack.c.bf16 %v1404_v10, %v1403_v9  ;;  %v303_v14 = vpop.f32.mrf.mxu0  ;;  %v619_v15 = vpop.f32.mrf.mxu1  ;;  %v970_v18 = vadd.f32 %v2629_v46, %v969_v11  ;;  %v1286_v19 = vadd.f32 %v2629_v46, %v1285_v12 }
 0x173   :  { %v304_v20 = vadd.f32 %v2629_v46, %v303_v14  ;;  %v620_v21 = vadd.f32 %v2629_v46, %v619_v15 }
 0x174   :  { %2141 = vst [vmem:[%s2678_s3 + $0x68] sm:$0xff] %v2107_v13   ;;  %v1017_v24 = vmax.f32 %v970_v18, 0.0  ;;  %v1333_v25 = vmax.f32 %v1286_v19, 0.0 }
 0x175   :  { %v350_v28 = vmax.f32 %v304_v20, 0.0  ;;  %v666_v29 = vmax.f32 %v620_v21, 0.0 }
 0x176   :  { %v1369_v35 = vmax.f32 %v1017_v24, %v1333_v25 }
 0x177   :  { %v702_v38 = vmax.f32 %v350_v28, %v666_v29 }
 0x178   :  { %v1405_v40 = vmax.f32 %v701_v34, %v1369_v35 }
 0x179   :  { %v971_v26 = vpop.f32.mrf.mxu2  ;;  %v1287_v27 = vpop.f32.mrf.mxu3 }
 0x17a   :  { %v972_v30 = vadd.f32 %v2629_v46, %v971_v26  ;;  %v1288_v31 = vadd.f32 %v2629_v46, %v1287_v27  ;;  %v306_v32 = vpop.f32.mrf.mxu0  ;;  %v622_v33 = vpop.f32.mrf.mxu1 }
 0x17b   :  { %v307_v48 = vadd.f32 %v2629_v46, %v306_v32  ;;  %v623_v49 = vadd.f32 %v2629_v46, %v622_v33 }
 0x17c   :  { %v1018_v36 = vmax.f32 %v972_v30, 0.0  ;;  %v1334_v37 = vmax.f32 %v1288_v31, 0.0 }
 0x17d   :  { %v351_v54 = vmax.f32 %v307_v48, 0.0  ;;  %v667_v55 = vmax.f32 %v623_v49, 0.0 }
 0x17e   :  { %v1370_v39 = vmax.f32 %v1018_v36, %v1334_v37 }
 0x17f   :  { %v703_v2 = vmax.f32 %v351_v54, %v667_v55 }
 0x180   :  { %v1406_v41 = vmax.f32 %v702_v38, %v1370_v39 }
 0x181   :  { %v974_v42 = vpop.f32.mrf.mxu2  ;;  %v1290_v43 = vpop.f32.mrf.mxu3 }
 0x182   :  { %v2112_v44 = vpack.c.bf16 %v1406_v41, %v1405_v40  ;;  %v308_v45 = vpop.f32.mrf.mxu0  ;;  %v624_v47 = vpop.f32.mrf.mxu1  ;;  %v975_v50 = vadd.f32 %v2629_v46, %v974_v42  ;;  %v1291_v51 = vadd.f32 %v2629_v46, %v1290_v43 }
 0x183   :  { %v309_v52 = vadd.f32 %v2629_v46, %v308_v45  ;;  %v625_v53 = vadd.f32 %v2629_v46, %v624_v47 }
 0x184   :  { %2142 = vst [vmem:[%s2678_s3 + $0x70] sm:$0xff] %v2112_v44   ;;  %v1019_v56 = vmax.f32 %v975_v50, 0.0  ;;  %v1335_v57 = vmax.f32 %v1291_v51, 0.0 }
 0x185   :  { %v352_v60 = vmax.f32 %v309_v52, 0.0  ;;  %v668_v61 = vmax.f32 %v625_v53, 0.0 }
 0x186   :  { %v1371_v3 = vmax.f32 %v1019_v56, %v1335_v57 }
 0x187   :  { %v704_v6 = vmax.f32 %v352_v60, %v668_v61 }
 0x188   :  { %v1407_v8 = vmax.f32 %v703_v2, %v1371_v3 }
 0x189   :  { %v976_v58 = vpop.f32.mrf.mxu2  ;;  %v1292_v59 = vpop.f32.mrf.mxu3 }
 0x18a   :  { %v977_v62 = vadd.f32 %v2629_v46, %v976_v58  ;;  %v1293_v63 = vadd.f32 %v2629_v46, %v1292_v59  ;;  %v311_v0 = vpop.f32.mrf.mxu0  ;;  %v627_v1 = vpop.f32.mrf.mxu1 }
 0x18b   :  { %v312_v15 = vadd.f32 %v2629_v46, %v311_v0  ;;  %v628_v16 = vadd.f32 %v2629_v46, %v627_v1 }
 0x18c   :  { %v1020_v4 = vmax.f32 %v977_v62, 0.0  ;;  %v1336_v5 = vmax.f32 %v1293_v63, 0.0 }
 0x18d   :  { %v353_v21 = vmax.f32 %v312_v15, 0.0  ;;  %v669_v22 = vmax.f32 %v628_v16, 0.0 }
 0x18e   :  { %v1372_v7 = vmax.f32 %v1020_v4, %v1336_v5 }
 0x18f   :  { %v705_v33 = vmax.f32 %v353_v21, %v669_v22 }
 0x190   :  { %v1408_v9 = vmax.f32 %v704_v6, %v1372_v7 }
 0x191   :  { %v979_v10 = vpop.f32.mrf.mxu2  ;;  %v1295_v11 = vpop.f32.mrf.mxu3 }
 0x192   :  { %v2117_v12 = vpack.c.bf16 %v1408_v9, %v1407_v8  ;;  %v313_v13 = vpop.f32.mrf.mxu0  ;;  %v629_v14 = vpop.f32.mrf.mxu1  ;;  %v980_v17 = vadd.f32 %v2629_v46, %v979_v10  ;;  %v1296_v18 = vadd.f32 %v2629_v46, %v1295_v11 }
 0x193   :  { %v314_v19 = vadd.f32 %v2629_v46, %v313_v13  ;;  %v630_v20 = vadd.f32 %v2629_v46, %v629_v14 }
 0x194   :  { %2143 = vst [vmem:[%s2678_s3 + $0x78] sm:$0xff] %v2117_v12   ;;  %v1021_v23 = vmax.f32 %v980_v17, 0.0  ;;  %v1337_v24 = vmax.f32 %v1296_v18, 0.0 }
 0x195   :  { %v354_v27 = vmax.f32 %v314_v19, 0.0  ;;  %v670_v28 = vmax.f32 %v630_v20, 0.0 }
 0x196   :  { %v1373_v34 = vmax.f32 %v1021_v23, %v1337_v24 }
 0x197   :  { %v706_v37 = vmax.f32 %v354_v27, %v670_v28 }
 0x198   :  { %v1409_v39 = vmax.f32 %v705_v33, %v1373_v34 }
 0x199   :  { %v981_v25 = vpop.f32.mrf.mxu2  ;;  %v1297_v26 = vpop.f32.mrf.mxu3 }
 0x19a   :  { %v982_v29 = vadd.f32 %v2629_v46, %v981_v25  ;;  %v1298_v30 = vadd.f32 %v2629_v46, %v1297_v26  ;;  %v316_v31 = vpop.f32.mrf.mxu0  ;;  %v632_v32 = vpop.f32.mrf.mxu1 }
 0x19b   :  { %v317_v47 = vadd.f32 %v2629_v46, %v316_v31  ;;  %v633_v48 = vadd.f32 %v2629_v46, %v632_v32 }
 0x19c   :  { %v1022_v35 = vmax.f32 %v982_v29, 0.0  ;;  %v1338_v36 = vmax.f32 %v1298_v30, 0.0 }
 0x19d   :  { %v355_v53 = vmax.f32 %v317_v47, 0.0  ;;  %v671_v54 = vmax.f32 %v633_v48, 0.0 }
 0x19e   :  { %v1374_v38 = vmax.f32 %v1022_v35, %v1338_v36 }
 0x19f   :  { %v707_v63 = vmax.f32 %v355_v53, %v671_v54 }
 0x1a0   :  { %v1410_v40 = vmax.f32 %v706_v37, %v1374_v38 }
 0x1a1   :  { %v984_v41 = vpop.f32.mrf.mxu2  ;;  %v1300_v42 = vpop.f32.mrf.mxu3 }
 0x1a2   :  { %v2122_v43 = vpack.c.bf16 %v1410_v40, %v1409_v39  ;;  %v318_v44 = vpop.f32.mrf.mxu0  ;;  %v634_v45 = vpop.f32.mrf.mxu1  ;;  %v985_v49 = vadd.f32 %v2629_v46, %v984_v41  ;;  %v1301_v50 = vadd.f32 %v2629_v46, %v1300_v42 }
 0x1a3   :  { %v319_v51 = vadd.f32 %v2629_v46, %v318_v44  ;;  %v635_v52 = vadd.f32 %v2629_v46, %v634_v45 }
 0x1a4   :  { %2144 = vst [vmem:[%s2678_s3 + $0x80] sm:$0xff] %v2122_v43   ;;  %v1023_v55 = vmax.f32 %v985_v49, 0.0  ;;  %v1339_v56 = vmax.f32 %v1301_v50, 0.0 }
 0x1a5   :  { %v356_v59 = vmax.f32 %v319_v51, 0.0  ;;  %v672_v60 = vmax.f32 %v635_v52, 0.0 }
 0x1a6   :  { %v1375_v0 = vmax.f32 %v1023_v55, %v1339_v56 }
 0x1a7   :  { %v708_v3 = vmax.f32 %v356_v59, %v672_v60 }
 0x1a8   :  { %v1411_v5 = vmax.f32 %v707_v63, %v1375_v0 }
 0x1a9   :  { %v986_v57 = vpop.f32.mrf.mxu2  ;;  %v1302_v58 = vpop.f32.mrf.mxu3 }
 0x1aa   :  { %v987_v61 = vadd.f32 %v2629_v46, %v986_v57  ;;  %v1303_v62 = vadd.f32 %v2629_v46, %v1302_v58 }
 0x1ac   :  { %v1024_v1 = vmax.f32 %v987_v61, 0.0  ;;  %v1340_v2 = vmax.f32 %v1303_v62, 0.0 }
 0x1ae   :  { %v1376_v4 = vmax.f32 %v1024_v1, %v1340_v2 }
 0x1b0   :  { %v1412_v6 = vmax.f32 %v708_v3, %v1376_v4 }
 0x1b2   :  { %v2127_v7 = vpack.c.bf16 %v1412_v6, %v1411_v5 }
 0x1b4   :  { %2145 = vst [vmem:[%s2678_s3 + $0x88] sm:$0xff] %v2127_v7  }

// kernel: quantized_model_forward.4
= control target key start
LH: loop header
LB: loop body
LE: loop exit
PB: predicated region body
PF: predicated region fallthrough
CT: control target
= control target key end

     0   :  { %vm323_vm0 = vcmask 1041408   ;;  %vm316_vm1 = vcmask 949248   ;;  %s1736_s1 = inlined_call_operand.vmem [shape: bf16[500,128], index: 1, kind: input, shape index: {}]   ;;  %s1737_s0 = inlined_call_operand.vmem [shape: bf16[4,32,500], index: 0, kind: input, shape index: {}]   ;;  %s1738_s2 = inlined_call_operand.vmem [shape: f32[1,128], index: 2, kind: input, shape index: {}]   ;;  %s1739_s3 = inlined_call_operand.vmem [shape: bf16[32,128], index: 3, kind: output, shape index: {}]  }
   0x1   :  { %v1212_v0 = vld [vmem:[%s1736_s1 + $0x38] sm:$0xff]  ;;  %v1232_v5 = vld [vmem:[%s1736_s1 + $0x30] sm:$0xff]  ;;  %v1252_v10 = vld [vmem:[%s1736_s1 + $0x28] sm:$0xff] }
   0x2   :  { %v1217_v1 = vld [vmem:[%s1736_s1 + $0x78] sm:$0xff]  ;;  %327 = vmatpush.bf16.msra.mxu0 %v1212_v0  ;;  %v1237_v6 = vld [vmem:[%s1736_s1 + $0x70] sm:$0xff]  ;;  %v1257_v11 = vld [vmem:[%s1736_s1 + $0x68] sm:$0xff] }
   0x3   :  { %v1222_v2 = vld [vmem:[%s1736_s1 + $0xb8] sm:$0xff]  ;;  %346 = vmatpush.bf16.msra.mxu1 %v1217_v1  ;;  %v1243_v7 = vld [vmem:[%s1736_s1 + $0xb0] sm:$0xff]  ;;  %v1269_v13 = vld [vmem:[%s1736_s1 + $0xa8] sm:$0xff] }
   0x4   :  { %v76_v3 = vld [vmem:[%s1736_s1 + $0xf8] sm:$0x3]  ;;  %365 = vmatpush.bf16.msra.mxu2 %v1222_v2  ;;  %v1264_v12 = vld [vmem:[%s1736_s1 + $0xf0] sm:$0xff]  ;;  %v1276_v14 = vld [vmem:[%s1736_s1 + $0x20] sm:$0xff] }
   0x5   :  { %v252_v4 = vunpack.c.l.b16 %v76_v3  ;;  %v1281_v15 = vld [vmem:[%s1736_s1 + $0x60] sm:$0xff]  ;;  %v1288_v16 = vld [vmem:[%s1736_s1 + $0xe8] sm:$0xff]  ;;  %v1300_v18 = vld [vmem:[%s1736_s1 + $0x18] sm:$0xff] }
   0x6   :  { %328 = vmatpush.bf16.msra.mxu0 %v1232_v5  ;;  %v1293_v17 = vld [vmem:[%s1736_s1 + $0xa0] sm:$0xff]  ;;  %v1305_v19 = vld [vmem:[%s1736_s1 + $0x58] sm:$0xff]  ;;  %v1324_v22 = vld [vmem:[%s1736_s1 + $0x10] sm:$0xff] }
   0x7   :  { %v284_v8 = vpack.c.b16 %v252_v4, %v252_v4  ;;  %347 = vmatpush.bf16.msra.mxu1 %v1237_v6  ;;  %v1312_v20 = vld [vmem:[%s1736_s1 + $0xe0] sm:$0xff]  ;;  %v1317_v21 = vld [vmem:[%s1736_s1 + $0x98] sm:$0xff]  ;;  %v1329_v23 = vld [vmem:[%s1736_s1 + $0x50] sm:$0xff] }
   0x8   :  { %366 = vmatpush.bf16.msra.mxu2 %v1243_v7  ;;  %v1336_v24 = vld [vmem:[%s1736_s1 + $0xd8] sm:$0xff]  ;;  %v1341_v25 = vld [vmem:[%s1736_s1 + $0x90] sm:$0xff]  ;;  %v1348_v26 = vld [vmem:[%s1736_s1 + $0x8] sm:$0xff] }
   0x9   :  { %v1245_v9 = vsel %vm323_vm0, %v284_v8, 0  ;;  %v1353_v27 = vld [vmem:[%s1736_s1 + $0x48] sm:$0xff]  ;;  %v1360_v28 = vld [vmem:[%s1736_s1 + $0xd0] sm:$0xff]  ;;  %v1375_v31 = vld [vmem:[%s1736_s1] sm:$0xff] }
   0xa   :  { %384 = vmatpush.bf16.msra.mxu3 %v1245_v9  ;;  %329 = vmatpush.bf16.msra.mxu0 %v1252_v10  ;;  %v1365_v29 = vld [vmem:[%s1736_s1 + $0x88] sm:$0xff]  ;;  %v1380_v32 = vld [vmem:[%s1736_s1 + $0x40] sm:$0xff]  ;;  %v1147_v34 = vld [vmem:[%s1737_s0 + $0xc] sm:$0xf0] }
   0xb   :  { %348 = vmatpush.bf16.msra.mxu1 %v1257_v11  ;;  %v1370_v30 = vld [vmem:[%s1736_s1 + $0xc8] sm:$0xff]  ;;  %v832_v33 = vld [vmem:[%s1737_s0] sm:$0xf]  ;;  %v1145_v35 = vld [vmem:[%s1737_s0 + $0x4] sm:$0xf] }
   0xc   :  { %367 = vmatpush.bf16.msra.mxu2 %v1269_v13  ;;  %v834_v36 = vld [vmem:[%s1737_s0 + $0x10] sm:$0xf0]  ;;  %v1401_v37 = vld [vmem:[%s1736_s1 + $0x80] sm:$0xff]  ;;  %v840_v38 = vld [vmem:[%s1737_s0 + $0x8] sm:$0xf]  ;;  %v833_v40 = vor.u32 %v1147_v34, %v832_v33 }
   0xd   :  { %v1148_v39 = vld [vmem:[%s1737_s0 + $0x14] sm:$0xf0]  ;;  %v837_v41 = vor.u32 %v1145_v35, %v834_v36  ;;  %v1416_v43 = vld [vmem:[%s1736_s1 + $0xc0] sm:$0xff]  ;;  %v1146_v44 = vld [vmem:[%s1737_s0 + $0xc] sm:$0xf] }
   0xe   :  { %385 = vmatpush.bf16.msra.mxu3 %v1264_v12  ;;  %330 = vmatpush.bf16.msra.mxu0 %v1276_v14  ;;  %v841_v42 = vor.u32 %v1148_v39, %v840_v38  ;;  %v842_v45 = vld [vmem:[%s1737_s0 + $0x18] sm:$0xf0]  ;;  %v848_v47 = vld [vmem:[%s1737_s0 + $0x20] sm:$0xf]  ;;  %v1151_v48 = vld [vmem:[%s1737_s0 + $0x2c] sm:$0xf0] }
   0xf   :  { %349 = vmatpush.bf16.msra.mxu1 %v1281_v15  ;;  %v845_v46 = vor.u32 %v1146_v44, %v842_v45  ;;  %v1149_v49 = vld [vmem:[%s1737_s0 + $0x24] sm:$0xf]  ;;  %v850_v50 = vld [vmem:[%s1737_s0 + $0x30] sm:$0xf0]  ;;  %v856_v51 = vld [vmem:[%s1737_s0 + $0x28] sm:$0xf]  ;;  %v849_v53 = vor.u32 %v1151_v48, %v848_v47 }
  0x10   :  { %368 = vmatpush.bf16.msra.mxu2 %v1293_v17  ;;  %v1152_v52 = vld [vmem:[%s1737_s0 + $0x34] sm:$0xf0]  ;;  %v853_v54 = vor.u32 %v1149_v49, %v850_v50  ;;  %v1150_v56 = vld [vmem:[%s1737_s0 + $0x2c] sm:$0xf]  ;;  %v858_v57 = vld [vmem:[%s1737_s0 + $0x38] sm:$0xf0] }
  0x11   :  { %v857_v55 = vor.u32 %v1152_v52, %v856_v51  ;;  %v861_v58 = vor.u32 %v1150_v56, %v858_v57  ;;  %v998_v59 = vld [vmem:[%s1737_s0 + $0x40] sm:$0xf]  ;;  %v1155_v60 = vld [vmem:[%s1737_s0 + $0x4c] sm:$0xf0]  ;;  %v1153_v61 = vld [vmem:[%s1737_s0 + $0x44] sm:$0xf] }
  0x12   :  { %386 = vmatpush.bf16.msra.mxu3 %v1288_v16  ;;  %331 = vmatpush.bf16.msra.mxu0 %v1300_v18  ;;  %v1000_v62 = vld [vmem:[%s1737_s0 + $0x50] sm:$0xf0]  ;;  %v1006_v63 = vld [vmem:[%s1737_s0 + $0x48] sm:$0xf]  ;;  %v1156_v3 = vld [vmem:[%s1737_s0 + $0x54] sm:$0xf0]  ;;  %v999_v4 = vor.u32 %v1155_v60, %v998_v59 }
  0x13   :  { %350 = vmatpush.bf16.msra.mxu1 %v1305_v19  ;;  %v1003_v8 = vor.u32 %v1153_v61, %v1000_v62  ;;  %v1007_v33 = vor.u32 %v1156_v3, %v1006_v63  ;;  %v1154_v34 = vld [vmem:[%s1737_s0 + $0x4c] sm:$0xf]  ;;  %v1008_v35 = vld [vmem:[%s1737_s0 + $0x58] sm:$0xf0]  ;;  %v1014_v38 = vld [vmem:[%s1737_s0 + $0x60] sm:$0xf] }
  0x14   :  { %369 = vmatpush.bf16.msra.mxu2 %v1317_v21  ;;  %v1011_v36 = vor.u32 %v1154_v34, %v1008_v35  ;;  %v1159_v39 = vld [vmem:[%s1737_s0 + $0x6c] sm:$0xf0]  ;;  %v1160_v44 = vld [vmem:[%s1737_s0 + $0x74] sm:$0xf0]  ;;  %v1158_v48 = vld [vmem:[%s1737_s0 + $0x6c] sm:$0xf] }
  0x15   :  { %v1015_v45 = vor.u32 %v1159_v39, %v1014_v38  ;;  %v1024_v49 = vld [vmem:[%s1737_s0 + $0x78] sm:$0xf0]  ;;  %v1040_v51 = vld [vmem:[%s1737_s0 + $0x80] sm:$0xf]  ;;  %v1163_v52 = vld [vmem:[%s1737_s0 + $0x8c] sm:$0xf0] }
  0x16   :  { %387 = vmatpush.bf16.msra.mxu3 %v1312_v20  ;;  %332 = vmatpush.bf16.msra.mxu0 %v1324_v22  ;;  %v1027_v50 = vor.u32 %v1158_v48, %v1024_v49  ;;  %v1164_v56 = vld [vmem:[%s1737_s0 + $0x94] sm:$0xf0]  ;;  %v1041_v57 = vor.u32 %v1163_v52, %v1040_v51  ;;  %v1162_v60 = vld [vmem:[%s1737_s0 + $0x8c] sm:$0xf]  ;;  %v1050_v61 = vld [vmem:[%s1737_s0 + $0x98] sm:$0xf0] }
  0x17   :  { %351 = vmatpush.bf16.msra.mxu1 %v1329_v23  ;;  %v1174_v3 = vld [vmem:[%s1737_s0 + $0xec] sm:$0xf] }
  0x18   :  { %370 = vmatpush.bf16.msra.mxu2 %v1341_v25 }
  0x1a   :  { %388 = vmatpush.bf16.msra.mxu3 %v1336_v24  ;;  %333 = vmatpush.bf16.msra.mxu0 %v1348_v26 }
  0x1b   :  { %352 = vmatpush.bf16.msra.mxu1 %v1353_v27 }
  0x1c   :  { %371 = vmatpush.bf16.msra.mxu2 %v1365_v29 }
  0x1e   :  { %389 = vmatpush.bf16.msra.mxu3 %v1360_v28  ;;  %334 = vmatpush.bf16.msra.mxu0 %v1375_v31 }
  0x1f   :  { %353 = vmatpush.bf16.msra.mxu1 %v1380_v32 }
  0x20   :  { %372 = vmatpush.bf16.msra.mxu2 %v1401_v37 }
  0x21   :  { %335 = vmatmul.bf16.vlgmr.msra.gmra.mxu0 %v833_v40  ;;  %v1157_v40 = vld [vmem:[%s1737_s0 + $0x64] sm:$0xf] }
  0x22   :  { %390 = vmatpush.bf16.msra.mxu3 %v1370_v30  ;;  %460 = vmatpush.bf16.msrb.mxu0 %v1212_v0 }
  0x23   :  { %479 = vmatpush.bf16.msrb.mxu1 %v1217_v1  ;;  %373 = vmatmul.bf16.vlgmr.msra.gmra.mxu2 %v841_v42  ;;  %v1022_v42 = vld [vmem:[%s1737_s0 + $0x68] sm:$0xf] }
  0x24   :  { %354 = vmatmul.bf16.vlgmr.msra.gmra.mxu1 %v837_v41  ;;  %498 = vmatpush.bf16.msrb.mxu2 %v1222_v2  ;;  %v1016_v41 = vld [vmem:[%s1737_s0 + $0x70] sm:$0xf0]  ;;  %v1023_v47 = vor.u32 %v1160_v44, %v1022_v42 }
  0x26   :  { %391 = vmatpush.bf16.msra.mxu3 %v1416_v43  ;;  %461 = vmatpush.bf16.msrb.mxu0 %v1232_v5 }
  0x27   :  { %480 = vmatpush.bf16.msrb.mxu1 %v1237_v6 }
  0x28   :  { %499 = vmatpush.bf16.msrb.mxu2 %v1243_v7 }
  0x29   :  { %986 = vmatmul.msk.bf16.vlgmr.msra.gmra.mxu3 %vm316_vm1, %v845_v46  ;;  %v1019_v46 = vor.u32 %v1157_v40, %v1016_v41 }
  0x2a   :  { %517 = vmatpush.bf16.msrb.mxu3 %v1245_v9  ;;  %462 = vmatpush.bf16.msrb.mxu0 %v1252_v10 }
  0x2b   :  { %481 = vmatpush.bf16.msrb.mxu1 %v1257_v11 }
  0x2c   :  { %500 = vmatpush.bf16.msrb.mxu2 %v1269_v13 }
  0x2e   :  { %518 = vmatpush.bf16.msrb.mxu3 %v1264_v12  ;;  %463 = vmatpush.bf16.msrb.mxu0 %v1276_v14 }
  0x2f   :  { %482 = vmatpush.bf16.msrb.mxu1 %v1281_v15 }
  0x30   :  { %501 = vmatpush.bf16.msrb.mxu2 %v1293_v17 }
  0x31   :  { %340 = vmatmul.bf16.gmra.mxu0 %v849_v53  ;;  %v1161_v53 = vld [vmem:[%s1737_s0 + $0x84] sm:$0xf] }
  0x32   :  { %519 = vmatpush.bf16.msrb.mxu3 %v1288_v16  ;;  %464 = vmatpush.bf16.msrb.mxu0 %v1300_v18 }
  0x33   :  { %378 = vmatmul.bf16.gmra.mxu2 %v857_v55  ;;  %483 = vmatpush.bf16.msrb.mxu1 %v1305_v19  ;;  %v1048_v55 = vld [vmem:[%s1737_s0 + $0x88] sm:$0xf] }
  0x34   :  { %359 = vmatmul.bf16.gmra.mxu1 %v853_v54  ;;  %502 = vmatpush.bf16.msrb.mxu2 %v1317_v21  ;;  %v1042_v54 = vld [vmem:[%s1737_s0 + $0x90] sm:$0xf0]  ;;  %v1049_v59 = vor.u32 %v1164_v56, %v1048_v55 }
  0x36   :  { %520 = vmatpush.bf16.msrb.mxu3 %v1312_v20  ;;  %465 = vmatpush.bf16.msrb.mxu0 %v1324_v22 }
  0x37   :  { %484 = vmatpush.bf16.msrb.mxu1 %v1329_v23 }
  0x38   :  { %503 = vmatpush.bf16.msrb.mxu2 %v1341_v25 }
  0x39   :  { %987 = vmatmul.msk.bf16.gmra.mxu3 %vm316_vm1, %v861_v58  ;;  %v1045_v58 = vor.u32 %v1161_v53, %v1042_v54 }
  0x3a   :  { %521 = vmatpush.bf16.msrb.mxu3 %v1336_v24  ;;  %466 = vmatpush.bf16.msrb.mxu0 %v1348_v26 }
  0x3b   :  { %485 = vmatpush.bf16.msrb.mxu1 %v1353_v27 }
  0x3c   :  { %504 = vmatpush.bf16.msrb.mxu2 %v1365_v29 }
  0x3e   :  { %522 = vmatpush.bf16.msrb.mxu3 %v1360_v28  ;;  %467 = vmatpush.bf16.msrb.mxu0 %v1375_v31 }
  0x3f   :  { %486 = vmatpush.bf16.msrb.mxu1 %v1380_v32 }
  0x40   :  { %505 = vmatpush.bf16.msrb.mxu2 %v1401_v37 }
  0x41   :  { %468 = vmatmul.bf16.vlgmr.msrb.gmra.mxu0 %v999_v4  ;;  %v1108_v4 = vld [vmem:[%s1737_s0 + $0xf8] sm:$0xf0] }
  0x42   :  { %523 = vmatpush.bf16.msrb.mxu3 %v1370_v30  ;;  %597 = vmatpush.bf16.msra.mxu0 %v1212_v0 }
  0x43   :  { %616 = vmatpush.bf16.msra.mxu1 %v1217_v1  ;;  %506 = vmatmul.bf16.vlgmr.msrb.gmra.mxu2 %v1007_v33  ;;  %v1700_v33 = vld [vmem:[%s1738_s2] ss:$0 sm:$0xff] }
  0x44   :  { %635 = vmatpush.bf16.msra.mxu2 %v1222_v2  ;;  %487 = vmatmul.bf16.vlgmr.msrb.gmra.mxu1 %v1003_v8  ;;  %v1111_v8 = vor.u32 %v1174_v3, %v1108_v4 }
  0x46   :  { %524 = vmatpush.bf16.msrb.mxu3 %v1416_v43  ;;  %598 = vmatpush.bf16.msra.mxu0 %v1232_v5 }
  0x47   :  { %617 = vmatpush.bf16.msra.mxu1 %v1237_v6 }
  0x48   :  { %636 = vmatpush.bf16.msra.mxu2 %v1243_v7 }
  0x49   :  { %1028 = vmatmul.msk.bf16.vlgmr.msrb.gmra.mxu3 %vm316_vm1, %v1011_v36 }
  0x4a   :  { %654 = vmatpush.bf16.msra.mxu3 %v1245_v9  ;;  %599 = vmatpush.bf16.msra.mxu0 %v1252_v10 }
  0x4b   :  { %618 = vmatpush.bf16.msra.mxu1 %v1257_v11 }
  0x4c   :  { %637 = vmatpush.bf16.msra.mxu2 %v1269_v13 }
  0x4e   :  { %655 = vmatpush.bf16.msra.mxu3 %v1264_v12  ;;  %600 = vmatpush.bf16.msra.mxu0 %v1276_v14 }
  0x4f   :  { %619 = vmatpush.bf16.msra.mxu1 %v1281_v15 }
  0x50   :  { %638 = vmatpush.bf16.msra.mxu2 %v1293_v17 }
  0x51   :  { %473 = vmatmul.bf16.gmra.mxu0 %v1015_v45 }
  0x52   :  { %656 = vmatpush.bf16.msra.mxu3 %v1288_v16  ;;  %601 = vmatpush.bf16.msra.mxu0 %v1300_v18 }
  0x53   :  { %620 = vmatpush.bf16.msra.mxu1 %v1305_v19  ;;  %511 = vmatmul.bf16.gmra.mxu2 %v1023_v47 }
  0x54   :  { %639 = vmatpush.bf16.msra.mxu2 %v1317_v21  ;;  %492 = vmatmul.bf16.gmra.mxu1 %v1019_v46 }
  0x56   :  { %657 = vmatpush.bf16.msra.mxu3 %v1312_v20  ;;  %602 = vmatpush.bf16.msra.mxu0 %v1324_v22 }
  0x57   :  { %621 = vmatpush.bf16.msra.mxu1 %v1329_v23 }
  0x58   :  { %640 = vmatpush.bf16.msra.mxu2 %v1341_v25 }
  0x59   :  { %1029 = vmatmul.msk.bf16.gmra.mxu3 %vm316_vm1, %v1027_v50 }
  0x5a   :  { %658 = vmatpush.bf16.msra.mxu3 %v1336_v24  ;;  %603 = vmatpush.bf16.msra.mxu0 %v1348_v26 }
  0x5b   :  { %622 = vmatpush.bf16.msra.mxu1 %v1353_v27 }
  0x5c   :  { %641 = vmatpush.bf16.msra.mxu2 %v1365_v29 }
  0x5e   :  { %659 = vmatpush.bf16.msra.mxu3 %v1360_v28  ;;  %604 = vmatpush.bf16.msra.mxu0 %v1375_v31 }
  0x5f   :  { %623 = vmatpush.bf16.msra.mxu1 %v1380_v32 }
  0x60   :  { %642 = vmatpush.bf16.msra.mxu2 %v1401_v37 }
  0x61   :  { %605 = vmatmul.bf16.vlgmr.msra.gmra.mxu0 %v1041_v57 }
  0x62   :  { %660 = vmatpush.bf16.msra.mxu3 %v1370_v30  ;;  %730 = vmatpush.bf16.msrb.mxu0 %v1212_v0  ;;  %v1053_v0 = vor.u32 %v1162_v60, %v1050_v61 }
  0x63   :  { %749 = vmatpush.bf16.msrb.mxu1 %v1217_v1  ;;  %643 = vmatmul.bf16.vlgmr.msra.gmra.mxu2 %v1049_v59  ;;  %v1056_v1 = vld [vmem:[%s1737_s0 + $0xa0] sm:$0xf] }
  0x64   :  { %768 = vmatpush.bf16.msrb.mxu2 %v1222_v2  ;;  %624 = vmatmul.bf16.vlgmr.msra.gmra.mxu1 %v1045_v58  ;;  %v1167_v2 = vld [vmem:[%s1737_s0 + $0xac] sm:$0xf0] }
  0x66   :  { %661 = vmatpush.bf16.msra.mxu3 %v1416_v43  ;;  %731 = vmatpush.bf16.msrb.mxu0 %v1232_v5  ;;  %v1165_v5 = vld [vmem:[%s1737_s0 + $0xa4] sm:$0xf] }
  0x67   :  { %750 = vmatpush.bf16.msrb.mxu1 %v1237_v6  ;;  %v1058_v6 = vld [vmem:[%s1737_s0 + $0xb0] sm:$0xf0] }
  0x68   :  { %769 = vmatpush.bf16.msrb.mxu2 %v1243_v7  ;;  %v1064_v7 = vld [vmem:[%s1737_s0 + $0xa8] sm:$0xf] }
  0x69   :  { %1070 = vmatmul.msk.bf16.vlgmr.msra.gmra.mxu3 %vm316_vm1, %v1053_v0 }
  0x6a   :  { %787 = vmatpush.bf16.msrb.mxu3 %v1245_v9  ;;  %732 = vmatpush.bf16.msrb.mxu0 %v1252_v10  ;;  %v1168_v9 = vld [vmem:[%s1737_s0 + $0xb4] sm:$0xf0]  ;;  %v1057_v10 = vor.u32 %v1167_v2, %v1056_v1 }
  0x6b   :  { %751 = vmatpush.bf16.msrb.mxu1 %v1257_v11  ;;  %v1061_v11 = vor.u32 %v1165_v5, %v1058_v6 }
  0x6c   :  { %770 = vmatpush.bf16.msrb.mxu2 %v1269_v13  ;;  %v1166_v13 = vld [vmem:[%s1737_s0 + $0xac] sm:$0xf] }
  0x6e   :  { %788 = vmatpush.bf16.msrb.mxu3 %v1264_v12  ;;  %733 = vmatpush.bf16.msrb.mxu0 %v1276_v14  ;;  %v1065_v12 = vor.u32 %v1168_v9, %v1064_v7  ;;  %v1066_v14 = vld [vmem:[%s1737_s0 + $0xb8] sm:$0xf0] }
  0x6f   :  { %752 = vmatpush.bf16.msrb.mxu1 %v1281_v15  ;;  %v1069_v15 = vor.u32 %v1166_v13, %v1066_v14 }
  0x70   :  { %771 = vmatpush.bf16.msrb.mxu2 %v1293_v17  ;;  %v1171_v17 = vld [vmem:[%s1737_s0 + $0xcc] sm:$0xf0] }
  0x71   :  { %610 = vmatmul.bf16.gmra.mxu0 %v1057_v10 }
  0x72   :  { %789 = vmatpush.bf16.msrb.mxu3 %v1288_v16  ;;  %734 = vmatpush.bf16.msrb.mxu0 %v1300_v18  ;;  %v1082_v16 = vld [vmem:[%s1737_s0 + $0xc0] sm:$0xf]  ;;  %v1169_v18 = vld [vmem:[%s1737_s0 + $0xc4] sm:$0xf] }
  0x73   :  { %753 = vmatpush.bf16.msrb.mxu1 %v1305_v19  ;;  %648 = vmatmul.bf16.gmra.mxu2 %v1065_v12  ;;  %v1084_v19 = vld [vmem:[%s1737_s0 + $0xd0] sm:$0xf0] }
  0x74   :  { %772 = vmatpush.bf16.msrb.mxu2 %v1317_v21  ;;  %629 = vmatmul.bf16.gmra.mxu1 %v1061_v11  ;;  %v1172_v21 = vld [vmem:[%s1737_s0 + $0xd4] sm:$0xf0] }
  0x76   :  { %790 = vmatpush.bf16.msrb.mxu3 %v1312_v20  ;;  %735 = vmatpush.bf16.msrb.mxu0 %v1324_v22  ;;  %v1090_v20 = vld [vmem:[%s1737_s0 + $0xc8] sm:$0xf]  ;;  %v1083_v22 = vor.u32 %v1171_v17, %v1082_v16 }
  0x77   :  { %754 = vmatpush.bf16.msrb.mxu1 %v1329_v23  ;;  %v1087_v23 = vor.u32 %v1169_v18, %v1084_v19 }
  0x78   :  { %773 = vmatpush.bf16.msrb.mxu2 %v1341_v25  ;;  %v1170_v25 = vld [vmem:[%s1737_s0 + $0xcc] sm:$0xf] }
  0x79   :  { %1071 = vmatmul.msk.bf16.gmra.mxu3 %vm316_vm1, %v1069_v15 }
  0x7a   :  { %791 = vmatpush.bf16.msrb.mxu3 %v1336_v24  ;;  %736 = vmatpush.bf16.msrb.mxu0 %v1348_v26  ;;  %v1091_v24 = vor.u32 %v1172_v21, %v1090_v20  ;;  %v1092_v26 = vld [vmem:[%s1737_s0 + $0xd8] sm:$0xf0] }
  0x7b   :  { %755 = vmatpush.bf16.msrb.mxu1 %v1353_v27  ;;  %v1095_v27 = vor.u32 %v1170_v25, %v1092_v26 }
  0x7c   :  { %774 = vmatpush.bf16.msrb.mxu2 %v1365_v29  ;;  %v1175_v29 = vld [vmem:[%s1737_s0 + $0xec] sm:$0xf0] }
  0x7e   :  { %792 = vmatpush.bf16.msrb.mxu3 %v1360_v28  ;;  %737 = vmatpush.bf16.msrb.mxu0 %v1375_v31  ;;  %v1098_v28 = vld [vmem:[%s1737_s0 + $0xe0] sm:$0xf]  ;;  %v1100_v31 = vld [vmem:[%s1737_s0 + $0xf0] sm:$0xf0] }
  0x7f   :  { %756 = vmatpush.bf16.msrb.mxu1 %v1380_v32  ;;  %v1106_v32 = vld [vmem:[%s1737_s0 + $0xe8] sm:$0xf] }
  0x80   :  { %775 = vmatpush.bf16.msrb.mxu2 %v1401_v37  ;;  %v1176_v37 = vld [vmem:[%s1737_s0 + $0xf4] sm:$0xf0] }
  0x81   :  { %738 = vmatmul.bf16.vlgmr.msrb.gmra.mxu0 %v1083_v22  ;;  %v1107_v63 = vor.u32 %v1176_v37, %v1106_v32 }
  0x82   :  { %793 = vmatpush.bf16.msrb.mxu3 %v1370_v30  ;;  %v1173_v30 = vld [vmem:[%s1737_s0 + $0xe4] sm:$0xf] }
  0x83   :  { %776 = vmatmul.bf16.vlgmr.msrb.gmra.mxu2 %v1091_v24  ;;  %v1103_v62 = vor.u32 %v1173_v30, %v1100_v31 }
  0x84   :  { %757 = vmatmul.bf16.vlgmr.msrb.gmra.mxu1 %v1087_v23 }
  0x86   :  { %794 = vmatpush.bf16.msrb.mxu3 %v1416_v43  ;;  %v1099_v43 = vor.u32 %v1175_v29, %v1098_v28 }
  0x89   :  { %1112 = vmatmul.msk.bf16.vlgmr.msrb.gmra.mxu3 %vm316_vm1, %v1095_v27 }
  0x91   :  { %743 = vmatmul.bf16.gmra.mxu0 %v1099_v43 }
  0x93   :  { %781 = vmatmul.bf16.gmra.mxu2 %v1107_v63 }
  0x94   :  { %762 = vmatmul.bf16.gmra.mxu1 %v1103_v62 }
  0x99   :  { %1113 = vmatmul.msk.bf16.gmra.mxu3 %vm316_vm1, %v1111_v8 }
  0x9e   :  { %v336_v34 = vpop.f32.mrf.mxu0 }
  0x9f   :  { %v337_v36 = vadd.f32 %v1700_v33, %v336_v34 }
  0xa1   :  { %v355_v35 = vpop.f32.mrf.mxu1 }
  0xa2   :  { %v356_v38 = vadd.f32 %v355_v35, %v337_v36 }
  0xa6   :  { %v374_v39 = vpop.f32.mrf.mxu2  ;;  %v338_v41 = vpop.f32.mrf.mxu0 }
  0xa7   :  { %v375_v40 = vadd.f32 %v374_v39, %v356_v38  ;;  %v339_v44 = vadd.f32 %v1700_v33, %v338_v41 }
  0xa9   :  { %v357_v42 = vpop.f32.mrf.mxu1 }
  0xaa   :  { %v358_v45 = vadd.f32 %v357_v42, %v339_v44 }
  0xac   :  { %v393_v46 = vpop.f32.mrf.mxu3 }
  0xad   :  { %v394_v47 = vadd.f32 %v393_v46, %v375_v40 }
  0xae   :  { %v376_v48 = vpop.f32.mrf.mxu2  ;;  %v341_v50 = vpop.f32.mrf.mxu0 }
  0xaf   :  { %v377_v49 = vadd.f32 %v376_v48, %v358_v45  ;;  %v342_v52 = vadd.f32 %v1700_v33, %v341_v50  ;;  %v403_v21 = vmax.f32 %v394_v47, 0.0 }
  0xb1   :  { %v360_v51 = vpop.f32.mrf.mxu1 }
  0xb2   :  { %v361_v53 = vadd.f32 %v360_v51, %v342_v52 }
  0xb4   :  { %v395_v54 = vpop.f32.mrf.mxu3 }
  0xb5   :  { %v396_v55 = vadd.f32 %v395_v54, %v377_v49 }
  0xb6   :  { %v379_v56 = vpop.f32.mrf.mxu2  ;;  %v343_v58 = vpop.f32.mrf.mxu0 }
  0xb7   :  { %v380_v57 = vadd.f32 %v379_v56, %v361_v53  ;;  %v344_v60 = vadd.f32 %v1700_v33, %v343_v58  ;;  %v404_v32 = vmax.f32 %v396_v55, 0.0 }
  0xb9   :  { %v362_v59 = vpop.f32.mrf.mxu1 }
  0xba   :  { %v363_v61 = vadd.f32 %v362_v59, %v344_v60 }
  0xbc   :  { %v398_v0 = vpop.f32.mrf.mxu3 }
  0xbd   :  { %v399_v1 = vadd.f32 %v398_v0, %v380_v57 }
  0xbe   :  { %v381_v2 = vpop.f32.mrf.mxu2  ;;  %v469_v6 = vpop.f32.mrf.mxu0 }
  0xbf   :  { %v382_v5 = vadd.f32 %v381_v2, %v363_v61  ;;  %v470_v9 = vadd.f32 %v1700_v33, %v469_v6  ;;  %v405_v38 = vmax.f32 %v399_v1, 0.0 }
  0xc1   :  { %v488_v7 = vpop.f32.mrf.mxu1 }
  0xc2   :  { %v489_v10 = vadd.f32 %v488_v7, %v470_v9 }
  0xc4   :  { %v400_v11 = vpop.f32.mrf.mxu3 }
  0xc5   :  { %v401_v12 = vadd.f32 %v400_v11, %v382_v5 }
  0xc6   :  { %v507_v13 = vpop.f32.mrf.mxu2  ;;  %v471_v15 = vpop.f32.mrf.mxu0 }
  0xc7   :  { %v508_v14 = vadd.f32 %v507_v13, %v489_v10  ;;  %v472_v17 = vadd.f32 %v1700_v33, %v471_v15  ;;  %v406_v48 = vmax.f32 %v401_v12, 0.0 }
  0xc9   :  { %v490_v16 = vpop.f32.mrf.mxu1 }
  0xca   :  { %v491_v18 = vadd.f32 %v490_v16, %v472_v17 }
  0xcc   :  { %v526_v19 = vpop.f32.mrf.mxu3 }
  0xcd   :  { %v527_v20 = vadd.f32 %v526_v19, %v508_v14 }
  0xce   :  { %v509_v23 = vpop.f32.mrf.mxu2  ;;  %v474_v26 = vpop.f32.mrf.mxu0 }
  0xcf   :  { %v536_v22 = vmax.f32 %v527_v20, 0.0  ;;  %v510_v25 = vadd.f32 %v509_v23, %v491_v18  ;;  %v475_v28 = vadd.f32 %v1700_v33, %v474_v26 }
  0xd1   :  { %v1708_v24 = vmax.f32 %v403_v21, %v536_v22  ;;  %v493_v27 = vpop.f32.mrf.mxu1 }
  0xd2   :  { %v494_v29 = vadd.f32 %v493_v27, %v475_v28 }
  0xd4   :  { %v528_v30 = vpop.f32.mrf.mxu3 }
  0xd5   :  { %v529_v31 = vadd.f32 %v528_v30, %v510_v25 }
  0xd6   :  { %v512_v43 = vpop.f32.mrf.mxu2  ;;  %v476_v3 = vpop.f32.mrf.mxu0 }
  0xd7   :  { %v537_v37 = vmax.f32 %v529_v31, 0.0  ;;  %v513_v63 = vadd.f32 %v512_v43, %v494_v29  ;;  %v477_v8 = vadd.f32 %v1700_v33, %v476_v3 }
  0xd9   :  { %v1711_v62 = vmax.f32 %v404_v32, %v537_v37  ;;  %v495_v4 = vpop.f32.mrf.mxu1 }
  0xda   :  { %v496_v34 = vadd.f32 %v495_v4, %v477_v8 }
  0xdc   :  { %v531_v35 = vpop.f32.mrf.mxu3 }
  0xdd   :  { %v532_v36 = vadd.f32 %v531_v35, %v513_v63 }
  0xde   :  { %v514_v40 = vpop.f32.mrf.mxu2  ;;  %v606_v44 = vpop.f32.mrf.mxu0 }
  0xdf   :  { %v538_v39 = vmax.f32 %v532_v36, 0.0  ;;  %v515_v42 = vadd.f32 %v514_v40, %v496_v34  ;;  %v607_v9 = vadd.f32 %v1700_v33, %v606_v44 }
  0xe1   :  { %v1714_v41 = vmax.f32 %v405_v38, %v538_v39  ;;  %v625_v45 = vpop.f32.mrf.mxu1 }
  0xe2   :  { %v626_v12 = vadd.f32 %v625_v45, %v607_v9 }
  0xe4   :  { %v533_v46 = vpop.f32.mrf.mxu3 }
  0xe5   :  { %v534_v47 = vadd.f32 %v533_v46, %v515_v42 }
  0xe6   :  { %v644_v50 = vpop.f32.mrf.mxu2  ;;  %v608_v52 = vpop.f32.mrf.mxu0 }
  0xe7   :  { %v539_v49 = vmax.f32 %v534_v47, 0.0  ;;  %v609_v14 = vadd.f32 %v1700_v33, %v608_v52  ;;  %v645_v18 = vadd.f32 %v644_v50, %v626_v12 }
  0xe9   :  { %v1716_v51 = vmax.f32 %v406_v48, %v539_v49  ;;  %v627_v53 = vpop.f32.mrf.mxu1 }
  0xea   :  { %v628_v20 = vadd.f32 %v627_v53, %v609_v14 }
  0xec   :  { %v663_v54 = vpop.f32.mrf.mxu3 }
  0xed   :  { %v664_v23 = vadd.f32 %v663_v54, %v645_v18 }
  0xee   :  { %v646_v55 = vpop.f32.mrf.mxu2  ;;  %v611_v56 = vpop.f32.mrf.mxu0 }
  0xef   :  { %v647_v25 = vadd.f32 %v646_v55, %v628_v20  ;;  %v673_v37 = vmax.f32 %v664_v23, 0.0  ;;  %v612_v43 = vadd.f32 %v1700_v33, %v611_v56 }
  0xf1   :  { %v630_v57 = vpop.f32.mrf.mxu1 }
  0xf2   :  { %v631_v38 = vadd.f32 %v630_v57, %v612_v43 }
  0xf4   :  { %v665_v58 = vpop.f32.mrf.mxu3 }
  0xf5   :  { %v666_v28 = vadd.f32 %v665_v58, %v647_v25 }
  0xf6   :  { %v649_v59 = vpop.f32.mrf.mxu2  ;;  %v613_v60 = vpop.f32.mrf.mxu0 }
  0xf7   :  { %v674_v4 = vmax.f32 %v666_v28, 0.0  ;;  %v614_v42 = vadd.f32 %v1700_v33, %v613_v60  ;;  %v650_v48 = vadd.f32 %v649_v59, %v631_v38 }
  0xf9   :  { %v632_v61 = vpop.f32.mrf.mxu1 }
  0xfa   :  { %v633_v52 = vadd.f32 %v632_v61, %v614_v42 }
  0xfc   :  { %v668_v0 = vpop.f32.mrf.mxu3 }
  0xfd   :  { %v669_v56 = vadd.f32 %v668_v0, %v650_v48 }
  0xfe   :  { %v651_v1 = vpop.f32.mrf.mxu2  ;;  %v739_v2 = vpop.f32.mrf.mxu0 }
  0xff   :  { %v740_v6 = vadd.f32 %v1700_v33, %v739_v2  ;;  %v652_v57 = vadd.f32 %v651_v1, %v633_v52 }
 0x101   :  { %v758_v5 = vpop.f32.mrf.mxu1 }
 0x102   :  { %v759_v10 = vadd.f32 %v758_v5, %v740_v6  ;;  %v675_v5 = vmax.f32 %v669_v56, 0.0 }
 0x104   :  { %v670_v7 = vpop.f32.mrf.mxu3 }
 0x106   :  { %v777_v11 = vpop.f32.mrf.mxu2  ;;  %v741_v13 = vpop.f32.mrf.mxu0 }
 0x107   :  { %v778_v15 = vadd.f32 %v777_v11, %v759_v10  ;;  %v742_v19 = vadd.f32 %v1700_v33, %v741_v13 }
 0x109   :  { %v760_v16 = vpop.f32.mrf.mxu1 }
 0x10a   :  { %v761_v26 = vadd.f32 %v760_v16, %v742_v19 }
 0x10c   :  { %v796_v17 = vpop.f32.mrf.mxu3 }
 0x10d   :  { %v797_v21 = vadd.f32 %v796_v17, %v778_v15 }
 0x10e   :  { %v779_v22 = vpop.f32.mrf.mxu2  ;;  %v744_v27 = vpop.f32.mrf.mxu0 }
 0x10f   :  { %v806_v29 = vmax.f32 %v797_v21, 0.0  ;;  %v780_v30 = vadd.f32 %v779_v22, %v761_v26  ;;  %v745_v31 = vadd.f32 %v1700_v33, %v744_v27 }
 0x111   :  { %v763_v3 = vpop.f32.mrf.mxu1  ;;  %v810_v8 = vmax.f32 %v673_v37, %v806_v29 }
 0x112   :  { %v764_v34 = vadd.f32 %v763_v3, %v745_v31 }
 0x113   :  { %v814_v44 = vmax.f32 %v1708_v24, %v810_v8  ;;  %v671_v24 = vadd.f32 %v670_v7, %v652_v57 }
 0x114   :  { %v798_v32 = vpop.f32.mrf.mxu3 }
 0x115   :  { %v799_v63 = vadd.f32 %v798_v32, %v780_v30  ;;  %v676_v6 = vmax.f32 %v671_v24, 0.0 }
 0x116   :  { %v782_v36 = vpop.f32.mrf.mxu2  ;;  %v746_v40 = vpop.f32.mrf.mxu0 }
 0x117   :  { %v807_v35 = vmax.f32 %v799_v63, 0.0  ;;  %v783_v46 = vadd.f32 %v782_v36, %v764_v34  ;;  %v747_v50 = vadd.f32 %v1700_v33, %v746_v40 }
 0x119   :  { %v811_v39 = vmax.f32 %v674_v4, %v807_v35  ;;  %v765_v54 = vpop.f32.mrf.mxu1 }
 0x11a   :  { %v766_v58 = vadd.f32 %v765_v54, %v747_v50 }
 0x11b   :  { %v815_v45 = vmax.f32 %v1711_v62, %v811_v39 }
 0x11c   :  { %v801_v47 = vpop.f32.mrf.mxu3 }
 0x11d   :  { %v1180_v49 = vpack.c.bf16 %v815_v45, %v814_v44  ;;  %v802_v53 = vadd.f32 %v801_v47, %v783_v46 }
 0x11e   :  { %v784_v55 = vpop.f32.mrf.mxu2 }
 0x11f   :  { %1181 = vst [vmem:[%s1739_s3] sm:$0xff] %v1180_v49   ;;  %v808_v60 = vmax.f32 %v802_v53, 0.0  ;;  %v785_v62 = vadd.f32 %v784_v55, %v766_v58 }
 0x121   :  { %v812_v9 = vmax.f32 %v675_v5, %v808_v60 }
 0x123   :  { %v816_v10 = vmax.f32 %v1714_v41, %v812_v9 }
 0x124   :  { %v803_v2 = vpop.f32.mrf.mxu3 }
 0x125   :  { %v804_v59 = vadd.f32 %v803_v2, %v785_v62 }
 0x127   :  { %v809_v33 = vmax.f32 %v804_v59, 0.0 }
 0x129   :  { %v813_v61 = vmax.f32 %v676_v6, %v809_v33 }
 0x12b   :  { %v817_v11 = vmax.f32 %v1716_v51, %v813_v61 }
 0x12d   :  { %v1185_v12 = vpack.c.bf16 %v817_v11, %v816_v10 }
 0x12f   :  { %1187 = vst [vmem:[%s1739_s3 + $0x8] sm:$0xff] %v1185_v12  }

// kernel: quantized_model_forward.5
= control target key start
LH: loop header
LB: loop body
LE: loop exit
PB: predicated region body
PF: predicated region fallthrough
CT: control target
= control target key end

     0   :  { %vm1274_vm0 = vcmask 261120   ;;  %s4639_s1 = inlined_call_operand.vmem [shape: bf16[800,512], index: 1, kind: input, shape index: {}]   ;;  %s4640_s0 = inlined_call_operand.vmem [shape: bf16[16,800], index: 0, kind: input, shape index: {}]   ;;  %s4641_s2 = inlined_call_operand.vmem [shape: f32[1,512], index: 2, kind: input, shape index: {}]   ;;  %s4642_s3 = inlined_call_operand.vmem [shape: bf16[512,128], index: 3, kind: input, shape index: {}]   ;;  %s4643_s4 = inlined_call_operand.vmem [shape: f32[1,128], index: 4, kind: input, shape index: {}]   ;;  %s4644_s5 = inlined_call_operand.vmem [shape: f32[16,128], index: 5, kind: output, shape index: {}]  }
   0x1   :  { %v2146_v0 = vld [vmem:[%s4639_s1 + $0xe0] sm:$0xf]  ;;  %v3001_v1 = vld [vmem:[%s4639_s1 + $0xec] sm:$0xf0] }
   0x2   :  { %v2274_v2 = vld [vmem:[%s4639_s1 + $0x1e0] sm:$0xf]  ;;  %v2147_v3 = vor.u32 %v3001_v1, %v2146_v0  ;;  %v3033_v4 = vld [vmem:[%s4639_s1 + $0x1ec] sm:$0xf0] }
   0x3   :  { %v2402_v5 = vld [vmem:[%s4639_s1 + $0x2e0] sm:$0xf]  ;;  %v3065_v6 = vld [vmem:[%s4639_s1 + $0x2ec] sm:$0xf0]  ;;  %v2275_v7 = vor.u32 %v3033_v4, %v2274_v2 }
   0x4   :  { %v2403_v8 = vor.u32 %v3065_v6, %v2402_v5  ;;  %v2530_v9 = vld [vmem:[%s4639_s1 + $0x3e0] sm:$0xf]  ;;  %v3097_v10 = vld [vmem:[%s4639_s1 + $0x3ec] sm:$0xf0]  ;;  %1278 = vmatpush.bf16.msra.mxu0 %v2147_v3 }
   0x5   :  { %v2130_v11 = vld [vmem:[%s4639_s1 + $0xc0] sm:$0xf]  ;;  %v2531_v12 = vor.u32 %v3097_v10, %v2530_v9  ;;  %v2997_v13 = vld [vmem:[%s4639_s1 + $0xcc] sm:$0xf0]  ;;  %1292 = vmatpush.bf16.msra.mxu1 %v2275_v7 }
   0x6   :  { %v2258_v14 = vld [vmem:[%s4639_s1 + $0x1c0] sm:$0xf]  ;;  %v3029_v15 = vld [vmem:[%s4639_s1 + $0x1cc] sm:$0xf0]  ;;  %1306 = vmatpush.bf16.msra.mxu2 %v2403_v8  ;;  %v2131_v16 = vor.u32 %v2997_v13, %v2130_v11 }
   0x7   :  { %v2259_v17 = vor.u32 %v3029_v15, %v2258_v14  ;;  %v2386_v18 = vld [vmem:[%s4639_s1 + $0x2c0] sm:$0xf]  ;;  %v3061_v19 = vld [vmem:[%s4639_s1 + $0x2cc] sm:$0xf0]  ;;  %1320 = vmatpush.bf16.msra.mxu3 %v2531_v12 }
   0x8   :  { %v2514_v20 = vld [vmem:[%s4639_s1 + $0x3c0] sm:$0xf]  ;;  %v2387_v21 = vor.u32 %v3061_v19, %v2386_v18  ;;  %v3093_v22 = vld [vmem:[%s4639_s1 + $0x3cc] sm:$0xf0]  ;;  %1279 = vmatpush.bf16.msra.mxu0 %v2131_v16 }
   0x9   :  { %v2114_v23 = vld [vmem:[%s4639_s1 + $0xa0] sm:$0xf]  ;;  %v2993_v24 = vld [vmem:[%s4639_s1 + $0xac] sm:$0xf0]  ;;  %v2515_v25 = vor.u32 %v3093_v22, %v2514_v20  ;;  %1293 = vmatpush.bf16.msra.mxu1 %v2259_v17 }
   0xa   :  { %v2242_v26 = vld [vmem:[%s4639_s1 + $0x1a0] sm:$0xf]  ;;  %v3025_v27 = vld [vmem:[%s4639_s1 + $0x1ac] sm:$0xf0]  ;;  %v2115_v29 = vor.u32 %v2993_v24, %v2114_v23  ;;  %1307 = vmatpush.bf16.msra.mxu2 %v2387_v21 }
   0xb   :  { %v2370_v28 = vld [vmem:[%s4639_s1 + $0x2a0] sm:$0xf]  ;;  %v3057_v30 = vld [vmem:[%s4639_s1 + $0x2ac] sm:$0xf0]  ;;  %v2243_v33 = vor.u32 %v3025_v27, %v2242_v26  ;;  %1321 = vmatpush.bf16.msra.mxu3 %v2515_v25 }
   0xc   :  { %v2498_v31 = vld [vmem:[%s4639_s1 + $0x3a0] sm:$0xf]  ;;  %v3089_v32 = vld [vmem:[%s4639_s1 + $0x3ac] sm:$0xf0]  ;;  %v2371_v34 = vor.u32 %v3057_v30, %v2370_v28  ;;  %1280 = vmatpush.bf16.msra.mxu0 %v2115_v29 }
   0xd   :  { %v2098_v35 = vld [vmem:[%s4639_s1 + $0x80] sm:$0xf]  ;;  %v2989_v36 = vld [vmem:[%s4639_s1 + $0x8c] sm:$0xf0]  ;;  %v2499_v38 = vor.u32 %v3089_v32, %v2498_v31  ;;  %1294 = vmatpush.bf16.msra.mxu1 %v2243_v33 }
   0xe   :  { %v2226_v37 = vld [vmem:[%s4639_s1 + $0x180] sm:$0xf]  ;;  %v3021_v39 = vld [vmem:[%s4639_s1 + $0x18c] sm:$0xf0]  ;;  %v2099_v44 = vor.u32 %v2989_v36, %v2098_v35  ;;  %1308 = vmatpush.bf16.msra.mxu2 %v2371_v34  ;;  %v2999_v34 = vld [vmem:[%s4639_s1 + $0xe4] sm:$0xf] }
   0xf   :  { %v2354_v40 = vld [vmem:[%s4639_s1 + $0x280] sm:$0xf]  ;;  %v3053_v41 = vld [vmem:[%s4639_s1 + $0x28c] sm:$0xf0]  ;;  %v2227_v45 = vor.u32 %v3021_v39, %v2226_v37  ;;  %1322 = vmatpush.bf16.msra.mxu3 %v2499_v38  ;;  %v2148_v35 = vld [vmem:[%s4639_s1 + $0xf0] sm:$0xf0] }
  0x10   :  { %v2482_v42 = vld [vmem:[%s4639_s1 + $0x380] sm:$0xf]  ;;  %v3085_v43 = vld [vmem:[%s4639_s1 + $0x38c] sm:$0xf0]  ;;  %v2355_v46 = vor.u32 %v3053_v41, %v2354_v40  ;;  %1281 = vmatpush.bf16.msra.mxu0 %v2099_v44  ;;  %v2014_v37 = vld [vmem:[%s4640_s0 + $0x8] sm:$0xf] }
  0x11   :  { %v2082_v47 = vld [vmem:[%s4639_s1 + $0x60] sm:$0xf]  ;;  %v2985_v48 = vld [vmem:[%s4639_s1 + $0x6c] sm:$0xf0]  ;;  %v2483_v50 = vor.u32 %v3085_v43, %v2482_v42  ;;  %1295 = vmatpush.bf16.msra.mxu1 %v2227_v45  ;;  %v2968_v38 = vld [vmem:[%s4640_s0 + $0x20] sm:$0xf0] }
  0x12   :  { %v2210_v49 = vld [vmem:[%s4639_s1 + $0x160] sm:$0xf]  ;;  %v3017_v51 = vld [vmem:[%s4639_s1 + $0x16c] sm:$0xf0]  ;;  %v2083_v56 = vor.u32 %v2985_v48, %v2082_v47  ;;  %1309 = vmatpush.bf16.msra.mxu2 %v2355_v46  ;;  %v2967_v42 = vld [vmem:[%s4640_s0 + $0x18] sm:$0xf0] }
  0x13   :  { %v2338_v52 = vld [vmem:[%s4639_s1 + $0x260] sm:$0xf]  ;;  %v3049_v53 = vld [vmem:[%s4639_s1 + $0x26c] sm:$0xf0]  ;;  %v2211_v57 = vor.u32 %v3017_v51, %v2210_v49  ;;  %1323 = vmatpush.bf16.msra.mxu3 %v2483_v50  ;;  %v2965_v43 = vld [vmem:[%s4640_s0 + $0xc] sm:$0xf] }
  0x14   :  { %v2466_v54 = vld [vmem:[%s4639_s1 + $0x360] sm:$0xf]  ;;  %v3081_v55 = vld [vmem:[%s4639_s1 + $0x36c] sm:$0xf0]  ;;  %v2339_v58 = vor.u32 %v3049_v53, %v2338_v52  ;;  %1282 = vmatpush.bf16.msra.mxu0 %v2083_v56  ;;  %v2016_v44 = vld [vmem:[%s4640_s0 + $0x24] sm:$0xf0]  ;;  %v3486_v56 = vor.u32 %v2968_v38, %v2014_v37 }
  0x15   :  { %v2066_v59 = vld [vmem:[%s4639_s1 + $0x40] sm:$0xf]  ;;  %v2981_v60 = vld [vmem:[%s4639_s1 + $0x4c] sm:$0xf0]  ;;  %v2467_v62 = vor.u32 %v3081_v55, %v2466_v54  ;;  %1296 = vmatpush.bf16.msra.mxu1 %v2211_v57  ;;  %v2964_v53 = vld [vmem:[%s4640_s0 + $0x4] sm:$0xf]  ;;  %v2151_v55 = vor.u32 %v2999_v34, %v2148_v35 }
  0x16   :  { %v2194_v61 = vld [vmem:[%s4639_s1 + $0x140] sm:$0xf]  ;;  %v3013_v63 = vld [vmem:[%s4639_s1 + $0x14c] sm:$0xf0]  ;;  %v2067_v4 = vor.u32 %v2981_v60, %v2066_v59  ;;  %1310 = vmatpush.bf16.msra.mxu2 %v2339_v58  ;;  %v2995_v59 = vld [vmem:[%s4639_s1 + $0xc4] sm:$0xf] }
  0x17   :  { %v2322_v0 = vld [vmem:[%s4639_s1 + $0x240] sm:$0xf]  ;;  %v3045_v1 = vld [vmem:[%s4639_s1 + $0x24c] sm:$0xf0]  ;;  %v2195_v6 = vor.u32 %v3013_v63, %v2194_v61  ;;  %1324 = vmatpush.bf16.msra.mxu3 %v2467_v62  ;;  %v3499_v61 = vor.u32 %v2965_v43, %v2016_v44  ;;  %v2132_v62 = vld [vmem:[%s4639_s1 + $0xd0] sm:$0xf0] }
  0x18   :  { %v2450_v2 = vld [vmem:[%s4639_s1 + $0x340] sm:$0xf]  ;;  %v3077_v3 = vld [vmem:[%s4639_s1 + $0x34c] sm:$0xf0]  ;;  %v2323_v7 = vor.u32 %v3045_v1, %v2322_v0  ;;  %1283 = vmatpush.bf16.msra.mxu0 %v2067_v4  ;;  %v3031_v63 = vld [vmem:[%s4639_s1 + $0x1e4] sm:$0xf] }
  0x19   :  { %v2050_v5 = vld [vmem:[%s4639_s1 + $0x20] sm:$0xf]  ;;  %v2977_v8 = vld [vmem:[%s4639_s1 + $0x2c] sm:$0xf0]  ;;  %v2451_v11 = vor.u32 %v3077_v3, %v2450_v2  ;;  %1297 = vmatpush.bf16.msra.mxu1 %v2195_v6  ;;  %v2276_v0 = vld [vmem:[%s4639_s1 + $0x1f0] sm:$0xf0] }
  0x1a   :  { %v2178_v9 = vld [vmem:[%s4639_s1 + $0x120] sm:$0xf]  ;;  %v3009_v10 = vld [vmem:[%s4639_s1 + $0x12c] sm:$0xf0]  ;;  %v2051_v18 = vor.u32 %v2977_v8, %v2050_v5  ;;  %1311 = vmatpush.bf16.msra.mxu2 %v2323_v7  ;;  %v2135_v7 = vor.u32 %v2995_v59, %v2132_v62  ;;  %v2279_v8 = vor.u32 %v3031_v63, %v2276_v0  ;;  %v2983_v35 = vld [vmem:[%s4639_s1 + $0x64] sm:$0xf] }
  0x1b   :  { %v2306_v12 = vld [vmem:[%s4639_s1 + $0x220] sm:$0xf]  ;;  %v3041_v13 = vld [vmem:[%s4639_s1 + $0x22c] sm:$0xf0]  ;;  %v2179_v23 = vor.u32 %v3009_v10, %v2178_v9  ;;  %1325 = vmatpush.bf16.msra.mxu3 %v2451_v11  ;;  %v2991_v11 = vld [vmem:[%s4639_s1 + $0xa4] sm:$0xf] }
  0x1c   :  { %v2434_v14 = vld [vmem:[%s4639_s1 + $0x320] sm:$0xf]  ;;  %v3073_v15 = vld [vmem:[%s4639_s1 + $0x32c] sm:$0xf0]  ;;  %v2307_v24 = vor.u32 %v3041_v13, %v2306_v12  ;;  %1284 = vmatpush.bf16.msra.mxu0 %v2051_v18  ;;  %v2116_v12 = vld [vmem:[%s4639_s1 + $0xb0] sm:$0xf0] }
  0x1d   :  { %v2034_v16 = vld [vmem:[%s4639_s1] sm:$0xf]  ;;  %v2973_v17 = vld [vmem:[%s4639_s1 + $0xc] sm:$0xf0]  ;;  %v2435_v29 = vor.u32 %v3073_v15, %v2434_v14  ;;  %1298 = vmatpush.bf16.msra.mxu1 %v2179_v23  ;;  %v3027_v13 = vld [vmem:[%s4639_s1 + $0x1c4] sm:$0xf] }
  0x1e   :  { %v2162_v19 = vld [vmem:[%s4639_s1 + $0x100] sm:$0xf]  ;;  %v3005_v20 = vld [vmem:[%s4639_s1 + $0x10c] sm:$0xf0]  ;;  %v2035_v36 = vor.u32 %v2973_v17, %v2034_v16  ;;  %1312 = vmatpush.bf16.msra.mxu2 %v2307_v24  ;;  %v2260_v14 = vld [vmem:[%s4639_s1 + $0x1d0] sm:$0xf0] }
  0x1f   :  { %v2290_v21 = vld [vmem:[%s4639_s1 + $0x200] sm:$0xf]  ;;  %v3037_v22 = vld [vmem:[%s4639_s1 + $0x20c] sm:$0xf0]  ;;  %v2163_v40 = vor.u32 %v3005_v20, %v2162_v19  ;;  %1326 = vmatpush.bf16.msra.mxu3 %v2435_v29  ;;  %v2119_v19 = vor.u32 %v2991_v11, %v2116_v12  ;;  %v2263_v20 = vor.u32 %v3027_v13, %v2260_v14  ;;  %v2987_v23 = vld [vmem:[%s4639_s1 + $0x84] sm:$0xf] }
  0x20   :  { %v2418_v25 = vld [vmem:[%s4639_s1 + $0x300] sm:$0xf]  ;;  %v3069_v26 = vld [vmem:[%s4639_s1 + $0x30c] sm:$0xf0]  ;;  %v2291_v41 = vor.u32 %v3037_v22, %v2290_v21  ;;  %1285 = vmatpush.bf16.msra.mxu0 %v2035_v36  ;;  %v2100_v24 = vld [vmem:[%s4639_s1 + $0x90] sm:$0xf0] }
  0x21   :  { %v2658_v27 = vld [vmem:[%s4639_s1 + $0x4e0] sm:$0xf]  ;;  %v3129_v28 = vld [vmem:[%s4639_s1 + $0x4ec] sm:$0xf0]  ;;  %v2419_v45 = vor.u32 %v3069_v26, %v2418_v25  ;;  %1299 = vmatpush.bf16.msra.mxu1 %v2163_v40  ;;  %v3023_v25 = vld [vmem:[%s4639_s1 + $0x1a4] sm:$0xf] }
  0x22   :  { %v2786_v30 = vld [vmem:[%s4639_s1 + $0x5e0] sm:$0xf]  ;;  %v3161_v31 = vld [vmem:[%s4639_s1 + $0x5ec] sm:$0xf0]  ;;  %v2659_v46 = vor.u32 %v3129_v28, %v2658_v27  ;;  %1313 = vmatpush.bf16.msra.mxu2 %v2291_v41  ;;  %v2244_v26 = vld [vmem:[%s4639_s1 + $0x1b0] sm:$0xf0] }
  0x23   :  { %v2818_v32 = vld [vmem:[%s4639_s1 + $0x620] sm:$0xf]  ;;  %v3169_v33 = vld [vmem:[%s4639_s1 + $0x62c] sm:$0xf0]  ;;  %v2787_v50 = vor.u32 %v3161_v31, %v2786_v30  ;;  %1327 = vmatpush.bf16.msra.mxu3 %v2419_v45  ;;  %v2103_v31 = vor.u32 %v2987_v23, %v2100_v24  ;;  %v2084_v36 = vld [vmem:[%s4639_s1 + $0x70] sm:$0xf0] }
  0x24   :  { %v2006_v39 = vld [vmem:[%s4640_s0] sm:$0xf]  ;;  %v3125_v48 = vld [vmem:[%s4639_s1 + $0x4cc] sm:$0xf0]  ;;  %v2819_v51 = vor.u32 %v3169_v33, %v2818_v32  ;;  %1334 = vmatpush.bf16.msrb.mxu0 %v2659_v46  ;;  %v2247_v32 = vor.u32 %v3023_v25, %v2244_v26  ;;  %v3019_v37 = vld [vmem:[%s4639_s1 + $0x184] sm:$0xf]  ;;  %v2087_v45 = vor.u32 %v2983_v35, %v2084_v36 }
  0x25   :  { %v2642_v47 = vld [vmem:[%s4639_s1 + $0x4c0] sm:$0xf]  ;;  %v3157_v52 = vld [vmem:[%s4639_s1 + $0x5cc] sm:$0xf0]  ;;  %v3497_v60 = vor.u32 %v2967_v42, %v2006_v39  ;;  %1348 = vmatpush.bf16.msrb.mxu1 %v2787_v50  ;;  %1314 = vmatmul.bf16.vlgmr.msra.gmra.mxu2 %v3486_v56  ;;  %v2228_v38 = vld [vmem:[%s4639_s1 + $0x190] sm:$0xf0] }
  0x26   :  { %v2770_v49 = vld [vmem:[%s4639_s1 + $0x5c0] sm:$0xf]  ;;  %v3165_v58 = vld [vmem:[%s4639_s1 + $0x60c] sm:$0xf0]  ;;  %v2643_v1 = vor.u32 %v3125_v48, %v2642_v47  ;;  %1368 = vmatpush.bf16.msrb.mxu2 %v2819_v51  ;;  %1328 = vmatmul.bf16.vlgmr.msra.gmra.mxu3 %v3499_v61  ;;  %v2030_v40 = vld [vmem:[%s4640_s0 + $0x18] sm:$0xf]  ;;  %v2231_v46 = vor.u32 %v3019_v37, %v2228_v38 }
  0x27   :  { %v2008_v54 = vld [vmem:[%s4640_s0 + $0x1c] sm:$0xf0]  ;;  %v2771_v3 = vor.u32 %v3157_v52, %v2770_v49  ;;  %v3121_v6 = vld [vmem:[%s4639_s1 + $0x4ac] sm:$0xf0]  ;;  %1376 = vmatpush.bf16.msrb.mxu3 %v2151_v55  ;;  %1286 = vmatmul.bf16.vlgmr.msra.gmra.mxu0 %v3497_v60  ;;  %v2970_v41 = vld [vmem:[%s4640_s0 + $0x30] sm:$0xf0] }
  0x28   :  { %v2802_v57 = vld [vmem:[%s4639_s1 + $0x600] sm:$0xf]  ;;  %v3510_v2 = vor.u32 %v2964_v53, %v2008_v54  ;;  %v3153_v10 = vld [vmem:[%s4639_s1 + $0x5ac] sm:$0xf0]  ;;  %1335 = vmatpush.bf16.msrb.mxu0 %v2643_v1  ;;  %v2979_v49 = vld [vmem:[%s4639_s1 + $0x44] sm:$0xf]  ;;  %v3618_v53 = vor.u32 %v2970_v41, %v2030_v40 }
  0x29   :  { %v2803_v4 = vor.u32 %v3165_v58, %v2802_v57  ;;  %v2626_v5 = vld [vmem:[%s4639_s1 + $0x4a0] sm:$0xf]  ;;  %1349 = vmatpush.bf16.msrb.mxu1 %v2771_v3  ;;  %v3117_v18 = vld [vmem:[%s4639_s1 + $0x48c] sm:$0xf0]  ;;  %v2068_v50 = vld [vmem:[%s4639_s1 + $0x50] sm:$0xf0] }
  0x2a   :  { %v2754_v9 = vld [vmem:[%s4639_s1 + $0x5a0] sm:$0xf]  ;;  %1300 = vmatmul.bf16.vlgmr.msra.gmra.mxu1 %v3510_v2  ;;  %v2627_v15 = vor.u32 %v3121_v6, %v2626_v5  ;;  %v3149_v22 = vld [vmem:[%s4639_s1 + $0x58c] sm:$0xf0]  ;;  %v3015_v51 = vld [vmem:[%s4639_s1 + $0x164] sm:$0xf]  ;;  %v2071_v59 = vor.u32 %v2979_v49, %v2068_v50 }
  0x2b   :  { %1369 = vmatpush.bf16.msrb.mxu2 %v2803_v4  ;;  %v2755_v16 = vor.u32 %v3153_v10, %v2754_v9  ;;  %v2610_v17 = vld [vmem:[%s4639_s1 + $0x480] sm:$0xf]  ;;  %1377 = vmatpush.bf16.msrb.mxu3 %v2135_v7  ;;  %v3113_v30 = vld [vmem:[%s4639_s1 + $0x46c] sm:$0xf0]  ;;  %v2212_v52 = vld [vmem:[%s4639_s1 + $0x170] sm:$0xf0] }
  0x2c   :  { %v2738_v21 = vld [vmem:[%s4639_s1 + $0x580] sm:$0xf]  ;;  %1336 = vmatpush.bf16.msrb.mxu0 %v2627_v15  ;;  %v2611_v27 = vor.u32 %v3117_v18, %v2610_v17  ;;  %v3145_v34 = vld [vmem:[%s4639_s1 + $0x56c] sm:$0xf0]  ;;  %v2215_v62 = vor.u32 %v3015_v51, %v2212_v52  ;;  %v2975_v1 = vld [vmem:[%s4639_s1 + $0x24] sm:$0xf] }
  0x2d   :  { %1350 = vmatpush.bf16.msrb.mxu1 %v2755_v16  ;;  %v2739_v28 = vor.u32 %v3149_v22, %v2738_v21  ;;  %v2594_v29 = vld [vmem:[%s4639_s1 + $0x460] sm:$0xf]  ;;  %v3109_v44 = vld [vmem:[%s4639_s1 + $0x44c] sm:$0xf0]  ;;  %v2052_v3 = vld [vmem:[%s4639_s1 + $0x30] sm:$0xf0] }
  0x2e   :  { %v2722_v33 = vld [vmem:[%s4639_s1 + $0x560] sm:$0xf]  ;;  %v2595_v39 = vor.u32 %v3113_v30, %v2594_v29  ;;  %v3141_v48 = vld [vmem:[%s4639_s1 + $0x54c] sm:$0xf0]  ;;  %v3011_v4 = vld [vmem:[%s4639_s1 + $0x144] sm:$0xf]  ;;  %v2055_v14 = vor.u32 %v2975_v1, %v2052_v3 }
  0x2f   :  { %1390 = vmatpush.bf16.msra.mxu2 %v2279_v8  ;;  %1378 = vmatpush.bf16.msrb.mxu3 %v2119_v19  ;;  %v2723_v42 = vor.u32 %v3145_v34, %v2722_v33  ;;  %v2578_v43 = vld [vmem:[%s4639_s1 + $0x440] sm:$0xf]  ;;  %v3105_v58 = vld [vmem:[%s4639_s1 + $0x42c] sm:$0xf0]  ;;  %v2196_v5 = vld [vmem:[%s4639_s1 + $0x150] sm:$0xf0] }
  0x30   :  { %1337 = vmatpush.bf16.msrb.mxu0 %v2611_v27  ;;  %v2706_v47 = vld [vmem:[%s4639_s1 + $0x540] sm:$0xf]  ;;  %v2579_v54 = vor.u32 %v3109_v44, %v2578_v43  ;;  %v3137_v0 = vld [vmem:[%s4639_s1 + $0x52c] sm:$0xf0]  ;;  %v2971_v12 = vld [vmem:[%s4639_s1 + $0x4] sm:$0xf]  ;;  %v2199_v15 = vor.u32 %v3011_v4, %v2196_v5 }
  0x31   :  { %1351 = vmatpush.bf16.msrb.mxu1 %v2739_v28  ;;  %v2707_v55 = vor.u32 %v3141_v48, %v2706_v47  ;;  %v2562_v57 = vld [vmem:[%s4639_s1 + $0x420] sm:$0xf]  ;;  %v3101_v8 = vld [vmem:[%s4639_s1 + $0x40c] sm:$0xf0]  ;;  %v2036_v13 = vld [vmem:[%s4639_s1 + $0x10] sm:$0xf0] }
  0x32   :  { %v2690_v63 = vld [vmem:[%s4639_s1 + $0x520] sm:$0xf]  ;;  %v2563_v6 = vor.u32 %v3105_v58, %v2562_v57  ;;  %v3133_v11 = vld [vmem:[%s4639_s1 + $0x50c] sm:$0xf0]  ;;  %v3007_v16 = vld [vmem:[%s4639_s1 + $0x124] sm:$0xf] }
  0x33   :  { %1391 = vmatpush.bf16.msra.mxu2 %v2263_v20  ;;  %1379 = vmatpush.bf16.msrb.mxu3 %v2103_v31  ;;  %v2546_v7 = vld [vmem:[%s4639_s1 + $0x400] sm:$0xf]  ;;  %v2691_v10 = vor.u32 %v3137_v0, %v2690_v63  ;;  %v3063_v17 = vld [vmem:[%s4639_s1 + $0x2e4] sm:$0xf]  ;;  %v2404_v18 = vld [vmem:[%s4639_s1 + $0x2f0] sm:$0xf0]  ;;  %v2039_v31 = vor.u32 %v2971_v12, %v2036_v13 }
  0x34   :  { %1338 = vmatpush.bf16.msrb.mxu0 %v2595_v39  ;;  %v2674_v9 = vld [vmem:[%s4639_s1 + $0x500] sm:$0xf]  ;;  %v2180_v19 = vld [vmem:[%s4639_s1 + $0x130] sm:$0xf0]  ;;  %v3095_v20 = vld [vmem:[%s4639_s1 + $0x3e4] sm:$0xf]  ;;  %v2547_v22 = vor.u32 %v3101_v8, %v2546_v7  ;;  %v2407_v27 = vor.u32 %v3063_v17, %v2404_v18 }
  0x35   :  { %1352 = vmatpush.bf16.msrb.mxu1 %v2723_v42  ;;  %2832 = vmatmul.msk.bf16.vlgmr.msrb.gmra.mxu2 %vm1274_vm0, %v3618_v53  ;;  %v2532_v21 = vld [vmem:[%s4639_s1 + $0x3f0] sm:$0xf0]  ;;  %v3127_v23 = vld [vmem:[%s4639_s1 + $0x4e4] sm:$0xf]  ;;  %v2022_v25 = vld [vmem:[%s4640_s0 + $0x10] sm:$0xf]  ;;  %v2675_v26 = vor.u32 %v3133_v11, %v2674_v9 }
  0x36   :  { %v2660_v24 = vld [vmem:[%s4639_s1 + $0x4f0] sm:$0xf0]  ;;  %v2969_v28 = vld [vmem:[%s4640_s0 + $0x28] sm:$0xf0]  ;;  %v2024_v30 = vld [vmem:[%s4640_s0 + $0x2c] sm:$0xf0]  ;;  %v2535_v35 = vor.u32 %v3095_v20, %v2532_v21 }
  0x37   :  { %1392 = vmatpush.bf16.msra.mxu2 %v2247_v32  ;;  %1380 = vmatpush.bf16.msrb.mxu3 %v2087_v45  ;;  %v2966_v29 = vld [vmem:[%s4640_s0 + $0x14] sm:$0xf]  ;;  %v2183_v32 = vor.u32 %v3007_v16, %v2180_v19  ;;  %v3059_v33 = vld [vmem:[%s4639_s1 + $0x2c4] sm:$0xf]  ;;  %v2663_v36 = vor.u32 %v3127_v23, %v2660_v24  ;;  %v3715_v40 = vor.u32 %v2969_v28, %v2022_v25 }
  0x38   :  { %1339 = vmatpush.bf16.msrb.mxu0 %v2579_v54  ;;  %v2388_v34 = vld [vmem:[%s4639_s1 + $0x2d0] sm:$0xf0]  ;;  %v3003_v37 = vld [vmem:[%s4639_s1 + $0x104] sm:$0xf]  ;;  %v3717_v41 = vor.u32 %v2966_v29, %v2024_v30 }
  0x39   :  { %1353 = vmatpush.bf16.msrb.mxu1 %v2707_v55  ;;  %v2164_v38 = vld [vmem:[%s4639_s1 + $0x110] sm:$0xf0]  ;;  %v3091_v39 = vld [vmem:[%s4639_s1 + $0x3c4] sm:$0xf]  ;;  %v2391_v45 = vor.u32 %v3059_v33, %v2388_v34 }
  0x3a   :  { %v2516_v42 = vld [vmem:[%s4639_s1 + $0x3d0] sm:$0xf0]  ;;  %v3123_v43 = vld [vmem:[%s4639_s1 + $0x4c4] sm:$0xf]  ;;  %v2167_v48 = vor.u32 %v3003_v37, %v2164_v38 }
  0x3b   :  { %1393 = vmatpush.bf16.msra.mxu2 %v2231_v46  ;;  %1381 = vmatpush.bf16.msrb.mxu3 %v2071_v59  ;;  %v2644_v44 = vld [vmem:[%s4639_s1 + $0x4d0] sm:$0xf0]  ;;  %v3159_v46 = vld [vmem:[%s4639_s1 + $0x5e4] sm:$0xf]  ;;  %v2519_v51 = vor.u32 %v3091_v39, %v2516_v42 }
  0x3c   :  { %1340 = vmatpush.bf16.msrb.mxu0 %v2563_v6  ;;  %v2788_v47 = vld [vmem:[%s4639_s1 + $0x5f0] sm:$0xf0]  ;;  %v3055_v49 = vld [vmem:[%s4639_s1 + $0x2a4] sm:$0xf]  ;;  %v2647_v52 = vor.u32 %v3123_v43, %v2644_v44 }
  0x3d   :  { %1354 = vmatpush.bf16.msrb.mxu1 %v2691_v10  ;;  %v2372_v50 = vld [vmem:[%s4639_s1 + $0x2b0] sm:$0xf0]  ;;  %v3087_v54 = vld [vmem:[%s4639_s1 + $0x3a4] sm:$0xf]  ;;  %v2791_v55 = vor.u32 %v3159_v46, %v2788_v47 }
  0x3e   :  { %v2500_v57 = vld [vmem:[%s4639_s1 + $0x3b0] sm:$0xf0]  ;;  %v3119_v58 = vld [vmem:[%s4639_s1 + $0x4a4] sm:$0xf] }
  0x3f   :  { %1394 = vmatpush.bf16.msra.mxu2 %v2215_v62  ;;  %1382 = vmatpush.bf16.msrb.mxu3 %v2055_v14  ;;  %v2628_v59 = vld [vmem:[%s4639_s1 + $0x4b0] sm:$0xf0]  ;;  %v2375_v62 = vor.u32 %v3055_v49, %v2372_v50  ;;  %v3155_v63 = vld [vmem:[%s4639_s1 + $0x5c4] sm:$0xf]  ;;  %v2503_v4 = vor.u32 %v3087_v54, %v2500_v57 }
  0x40   :  { %1341 = vmatpush.bf16.msrb.mxu0 %v2547_v22  ;;  %v2772_v0 = vld [vmem:[%s4639_s1 + $0x5d0] sm:$0xf0]  ;;  %v3051_v1 = vld [vmem:[%s4639_s1 + $0x284] sm:$0xf]  ;;  %v2631_v5 = vor.u32 %v3119_v58, %v2628_v59 }
  0x41   :  { %1355 = vmatpush.bf16.msrb.mxu1 %v2675_v26  ;;  %v2356_v3 = vld [vmem:[%s4639_s1 + $0x290] sm:$0xf0]  ;;  %v3083_v6 = vld [vmem:[%s4639_s1 + $0x384] sm:$0xf]  ;;  %v2775_v7 = vor.u32 %v3155_v63, %v2772_v0  ;;  %v3066_v63 = vld [vmem:[%s4639_s1 + $0x2f4] sm:$0xf0] }
  0x42   :  { %v2484_v8 = vld [vmem:[%s4639_s1 + $0x390] sm:$0xf0]  ;;  %v3115_v9 = vld [vmem:[%s4639_s1 + $0x484] sm:$0xf]  ;;  %v2359_v11 = vor.u32 %v3051_v1, %v2356_v3 }
  0x43   :  { %1395 = vmatpush.bf16.msra.mxu2 %v2199_v15  ;;  %1383 = vmatpush.bf16.msrb.mxu3 %v2039_v31  ;;  %v2612_v10 = vld [vmem:[%s4639_s1 + $0x490] sm:$0xf0]  ;;  %v3151_v12 = vld [vmem:[%s4639_s1 + $0x5a4] sm:$0xf]  ;;  %v2487_v16 = vor.u32 %v3083_v6, %v2484_v8 }
  0x44   :  { %1404 = vmatpush.bf16.msra.mxu0 %v2407_v27  ;;  %1356 = vmatmul.bf16.vlgmr.msrb.gmra.mxu1 %v3717_v41  ;;  %v2756_v13 = vld [vmem:[%s4639_s1 + $0x5b0] sm:$0xf0]  ;;  %v3047_v14 = vld [vmem:[%s4639_s1 + $0x264] sm:$0xf]  ;;  %v2615_v17 = vor.u32 %v3115_v9, %v2612_v10  ;;  %v2154_v9 = vld [vmem:[%s4639_s1 + $0xe8] sm:$0xf] }
  0x45   :  { %1418 = vmatpush.bf16.msra.mxu1 %v2535_v35  ;;  %1342 = vmatmul.bf16.vlgmr.msrb.gmra.mxu0 %v3715_v40  ;;  %v2340_v15 = vld [vmem:[%s4639_s1 + $0x270] sm:$0xf0]  ;;  %v3079_v18 = vld [vmem:[%s4639_s1 + $0x364] sm:$0xf]  ;;  %v2759_v19 = vor.u32 %v3151_v12, %v2756_v13  ;;  %v3002_v10 = vld [vmem:[%s4639_s1 + $0xf4] sm:$0xf0] }
  0x46   :  { %1384 = vmatmul.bf16.vlgmr.msrb.gmra.mxu3 %v3497_v60  ;;  %v2468_v20 = vld [vmem:[%s4639_s1 + $0x370] sm:$0xf0]  ;;  %v3111_v21 = vld [vmem:[%s4639_s1 + $0x464] sm:$0xf]  ;;  %v2343_v23 = vor.u32 %v3047_v14, %v2340_v15 }
  0x47   :  { %1396 = vmatpush.bf16.msra.mxu2 %v2183_v32  ;;  %1432 = vmatpush.bf16.msra.mxu3 %v2663_v36  ;;  %v2596_v22 = vld [vmem:[%s4639_s1 + $0x470] sm:$0xf0]  ;;  %v3147_v24 = vld [vmem:[%s4639_s1 + $0x584] sm:$0xf]  ;;  %v2471_v28 = vor.u32 %v3079_v18, %v2468_v20  ;;  %v2394_v18 = vld [vmem:[%s4639_s1 + $0x2c8] sm:$0xf]  ;;  %v2155_v20 = vor.u32 %v3002_v10, %v2154_v9 }
  0x48   :  { %1405 = vmatpush.bf16.msra.mxu0 %v2391_v45  ;;  %v2740_v25 = vld [vmem:[%s4639_s1 + $0x590] sm:$0xf0]  ;;  %v3043_v26 = vld [vmem:[%s4639_s1 + $0x244] sm:$0xf]  ;;  %v2599_v29 = vor.u32 %v3111_v21, %v2596_v22  ;;  %v3086_v9 = vld [vmem:[%s4639_s1 + $0x394] sm:$0xf0] }
  0x49   :  { %1419 = vmatpush.bf16.msra.mxu1 %v2519_v51  ;;  %v2324_v27 = vld [vmem:[%s4639_s1 + $0x250] sm:$0xf0]  ;;  %v3075_v30 = vld [vmem:[%s4639_s1 + $0x344] sm:$0xf]  ;;  %v2743_v31 = vor.u32 %v3147_v24, %v2740_v25  ;;  %v2998_v24 = vld [vmem:[%s4639_s1 + $0xd4] sm:$0xf0] }
  0x4a   :  { %v2452_v32 = vld [vmem:[%s4639_s1 + $0x350] sm:$0xf0]  ;;  %v3107_v33 = vld [vmem:[%s4639_s1 + $0x444] sm:$0xf]  ;;  %v2327_v35 = vor.u32 %v3043_v26, %v2324_v27  ;;  %v2282_v25 = vld [vmem:[%s4639_s1 + $0x1e8] sm:$0xf] }
  0x4b   :  { %1397 = vmatpush.bf16.msra.mxu2 %v2167_v48  ;;  %1433 = vmatpush.bf16.msra.mxu3 %v2647_v52  ;;  %v2580_v34 = vld [vmem:[%s4639_s1 + $0x450] sm:$0xf0]  ;;  %v3143_v36 = vld [vmem:[%s4639_s1 + $0x564] sm:$0xf]  ;;  %v2455_v42 = vor.u32 %v3075_v30, %v2452_v32  ;;  %v3034_v26 = vld [vmem:[%s4639_s1 + $0x1f4] sm:$0xf0] }
  0x4c   :  { %1406 = vmatpush.bf16.msra.mxu0 %v2375_v62  ;;  %v2724_v37 = vld [vmem:[%s4639_s1 + $0x570] sm:$0xf0]  ;;  %v3039_v38 = vld [vmem:[%s4639_s1 + $0x224] sm:$0xf]  ;;  %v2583_v43 = vor.u32 %v3107_v33, %v2580_v34  ;;  %v2410_v62 = vld [vmem:[%s4639_s1 + $0x2e8] sm:$0xf] }
  0x4d   :  { %1420 = vmatpush.bf16.msra.mxu1 %v2503_v4  ;;  %v2308_v39 = vld [vmem:[%s4639_s1 + $0x230] sm:$0xf0]  ;;  %v3071_v44 = vld [vmem:[%s4639_s1 + $0x324] sm:$0xf]  ;;  %v2727_v45 = vor.u32 %v3143_v36, %v2724_v37  ;;  %v2538_v27 = vld [vmem:[%s4639_s1 + $0x3e8] sm:$0xf] }
  0x4e   :  { %1398 = vmatmul.bf16.vlgmr.msra.gmra.mxu2 %v3510_v2  ;;  %v2436_v46 = vld [vmem:[%s4639_s1 + $0x330] sm:$0xf0]  ;;  %v3103_v47 = vld [vmem:[%s4639_s1 + $0x424] sm:$0xf]  ;;  %v2311_v49 = vor.u32 %v3039_v38, %v2308_v39  ;;  %v2378_v32 = vld [vmem:[%s4639_s1 + $0x2a8] sm:$0xf] }
  0x4f   :  { %1446 = vmatpush.bf16.msrb.mxu2 %v2791_v55  ;;  %1434 = vmatpush.bf16.msra.mxu3 %v2631_v5  ;;  %v2564_v48 = vld [vmem:[%s4639_s1 + $0x430] sm:$0xf0]  ;;  %v3139_v50 = vld [vmem:[%s4639_s1 + $0x544] sm:$0xf]  ;;  %v2439_v57 = vor.u32 %v3071_v44, %v2436_v46  ;;  %v3058_v33 = vld [vmem:[%s4639_s1 + $0x2b4] sm:$0xf0] }
  0x50   :  { %1407 = vmatpush.bf16.msra.mxu0 %v2359_v11  ;;  %v2708_v51 = vld [vmem:[%s4639_s1 + $0x550] sm:$0xf0]  ;;  %v3035_v52 = vld [vmem:[%s4639_s1 + $0x204] sm:$0xf]  ;;  %v2567_v58 = vor.u32 %v3103_v47, %v2564_v48  ;;  %v2411_v11 = vor.u32 %v3066_v63, %v2410_v62  ;;  %v2122_v36 = vld [vmem:[%s4639_s1 + $0xa8] sm:$0xf] }
  0x51   :  { %1421 = vmatpush.bf16.msra.mxu1 %v2487_v16  ;;  %v2292_v54 = vld [vmem:[%s4639_s1 + $0x210] sm:$0xf0]  ;;  %v3067_v55 = vld [vmem:[%s4639_s1 + $0x304] sm:$0xf]  ;;  %v2711_v0 = vor.u32 %v3139_v50, %v2708_v51  ;;  %v2994_v38 = vld [vmem:[%s4639_s1 + $0xb4] sm:$0xf0] }
  0x52   :  { %v2420_v59 = vld [vmem:[%s4639_s1 + $0x310] sm:$0xf0]  ;;  %v3099_v1 = vld [vmem:[%s4639_s1 + $0x404] sm:$0xf]  ;;  %v2295_v5 = vor.u32 %v3035_v52, %v2292_v54  ;;  %v2266_v39 = vld [vmem:[%s4639_s1 + $0x1c8] sm:$0xf]  ;;  %v2123_v48 = vor.u32 %v2994_v38, %v2122_v36 }
  0x53   :  { %1447 = vmatpush.bf16.msrb.mxu2 %v2775_v7  ;;  %1435 = vmatpush.bf16.msra.mxu3 %v2615_v17  ;;  %v2548_v3 = vld [vmem:[%s4639_s1 + $0x410] sm:$0xf0]  ;;  %v3135_v4 = vld [vmem:[%s4639_s1 + $0x524] sm:$0xf]  ;;  %v2423_v12 = vor.u32 %v3067_v55, %v2420_v59  ;;  %v3094_v44 = vld [vmem:[%s4639_s1 + $0x3d4] sm:$0xf0] }
  0x54   :  { %1408 = vmatpush.bf16.msra.mxu0 %v2343_v23  ;;  %v2692_v6 = vld [vmem:[%s4639_s1 + $0x530] sm:$0xf0]  ;;  %v3167_v7 = vld [vmem:[%s4639_s1 + $0x624] sm:$0xf]  ;;  %v2551_v13 = vor.u32 %v3099_v1, %v2548_v3  ;;  %v2138_v23 = vld [vmem:[%s4639_s1 + $0xc8] sm:$0xf] }
  0x55   :  { %1422 = vmatpush.bf16.msra.mxu1 %v2471_v28  ;;  %v2820_v8 = vld [vmem:[%s4639_s1 + $0x630] sm:$0xf0]  ;;  %v3131_v14 = vld [vmem:[%s4639_s1 + $0x504] sm:$0xf]  ;;  %v2695_v15 = vor.u32 %v3135_v4, %v2692_v6  ;;  %v3098_v28 = vld [vmem:[%s4639_s1 + $0x3f4] sm:$0xf0]  ;;  %v2139_v34 = vor.u32 %v2998_v24, %v2138_v23 }
  0x56   :  { %v2823_v16 = vor.u32 %v3167_v7, %v2820_v8  ;;  %v2676_v17 = vld [vmem:[%s4639_s1 + $0x510] sm:$0xf0]  ;;  %v3163_v21 = vld [vmem:[%s4639_s1 + $0x604] sm:$0xf]  ;;  %v2539_v37 = vor.u32 %v3098_v28, %v2538_v27  ;;  %v2362_v46 = vld [vmem:[%s4639_s1 + $0x288] sm:$0xf] }
  0x57   :  { %1448 = vmatpush.bf16.msrb.mxu2 %v2759_v19  ;;  %1436 = vmatpush.bf16.msra.mxu3 %v2599_v29  ;;  %v3062_v19 = vld [vmem:[%s4639_s1 + $0x2d4] sm:$0xf0]  ;;  %v2804_v22 = vld [vmem:[%s4639_s1 + $0x610] sm:$0xf0]  ;;  %v2679_v30 = vor.u32 %v3131_v14, %v2676_v17  ;;  %v2106_v50 = vld [vmem:[%s4639_s1 + $0x88] sm:$0xf] }
  0x58   :  { %1409 = vmatpush.bf16.msra.mxu0 %v2327_v35  ;;  %v2395_v29 = vor.u32 %v3062_v19, %v2394_v18  ;;  %v2283_v35 = vor.u32 %v3034_v26, %v2282_v25  ;;  %v3054_v47 = vld [vmem:[%s4639_s1 + $0x294] sm:$0xf0]  ;;  %v2250_v54 = vld [vmem:[%s4639_s1 + $0x1a8] sm:$0xf] }
  0x59   :  { %1423 = vmatpush.bf16.msra.mxu1 %v2455_v42  ;;  %v3030_v42 = vld [vmem:[%s4639_s1 + $0x1d4] sm:$0xf0]  ;;  %v2363_v59 = vor.u32 %v3054_v47, %v2362_v46  ;;  %v2346_v62 = vld [vmem:[%s4639_s1 + $0x268] sm:$0xf] }
  0x5a   :  { %v2990_v52 = vld [vmem:[%s4639_s1 + $0x94] sm:$0xf0]  ;;  %v2090_v3 = vld [vmem:[%s4639_s1 + $0x68] sm:$0xf] }
  0x5b   :  { %1449 = vmatpush.bf16.msrb.mxu2 %v2743_v31  ;;  %1437 = vmatpush.bf16.msra.mxu3 %v2583_v43  ;;  %v2807_v31 = vor.u32 %v3163_v21, %v2804_v22  ;;  %v2522_v43 = vld [vmem:[%s4639_s1 + $0x3c8] sm:$0xf]  ;;  %v3026_v55 = vld [vmem:[%s4639_s1 + $0x1b4] sm:$0xf0] }
  0x5c   :  { %1410 = vmatpush.bf16.msra.mxu0 %v2311_v49  ;;  %v2267_v49 = vor.u32 %v3030_v42, %v2266_v39  ;;  %v2523_v51 = vor.u32 %v3094_v44, %v2522_v43  ;;  %v3050_v63 = vld [vmem:[%s4639_s1 + $0x274] sm:$0xf0]  ;;  %v2251_v1 = vor.u32 %v3026_v55, %v2250_v54  ;;  %v2234_v6 = vld [vmem:[%s4639_s1 + $0x188] sm:$0xf] }
  0x5d   :  { %1424 = vmatpush.bf16.msra.mxu1 %v2439_v57  ;;  %v2506_v57 = vld [vmem:[%s4639_s1 + $0x3a8] sm:$0xf]  ;;  %v3022_v7 = vld [vmem:[%s4639_s1 + $0x194] sm:$0xf0]  ;;  %v2347_v10 = vor.u32 %v3050_v63, %v2346_v62 }
  0x5e   :  { %v2490_v8 = vld [vmem:[%s4639_s1 + $0x388] sm:$0xf]  ;;  %v2235_v14 = vor.u32 %v3022_v7, %v2234_v6  ;;  %v2982_v17 = vld [vmem:[%s4639_s1 + $0x54] sm:$0xf0]  ;;  %v2284_v6 = vld [vmem:[%s4639_s1 + $0x1f8] sm:$0xf0] }
  0x5f   :  { %1450 = vmatpush.bf16.msrb.mxu2 %v2727_v45  ;;  %1438 = vmatpush.bf16.msra.mxu3 %v2567_v58  ;;  %v2379_v45 = vor.u32 %v3058_v33, %v2378_v32  ;;  %v3090_v58 = vld [vmem:[%s4639_s1 + $0x3b4] sm:$0xf0]  ;;  %v2218_v18 = vld [vmem:[%s4639_s1 + $0x168] sm:$0xf] }
  0x60   :  { %1411 = vmatpush.bf16.msra.mxu0 %v2295_v5  ;;  %v2507_v4 = vor.u32 %v3090_v58, %v2506_v57  ;;  %v2986_v5 = vld [vmem:[%s4639_s1 + $0x74] sm:$0xf0]  ;;  %v2314_v23 = vld [vmem:[%s4639_s1 + $0x228] sm:$0xf] }
  0x61   :  { %1425 = vmatpush.bf16.msra.mxu1 %v2423_v12  ;;  %v3046_v12 = vld [vmem:[%s4639_s1 + $0x254] sm:$0xf0]  ;;  %v2058_v27 = vld [vmem:[%s4639_s1 + $0x28] sm:$0xf] }
  0x62   :  { %v3018_v19 = vld [vmem:[%s4639_s1 + $0x174] sm:$0xf0]  ;;  %v2458_v32 = vld [vmem:[%s4639_s1 + $0x348] sm:$0xf] }
  0x63   :  { %1451 = vmatpush.bf16.msrb.mxu2 %v2711_v0  ;;  %1439 = vmatpush.bf16.msra.mxu3 %v2551_v13  ;;  %v2107_v0 = vor.u32 %v2990_v52, %v2106_v50  ;;  %v2091_v13 = vor.u32 %v2986_v5, %v2090_v3  ;;  %v3082_v21 = vld [vmem:[%s4639_s1 + $0x374] sm:$0xf0]  ;;  %v2219_v26 = vor.u32 %v3018_v19, %v2218_v18  ;;  %v2298_v36 = vld [vmem:[%s4639_s1 + $0x208] sm:$0xf]  ;;  %v3032_v5 = vld [vmem:[%s4639_s1 + $0x1ec] sm:$0xf] }
  0x64   :  { %1502 = vmatpush.bf16.msrb.mxu0 %v2411_v11  ;;  %1426 = vmatmul.bf16.vlgmr.msra.gmra.mxu1 %v3499_v61  ;;  %v2330_v11 = vld [vmem:[%s4639_s1 + $0x248] sm:$0xf]  ;;  %v3042_v24 = vld [vmem:[%s4639_s1 + $0x234] sm:$0xf0]  ;;  %v3028_v18 = vld [vmem:[%s4639_s1 + $0x1cc] sm:$0xf] }
  0x65   :  { %1474 = vmatpush.bf16.msrb.mxu1 %v2155_v20  ;;  %1412 = vmatmul.bf16.vlgmr.msra.gmra.mxu0 %v3486_v56  ;;  %v2474_v20 = vld [vmem:[%s4639_s1 + $0x368] sm:$0xf]  ;;  %v2331_v22 = vor.u32 %v3046_v12, %v2330_v11  ;;  %v3078_v33 = vld [vmem:[%s4639_s1 + $0x354] sm:$0xf0]  ;;  %v3000_v11 = vld [vmem:[%s4639_s1 + $0xec] sm:$0xf] }
  0x66   :  { %1440 = vmatmul.bf16.vlgmr.msra.gmra.mxu3 %v3715_v40  ;;  %v2475_v28 = vor.u32 %v3082_v21, %v2474_v20  ;;  %v2974_v42 = vld [vmem:[%s4639_s1 + $0x14] sm:$0xf0]  ;;  %v2826_v43 = vld [vmem:[%s4639_s1 + $0x628] sm:$0xf]  ;;  %v2156_v12 = vld [vmem:[%s4639_s1 + $0xf8] sm:$0xf0] }
  0x67   :  { %1452 = vmatpush.bf16.msrb.mxu2 %v2695_v15  ;;  %1466 = vmatpush.bf16.msrb.mxu3 %v2823_v16  ;;  %v2074_v15 = vld [vmem:[%s4639_s1 + $0x48] sm:$0xf]  ;;  %v2491_v16 = vor.u32 %v3086_v9, %v2490_v8  ;;  %v3170_v44 = vld [vmem:[%s4639_s1 + $0x634] sm:$0xf0]  ;;  %v2268_v19 = vld [vmem:[%s4639_s1 + $0x1d8] sm:$0xf0]  ;;  %v2159_v21 = vor.u32 %v3000_v11, %v2156_v12 }
  0x68   :  { %1503 = vmatpush.bf16.msrb.mxu0 %v2395_v29  ;;  %v2075_v25 = vor.u32 %v2982_v17, %v2074_v15  ;;  %v2978_v29 = vld [vmem:[%s4639_s1 + $0x34] sm:$0xf0]  ;;  %v2186_v46 = vld [vmem:[%s4639_s1 + $0x128] sm:$0xf]  ;;  %v2827_v54 = vor.u32 %v3170_v44, %v2826_v43  ;;  %v2287_v15 = vor.u32 %v3032_v5, %v2284_v6  ;;  %v3020_v44 = vld [vmem:[%s4639_s1 + $0x18c] sm:$0xf] }
  0x69   :  { %1475 = vmatpush.bf16.msrb.mxu1 %v2139_v34  ;;  %v2315_v34 = vor.u32 %v3042_v24, %v2314_v23  ;;  %v2059_v38 = vor.u32 %v2978_v29, %v2058_v27  ;;  %v3010_v47 = vld [vmem:[%s4639_s1 + $0x134] sm:$0xf0]  ;;  %v2666_v50 = vld [vmem:[%s4639_s1 + $0x4e8] sm:$0xf]  ;;  %v2140_v27 = vld [vmem:[%s4639_s1 + $0xd8] sm:$0xf0] }
  0x6a   :  { %v2170_v55 = vld [vmem:[%s4639_s1 + $0x108] sm:$0xf]  ;;  %v3006_v57 = vld [vmem:[%s4639_s1 + $0x114] sm:$0xf0]  ;;  %v2984_v5 = vld [vmem:[%s4639_s1 + $0x6c] sm:$0xf] }
  0x6b   :  { %1453 = vmatpush.bf16.msrb.mxu2 %v2679_v30  ;;  %1467 = vmatpush.bf16.msrb.mxu3 %v2807_v31  ;;  %v2202_v30 = vld [vmem:[%s4639_s1 + $0x148] sm:$0xf]  ;;  %v3014_v31 = vld [vmem:[%s4639_s1 + $0x154] sm:$0xf0]  ;;  %v2092_v6 = vld [vmem:[%s4639_s1 + $0x78] sm:$0xf0] }
  0x6c   :  { %1504 = vmatpush.bf16.msrb.mxu0 %v2379_v45  ;;  %v2203_v39 = vor.u32 %v3014_v31, %v2202_v30  ;;  %v2459_v45 = vor.u32 %v3078_v33, %v2458_v32  ;;  %v2426_v62 = vld [vmem:[%s4639_s1 + $0x308] sm:$0xf]  ;;  %v3126_v8 = vld [vmem:[%s4639_s1 + $0x4d4] sm:$0xf0]  ;;  %v3024_v30 = vld [vmem:[%s4639_s1 + $0x1ac] sm:$0xf]  ;;  %v2095_v12 = vor.u32 %v2984_v5, %v2092_v6 }
  0x6d   :  { %1476 = vmatpush.bf16.msrb.mxu1 %v2123_v48  ;;  %v2442_v48 = vld [vmem:[%s4639_s1 + $0x328] sm:$0xf]  ;;  %v3122_v23 = vld [vmem:[%s4639_s1 + $0x4b4] sm:$0xf0]  ;;  %v2252_v31 = vld [vmem:[%s4639_s1 + $0x1b8] sm:$0xf0] }
  0x6e   :  { %1454 = vmatmul.bf16.vlgmr.msrb.gmra.mxu2 %v3717_v41  ;;  %v2810_v63 = vld [vmem:[%s4639_s1 + $0x608] sm:$0xf]  ;;  %v2380_v5 = vld [vmem:[%s4639_s1 + $0x2b8] sm:$0xf0]  ;;  %v3092_v6 = vld [vmem:[%s4639_s1 + $0x3cc] sm:$0xf] }
  0x6f   :  { %1488 = vmatpush.bf16.msra.mxu3 %v2283_v35  ;;  %1516 = vmatpush.bf16.msra.mxu2 %v2539_v37  ;;  %v2042_v35 = vld [vmem:[%s4639_s1 + $0x8] sm:$0xf]  ;;  %v3038_v37 = vld [vmem:[%s4639_s1 + $0x214] sm:$0xf0] }
  0x70   :  { %1505 = vmatpush.bf16.msrb.mxu0 %v2363_v59  ;;  %v2299_v52 = vor.u32 %v3038_v37, %v2298_v36  ;;  %v2043_v58 = vor.u32 %v2974_v42, %v2042_v35  ;;  %v2187_v59 = vor.u32 %v3010_v47, %v2186_v46  ;;  %v2650_v7 = vld [vmem:[%s4639_s1 + $0x4c8] sm:$0xf]  ;;  %v3118_v35 = vld [vmem:[%s4639_s1 + $0x494] sm:$0xf0]  ;;  %v2255_v42 = vor.u32 %v3024_v30, %v2252_v31  ;;  %v2060_v30 = vld [vmem:[%s4639_s1 + $0x38] sm:$0xf0] }
  0x71   :  { %1477 = vmatpush.bf16.msrb.mxu1 %v2107_v0  ;;  %v3166_v0 = vld [vmem:[%s4639_s1 + $0x614] sm:$0xf0]  ;;  %v2794_v9 = vld [vmem:[%s4639_s1 + $0x5e8] sm:$0xf]  ;;  %v2651_v17 = vor.u32 %v3126_v8, %v2650_v7  ;;  %v3064_v31 = vld [vmem:[%s4639_s1 + $0x2ec] sm:$0xf] }
  0x72   :  { %v2778_v24 = vld [vmem:[%s4639_s1 + $0x5c8] sm:$0xf]  ;;  %v3154_v37 = vld [vmem:[%s4639_s1 + $0x5b4] sm:$0xf0] }
  0x73   :  { %1489 = vmatpush.bf16.msra.mxu3 %v2267_v49  ;;  %1517 = vmatpush.bf16.msra.mxu2 %v2523_v51  ;;  %v3074_v49 = vld [vmem:[%s4639_s1 + $0x334] sm:$0xf0]  ;;  %v2762_v36 = vld [vmem:[%s4639_s1 + $0x5a8] sm:$0xf] }
  0x74   :  { %1506 = vmatpush.bf16.msrb.mxu0 %v2347_v10  ;;  %v3130_v51 = vld [vmem:[%s4639_s1 + $0x4f4] sm:$0xf0]  ;;  %v2763_v46 = vor.u32 %v3154_v37, %v2762_v36  ;;  %v3004_v36 = vld [vmem:[%s4639_s1 + $0x10c] sm:$0xf]  ;;  %v2172_v37 = vld [vmem:[%s4639_s1 + $0x118] sm:$0xf0] }
  0x75   :  { %1478 = vmatpush.bf16.msrb.mxu1 %v2091_v13  ;;  %v2667_v3 = vor.u32 %v3130_v51, %v2666_v50  ;;  %v3162_v10 = vld [vmem:[%s4639_s1 + $0x5f4] sm:$0xf0]  ;;  %v2811_v13 = vor.u32 %v3166_v0, %v2810_v63  ;;  %v2746_v50 = vld [vmem:[%s4639_s1 + $0x588] sm:$0xf] }
  0x76   :  { %2833 = vmatmul.msk.bf16.vlgmr.msrb.gmra.mxu3 %vm1274_vm0, %v3618_v53  ;;  %v2795_v20 = vor.u32 %v3162_v10, %v2794_v9  ;;  %v3150_v51 = vld [vmem:[%s4639_s1 + $0x594] sm:$0xf0]  ;;  %v2586_v0 = vld [vmem:[%s4639_s1 + $0x448] sm:$0xf]  ;;  %v3012_v9 = vld [vmem:[%s4639_s1 + $0x14c] sm:$0xf] }
  0x77   :  { %1490 = vmatpush.bf16.msra.mxu3 %v2251_v1  ;;  %1518 = vmatpush.bf16.msra.mxu2 %v2507_v4  ;;  %v2443_v1 = vor.u32 %v3074_v49, %v2442_v48  ;;  %v3070_v4 = vld [vmem:[%s4639_s1 + $0x314] sm:$0xf0]  ;;  %v2602_v48 = vld [vmem:[%s4639_s1 + $0x468] sm:$0xf]  ;;  %v2204_v10 = vld [vmem:[%s4639_s1 + $0x158] sm:$0xf0] }
  0x78   :  { %1507 = vmatpush.bf16.msrb.mxu0 %v2331_v22  ;;  %v2634_v22 = vld [vmem:[%s4639_s1 + $0x4a8] sm:$0xf]  ;;  %v3114_v49 = vld [vmem:[%s4639_s1 + $0x474] sm:$0xf0] }
  0x79   :  { %1479 = vmatpush.bf16.msrb.mxu1 %v2075_v25  ;;  %v3158_v25 = vld [vmem:[%s4639_s1 + $0x5d4] sm:$0xf0]  ;;  %v2635_v29 = vor.u32 %v3122_v23, %v2634_v22  ;;  %v2188_v22 = vld [vmem:[%s4639_s1 + $0x138] sm:$0xf0] }
  0x7a   :  { %v2779_v32 = vor.u32 %v3158_v25, %v2778_v24  ;;  %v2554_v25 = vld [vmem:[%s4639_s1 + $0x408] sm:$0xf] }
  0x7b   :  { %1491 = vmatpush.bf16.msra.mxu3 %v2235_v14  ;;  %1519 = vmatpush.bf16.msra.mxu2 %v2491_v16  ;;  %v2171_v14 = vor.u32 %v3006_v57, %v2170_v55  ;;  %v2427_v16 = vor.u32 %v3070_v4, %v2426_v62  ;;  %v2603_v57 = vor.u32 %v3114_v49, %v2602_v48  ;;  %v3146_v4 = vld [vmem:[%s4639_s1 + $0x574] sm:$0xf0]  ;;  %v3060_v48 = vld [vmem:[%s4639_s1 + $0x2cc] sm:$0xf]  ;;  %v2396_v49 = vld [vmem:[%s4639_s1 + $0x2d8] sm:$0xf0] }
  0x7c   :  { %1508 = vmatpush.bf16.msrb.mxu0 %v2315_v34  ;;  %v2618_v34 = vld [vmem:[%s4639_s1 + $0x488] sm:$0xf]  ;;  %v2747_v62 = vor.u32 %v3150_v51, %v2746_v50  ;;  %v3096_v50 = vld [vmem:[%s4639_s1 + $0x3ec] sm:$0xf]  ;;  %v2540_v51 = vld [vmem:[%s4639_s1 + $0x3f8] sm:$0xf0] }
  0x7d   :  { %1480 = vmatpush.bf16.msrb.mxu1 %v2059_v38  ;;  %v2992_v38 = vld [vmem:[%s4639_s1 + $0xac] sm:$0xf]  ;;  %v2619_v43 = vor.u32 %v3118_v35, %v2618_v34  ;;  %v2682_v35 = vld [vmem:[%s4639_s1 + $0x508] sm:$0xf] }
  0x7f   :  { %1492 = vmatpush.bf16.msra.mxu3 %v2219_v26  ;;  %1520 = vmatpush.bf16.msra.mxu2 %v2475_v28  ;;  %v2996_v26 = vld [vmem:[%s4639_s1 + $0xcc] sm:$0xf]  ;;  %v2271_v28 = vor.u32 %v3028_v18, %v2268_v19  ;;  %v2076_v18 = vld [vmem:[%s4639_s1 + $0x58] sm:$0xf0]  ;;  %v2207_v19 = vor.u32 %v3012_v9, %v2204_v10 }
  0x80   :  { %1509 = vmatpush.bf16.msrb.mxu0 %v2299_v52  ;;  %v2143_v33 = vor.u32 %v2996_v26, %v2140_v27  ;;  %v2988_v52 = vld [vmem:[%s4639_s1 + $0x8c] sm:$0xf]  ;;  %v3102_v26 = vld [vmem:[%s4639_s1 + $0x414] sm:$0xf0]  ;;  %v2698_v27 = vld [vmem:[%s4639_s1 + $0x528] sm:$0xf] }
  0x81   :  { %1481 = vmatpush.bf16.msrb.mxu1 %v2043_v58  ;;  %v3016_v58 = vld [vmem:[%s4639_s1 + $0x16c] sm:$0xf]  ;;  %v2555_v34 = vor.u32 %v3102_v26, %v2554_v25  ;;  %v2652_v9 = vld [vmem:[%s4639_s1 + $0x4d8] sm:$0xf0] }
  0x82   :  { %v3048_v26 = vld [vmem:[%s4639_s1 + $0x26c] sm:$0xf] }
  0x83   :  { %1493 = vmatpush.bf16.msra.mxu3 %v2203_v39  ;;  %1521 = vmatpush.bf16.msra.mxu2 %v2459_v45  ;;  %v2124_v39 = vld [vmem:[%s4639_s1 + $0xb8] sm:$0xf0] }
  0x84   :  { %1564 = vmatpush.bf16.msra.mxu0 %v2827_v54  ;;  %1482 = vmatmul.bf16.vlgmr.msrb.gmra.mxu1 %v3497_v60  ;;  %v2236_v45 = vld [vmem:[%s4639_s1 + $0x198] sm:$0xf0]  ;;  %v2127_v47 = vor.u32 %v2992_v38, %v2124_v39 }
  0x85   :  { %1530 = vmatpush.bf16.msra.mxu1 %v2667_v3  ;;  %1510 = vmatmul.bf16.vlgmr.msrb.gmra.mxu0 %v3486_v56  ;;  %v2108_v54 = vld [vmem:[%s4639_s1 + $0x98] sm:$0xf0]  ;;  %v2239_v55 = vor.u32 %v3020_v44, %v2236_v45  ;;  %v2730_v3 = vld [vmem:[%s4639_s1 + $0x568] sm:$0xf] }
  0x86   :  { %v2111_v63 = vor.u32 %v2988_v52, %v2108_v54  ;;  %v2731_v11 = vor.u32 %v3146_v4, %v2730_v3  ;;  %v2796_v44 = vld [vmem:[%s4639_s1 + $0x5f8] sm:$0xf0]  ;;  %v2175_v52 = vor.u32 %v3004_v36, %v2172_v37  ;;  %v3128_v54 = vld [vmem:[%s4639_s1 + $0x4ec] sm:$0xf] }
  0x87   :  { %1494 = vmatpush.bf16.msra.mxu3 %v2187_v59  ;;  %1522 = vmatpush.bf16.msra.mxu2 %v2443_v1  ;;  %v2220_v59 = vld [vmem:[%s4639_s1 + $0x178] sm:$0xf0]  ;;  %v3110_v1 = vld [vmem:[%s4639_s1 + $0x454] sm:$0xf0]  ;;  %v3056_v3 = vld [vmem:[%s4639_s1 + $0x2ac] sm:$0xf] }
  0x88   :  { %1565 = vmatpush.bf16.msra.mxu0 %v2811_v13  ;;  %v2223_v7 = vor.u32 %v3016_v58, %v2220_v59  ;;  %v2587_v8 = vor.u32 %v3110_v1, %v2586_v0  ;;  %v2570_v13 = vld [vmem:[%s4639_s1 + $0x428] sm:$0xf]  ;;  %v2399_v0 = vor.u32 %v3060_v48, %v2396_v49  ;;  %v2543_v1 = vor.u32 %v3096_v50, %v2540_v51  ;;  %v3044_v37 = vld [vmem:[%s4639_s1 + $0x24c] sm:$0xf]  ;;  %v2716_v48 = vld [vmem:[%s4639_s1 + $0x558] sm:$0xf0] }
  0x89   :  { %1531 = vmatpush.bf16.msra.mxu1 %v2651_v17  ;;  %v2980_v17 = vld [vmem:[%s4639_s1 + $0x4c] sm:$0xf] }
  0x8a   :  { %v2079_v24 = vor.u32 %v2980_v17, %v2076_v18  ;;  %v2364_v17 = vld [vmem:[%s4639_s1 + $0x298] sm:$0xf0]  ;;  %v3088_v18 = vld [vmem:[%s4639_s1 + $0x3ac] sm:$0xf] }
  0x8b   :  { %1495 = vmatpush.bf16.msra.mxu3 %v2171_v14  ;;  %1523 = vmatpush.bf16.msra.mxu2 %v2427_v16  ;;  %v3106_v14 = vld [vmem:[%s4639_s1 + $0x434] sm:$0xf0]  ;;  %v3040_v51 = vld [vmem:[%s4639_s1 + $0x22c] sm:$0xf] }
  0x8c   :  { %1586 = vmatpush.bf16.msrb.mxu0 %v2287_v15  ;;  %v2714_v15 = vld [vmem:[%s4639_s1 + $0x548] sm:$0xf]  ;;  %v3142_v16 = vld [vmem:[%s4639_s1 + $0x554] sm:$0xf0] }
  0x8d   :  { %1532 = vmatpush.bf16.msra.mxu1 %v2635_v29  ;;  %v2715_v23 = vor.u32 %v3142_v16, %v2714_v15  ;;  %v2976_v29 = vld [vmem:[%s4639_s1 + $0x2c] sm:$0xf] }
  0x8e   :  { %1496 = vmatmul.bf16.vlgmr.msra.gmra.mxu3 %v3510_v2  ;;  %1524 = vmatmul.bf16.vlgmr.msra.gmra.mxu2 %v3499_v61  ;;  %v2063_v39 = vor.u32 %v2976_v29, %v2060_v30  ;;  %v3052_v15 = vld [vmem:[%s4639_s1 + $0x28c] sm:$0xf]  ;;  %v2492_v29 = vld [vmem:[%s4639_s1 + $0x398] sm:$0xf0] }
  0x8f   :  { %1544 = vmatpush.bf16.msrb.mxu3 %v2795_v20  ;;  %1572 = vmatpush.bf16.msrb.mxu2 %v2159_v21  ;;  %v2571_v20 = vor.u32 %v3106_v14, %v2570_v13  ;;  %v3008_v21 = vld [vmem:[%s4639_s1 + $0x12c] sm:$0xf]  ;;  %v2383_v13 = vor.u32 %v3056_v3, %v2380_v5  ;;  %v2700_v3 = vld [vmem:[%s4639_s1 + $0x538] sm:$0xf0] }
  0x90   :  { %1587 = vmatpush.bf16.msrb.mxu0 %v2271_v28  ;;  %v3138_v28 = vld [vmem:[%s4639_s1 + $0x534] sm:$0xf0]  ;;  %v3116_v30 = vld [vmem:[%s4639_s1 + $0x48c] sm:$0xf] }
  0x91   :  { %1533 = vmatpush.bf16.msra.mxu1 %v2619_v43  ;;  %v2699_v38 = vor.u32 %v3138_v28, %v2698_v27  ;;  %v3160_v43 = vld [vmem:[%s4639_s1 + $0x5ec] sm:$0xf] }
  0x92   :  { %v3084_v28 = vld [vmem:[%s4639_s1 + $0x38c] sm:$0xf] }
  0x93   :  { %1545 = vmatpush.bf16.msrb.mxu3 %v2779_v32  ;;  %1573 = vmatpush.bf16.msrb.mxu2 %v2143_v33  ;;  %v2412_v32 = vld [vmem:[%s4639_s1 + $0x2f8] sm:$0xf0]  ;;  %v2191_v33 = vor.u32 %v3008_v21, %v2188_v22  ;;  %v2495_v36 = vor.u32 %v3084_v28, %v2492_v29 }
  0x94   :  { %1588 = vmatpush.bf16.msrb.mxu0 %v2255_v42  ;;  %v3134_v42 = vld [vmem:[%s4639_s1 + $0x514] sm:$0xf0]  ;;  %v2415_v45 = vor.u32 %v3064_v31, %v2412_v32  ;;  %v2636_v21 = vld [vmem:[%s4639_s1 + $0x4b8] sm:$0xf0] }
  0x95   :  { %1534 = vmatpush.bf16.msra.mxu1 %v2603_v57  ;;  %2834 = vmatmul.msk.bf16.vlgmr.msra.gmra.mxu0 %vm1274_vm0, %v3618_v53  ;;  %v2799_v57 = vor.u32 %v3160_v43, %v2796_v44  ;;  %v2683_v58 = vor.u32 %v3134_v42, %v2682_v35  ;;  %v2620_v31 = vld [vmem:[%s4639_s1 + $0x498] sm:$0xf0]  ;;  %v3080_v42 = vld [vmem:[%s4639_s1 + $0x36c] sm:$0xf] }
  0x96   :  { %v2476_v43 = vld [vmem:[%s4639_s1 + $0x378] sm:$0xf0]  ;;  %v3112_v44 = vld [vmem:[%s4639_s1 + $0x46c] sm:$0xf] }
  0x97   :  { %1546 = vmatpush.bf16.msrb.mxu3 %v2763_v46  ;;  %1574 = vmatpush.bf16.msrb.mxu2 %v2127_v47  ;;  %v2972_v46 = vld [vmem:[%s4639_s1 + $0xc] sm:$0xf]  ;;  %v2044_v47 = vld [vmem:[%s4639_s1 + $0x18] sm:$0xf0]  ;;  %v2479_v50 = vor.u32 %v3080_v42, %v2476_v43 }
  0x98   :  { %1589 = vmatpush.bf16.msrb.mxu0 %v2239_v55  ;;  %v2668_v55 = vld [vmem:[%s4639_s1 + $0x4f8] sm:$0xf0]  ;;  %v2047_v59 = vor.u32 %v2972_v46, %v2044_v47  ;;  %v3140_v47 = vld [vmem:[%s4639_s1 + $0x54c] sm:$0xf] }
  0x99   :  { %1535 = vmatpush.bf16.msra.mxu1 %v2587_v8  ;;  %v2671_v4 = vor.u32 %v3128_v54, %v2668_v55  ;;  %v3124_v8 = vld [vmem:[%s4639_s1 + $0x4cc] sm:$0xf]  ;;  %v2316_v54 = vld [vmem:[%s4639_s1 + $0x238] sm:$0xf0] }
  0x9a   :  { %v2655_v16 = vor.u32 %v3124_v8, %v2652_v9  ;;  %v3076_v55 = vld [vmem:[%s4639_s1 + $0x34c] sm:$0xf]  ;;  %v2812_v28 = vld [vmem:[%s4639_s1 + $0x618] sm:$0xf0] }
  0x9b   :  { %1547 = vmatpush.bf16.msrb.mxu3 %v2747_v62  ;;  %1575 = vmatpush.bf16.msrb.mxu2 %v2111_v63  ;;  %v3156_v62 = vld [vmem:[%s4639_s1 + $0x5cc] sm:$0xf]  ;;  %v2780_v63 = vld [vmem:[%s4639_s1 + $0x5d8] sm:$0xf0] }
  0x9c   :  { %1590 = vmatpush.bf16.msrb.mxu0 %v2223_v7  ;;  %v2524_v7 = vld [vmem:[%s4639_s1 + $0x3d8] sm:$0xf0]  ;;  %v2783_v10 = vor.u32 %v3156_v62, %v2780_v63  ;;  %v2719_v62 = vor.u32 %v3140_v47, %v2716_v48  ;;  %v3072_v9 = vld [vmem:[%s4639_s1 + $0x32c] sm:$0xf] }
  0x9d   :  { %1536 = vmatpush.bf16.msra.mxu1 %v2571_v20  ;;  %v2527_v14 = vor.u32 %v3092_v6, %v2524_v7  ;;  %v3120_v20 = vld [vmem:[%s4639_s1 + $0x4ac] sm:$0xf]  ;;  %v2300_v7 = vld [vmem:[%s4639_s1 + $0x218] sm:$0xf0] }
  0x9e   :  { %v2639_v27 = vor.u32 %v3120_v20, %v2636_v21  ;;  %v3036_v6 = vld [vmem:[%s4639_s1 + $0x20c] sm:$0xf] }
  0x9f   :  { %1548 = vmatpush.bf16.msrb.mxu3 %v2731_v11  ;;  %1576 = vmatpush.bf16.msrb.mxu2 %v2095_v12  ;;  %v3152_v11 = vld [vmem:[%s4639_s1 + $0x5ac] sm:$0xf]  ;;  %v2764_v12 = vld [vmem:[%s4639_s1 + $0x5b8] sm:$0xf0] }
  0xa0   :  { %1591 = vmatpush.bf16.msrb.mxu0 %v2207_v19  ;;  %v2508_v19 = vld [vmem:[%s4639_s1 + $0x3b8] sm:$0xf0]  ;;  %v2767_v22 = vor.u32 %v3152_v11, %v2764_v12  ;;  %v3104_v11 = vld [vmem:[%s4639_s1 + $0x42c] sm:$0xf] }
  0xa1   :  { %1537 = vmatpush.bf16.msra.mxu1 %v2555_v34  ;;  %v2511_v25 = vor.u32 %v3088_v18, %v2508_v19  ;;  %v2732_v34 = vld [vmem:[%s4639_s1 + $0x578] sm:$0xf0]  ;;  %v2303_v18 = vor.u32 %v3036_v6, %v2300_v7 }
  0xa2   :  { %v2572_v12 = vld [vmem:[%s4639_s1 + $0x438] sm:$0xf0] }
  0xa3   :  { %1549 = vmatpush.bf16.msrb.mxu3 %v2715_v23  ;;  %1577 = vmatpush.bf16.msrb.mxu2 %v2079_v24  ;;  %v3148_v23 = vld [vmem:[%s4639_s1 + $0x58c] sm:$0xf]  ;;  %v2367_v24 = vor.u32 %v3052_v15, %v2364_v17  ;;  %v2828_v15 = vld [vmem:[%s4639_s1 + $0x638] sm:$0xf0]  ;;  %v2575_v21 = vor.u32 %v3104_v11, %v2572_v12  ;;  %v3181_v12 = vld [vmem:[%s4642_s3 + $0x50] sm:$0xff] }
  0xa4   :  { %1592 = vmatpush.bf16.msrb.mxu0 %v2191_v33  ;;  %1538 = vmatmul.bf16.vlgmr.msra.gmra.mxu1 %v3715_v40  ;;  %v3144_v33 = vld [vmem:[%s4639_s1 + $0x56c] sm:$0xf]  ;;  %v1287_v63 = vpop.f32.mrf.mxu0  ;;  %v2684_v17 = vld [vmem:[%s4639_s1 + $0x518] sm:$0xf0] }
  0xa5   :  { %1600 = vmatpush.bf16.msrb.mxu1 %v2415_v45  ;;  %v2604_v45 = vld [vmem:[%s4639_s1 + $0x478] sm:$0xf0]  ;;  %v2735_v46 = vor.u32 %v3144_v33, %v2732_v34 }
  0xa6   :  { %v3178_v33 = vld [vmem:[%s4642_s3 + $0x38] sm:$0xff] }
  0xa7   :  { %1550 = vmatpush.bf16.msrb.mxu3 %v2699_v38  ;;  %1578 = vmatpush.bf16.msrb.mxu2 %v2063_v39  ;;  %v2623_v38 = vor.u32 %v3116_v30, %v2620_v31  ;;  %v2332_v39 = vld [vmem:[%s4639_s1 + $0x258] sm:$0xf0] }
  0xa8   :  { %1593 = vmatpush.bf16.msrb.mxu0 %v2175_v52  ;;  %v2335_v49 = vor.u32 %v3044_v37, %v2332_v39  ;;  %v2607_v52 = vor.u32 %v3112_v44, %v2604_v45  ;;  %v1315_v20 = vpop.f32.mrf.mxu2  ;;  %v3176_v45 = vld [vmem:[%s4642_s3 + $0x28] sm:$0xff] }
  0xa9   :  { %1601 = vmatpush.bf16.msrb.mxu1 %v2399_v0  ;;  %v4462_v0 = vpop.f32.mrf.mxu1 }
  0xab   :  { %1551 = vmatpush.bf16.msrb.mxu3 %v2683_v58  ;;  %1579 = vmatpush.bf16.msrb.mxu2 %v2047_v59  ;;  %v3108_v58 = vld [vmem:[%s4639_s1 + $0x44c] sm:$0xf]  ;;  %v2588_v59 = vld [vmem:[%s4639_s1 + $0x458] sm:$0xf0] }
  0xac   :  { %1642 = vmatpush.bf16.msra.mxu0 %v2799_v57  ;;  %v2460_v57 = vld [vmem:[%s4639_s1 + $0x358] sm:$0xf0]  ;;  %v2591_v8 = vor.u32 %v3108_v58, %v2588_v59  ;;  %v1289_v30 = vpop.f32.mrf.mxu0 }
  0xad   :  { %1594 = vmatmul.bf16.vlgmr.msrb.gmra.mxu0 %v3510_v2  ;;  %v2748_v2 = vld [vmem:[%s4639_s1 + $0x598] sm:$0xf0]  ;;  %1602 = vmatpush.bf16.msrb.mxu1 %v2383_v13  ;;  %v2463_v5 = vor.u32 %v3076_v55, %v2460_v57 }
  0xae   :  { %1552 = vmatmul.bf16.vlgmr.msrb.gmra.mxu3 %v3717_v41  ;;  %1580 = vmatmul.bf16.vlgmr.msrb.gmra.mxu2 %v3497_v60  ;;  %v2348_v60 = vld [vmem:[%s4639_s1 + $0x278] sm:$0xf0]  ;;  %v2751_v32 = vor.u32 %v3148_v23, %v2748_v2  ;;  %v3068_v23 = vld [vmem:[%s4639_s1 + $0x30c] sm:$0xf] }
  0xaf   :  { %1614 = vmatpush.bf16.msra.mxu3 %v2543_v1  ;;  %1628 = vmatpush.bf16.msra.mxu2 %v2671_v4  ;;  %v2351_v35 = vor.u32 %v3048_v26, %v2348_v60  ;;  %v3136_v1 = vld [vmem:[%s4639_s1 + $0x52c] sm:$0xf]  ;;  %v2319_v4 = vor.u32 %v3040_v51, %v2316_v54  ;;  %v2428_v2 = vld [vmem:[%s4639_s1 + $0x318] sm:$0xf0]  ;;  %v3185_v54 = vld [vmem:[%s4642_s3 + $0x70] sm:$0xff] }
  0xb0   :  { %1643 = vmatpush.bf16.msra.mxu0 %v2783_v10  ;;  %v2444_v10 = vld [vmem:[%s4639_s1 + $0x338] sm:$0xf0]  ;;  %v2703_v13 = vor.u32 %v3136_v1, %v2700_v3  ;;  %v3164_v60 = vld [vmem:[%s4639_s1 + $0x60c] sm:$0xf]  ;;  %v2431_v29 = vor.u32 %v3068_v23, %v2428_v2  ;;  %v1317_v42 = vpop.f32.mrf.mxu2  ;;  %v3183_v3 = vld [vmem:[%s4642_s3 + $0x60] sm:$0xff] }
  0xb1   :  { %1603 = vmatpush.bf16.msrb.mxu1 %v2367_v24  ;;  %v2447_v19 = vor.u32 %v3072_v9, %v2444_v10  ;;  %v3100_v24 = vld [vmem:[%s4639_s1 + $0x40c] sm:$0xf]  ;;  %v1303_v31 = vpop.f32.mrf.mxu1  ;;  %v3182_v9 = vld [vmem:[%s4642_s3 + $0x58] sm:$0xff] }
  0xb3   :  { %1615 = vmatpush.bf16.msra.mxu3 %v2527_v14  ;;  %1629 = vmatpush.bf16.msra.mxu2 %v2655_v16  ;;  %v3168_v14 = vld [vmem:[%s4639_s1 + $0x62c] sm:$0xf] }
  0xb4   :  { %1644 = vmatpush.bf16.msra.mxu0 %v2767_v22  ;;  %v3132_v16 = vld [vmem:[%s4639_s1 + $0x50c] sm:$0xf]  ;;  %v2831_v22 = vor.u32 %v3168_v14, %v2828_v15 }
  0xb5   :  { %1604 = vmatpush.bf16.msrb.mxu1 %v2351_v35  ;;  %v2687_v26 = vor.u32 %v3132_v16, %v2684_v17  ;;  %v2815_v35 = vor.u32 %v3164_v60, %v2812_v28  ;;  %v3180_v16 = vld [vmem:[%s4642_s3 + $0x48] sm:$0xff]  ;;  %v3179_v17 = vld [vmem:[%s4642_s3 + $0x40] sm:$0xff] }
  0xb7   :  { %1616 = vmatpush.bf16.msra.mxu3 %v2511_v25  ;;  %1630 = vmatpush.bf16.msra.mxu2 %v2639_v27  ;;  %v2556_v25 = vld [vmem:[%s4639_s1 + $0x418] sm:$0xf0]  ;;  %v4515_v27 = vld [vmem:[%s4641_s2] sm:$0xf] }
  0xb8   :  { %1645 = vmatpush.bf16.msra.mxu0 %v2751_v32  ;;  %v2559_v32 = vor.u32 %v3100_v24, %v2556_v25  ;;  %v231_v34 = vperm.slane %v4515_v27, 0 }
  0xb9   :  { %1605 = vmatpush.bf16.msrb.mxu1 %v2335_v49  ;;  %v1371_v49 = vpop.f32.mrf.mxu2 }
  0xba   :  { %v1290_v37 = vadd.f32 %v1289_v30, %v231_v34  ;;  %v1288_v39 = vadd.f32 %v1287_v63, %v231_v34  ;;  %v3184_v63 = vld [vmem:[%s4642_s3 + $0x68] sm:$0xff] }
  0xbb   :  { %1617 = vmatpush.bf16.msra.mxu3 %v2495_v36  ;;  %1631 = vmatpush.bf16.msra.mxu2 %v2623_v38  ;;  %v1329_v36 = vpop.f32.mrf.mxu3  ;;  %v3177_v38 = vld [vmem:[%s4642_s3 + $0x30] sm:$0xff] }
  0xbc   :  { %1646 = vmatpush.bf16.msra.mxu0 %v2735_v46  ;;  %v1304_v43 = vadd.f32 %v1303_v31, %v1290_v37  ;;  %v1302_v46 = vadd.f32 %v4462_v0, %v1288_v39  ;;  %v3194_v31 = vld [vmem:[%s4642_s3 + $0xb8] sm:$0xff] }
  0xbd   :  { %1606 = vmatpush.bf16.msrb.mxu1 %v2319_v4  ;;  %v3172_v4 = vld [vmem:[%s4642_s3 + $0x8] sm:$0xff] }
  0xbe   :  { %v1318_v47 = vadd.f32 %v1317_v42, %v1304_v43  ;;  %v3193_v42 = vld [vmem:[%s4642_s3 + $0xb0] sm:$0xff] }
  0xbf   :  { %1618 = vmatpush.bf16.msra.mxu3 %v2479_v50  ;;  %1632 = vmatpush.bf16.msra.mxu2 %v2607_v52  ;;  %v3174_v52 = vld [vmem:[%s4642_s3 + $0x18] sm:$0xff] }
  0xc0   :  { %1647 = vmatpush.bf16.msra.mxu0 %v2719_v62  ;;  %v3173_v62 = vld [vmem:[%s4642_s3 + $0x10] sm:$0xff] }
  0xc1   :  { %1607 = vmatpush.bf16.msrb.mxu1 %v2303_v18  ;;  %v1357_v44 = vpop.f32.mrf.mxu1 }
  0xc3   :  { %1619 = vmatpush.bf16.msra.mxu3 %v2463_v5  ;;  %1633 = vmatpush.bf16.msra.mxu2 %v2591_v8  ;;  %v1331_v48 = vpop.f32.mrf.mxu3  ;;  %v3171_v8 = vld [vmem:[%s4642_s3] sm:$0xff] }
  0xc4   :  { %1648 = vmatpush.bf16.msra.mxu0 %v2703_v13  ;;  %1608 = vmatmul.bf16.vlgmr.msrb.gmra.mxu1 %v3486_v56  ;;  %v1343_v56 = vpop.f32.mrf.mxu0  ;;  %v1332_v50 = vadd.f32 %v1331_v48, %v1318_v47 }
  0xc5   :  { %1662 = vmatpush.bf16.msra.mxu1 %v2831_v22 }
  0xc7   :  { %1620 = vmatpush.bf16.msra.mxu3 %v2447_v19  ;;  %1634 = vmatpush.bf16.msra.mxu2 %v2575_v21  ;;  %v232_v21 = vperm.slane %v4515_v27, 1 }
  0xc8   :  { %1649 = vmatpush.bf16.msra.mxu0 %v2687_v26 }
  0xc9   :  { %1663 = vmatpush.bf16.msra.mxu1 %v2815_v35  ;;  %v1359_v58 = vpop.f32.mrf.mxu1 }
  0xcb   :  { %1621 = vmatpush.bf16.msra.mxu3 %v2431_v29  ;;  %1635 = vmatpush.bf16.msra.mxu2 %v2559_v32  ;;  %v1385_v6 = vpop.f32.mrf.mxu3 }
  0xcc   :  { %1650 = vmatmul.bf16.vlgmr.msra.gmra.mxu0 %v3717_v41  ;;  %v3175_v41 = vld [vmem:[%s4642_s3 + $0x20] sm:$0xff]  ;;  %v1345_v51 = vpop.f32.mrf.mxu0  ;;  %v1386_v23 = vadd.f32 %v1385_v6, %v232_v21 }
  0xcd   :  { %v1346_v57 = vadd.f32 %v1345_v51, %v1332_v50  ;;  %v3189_v50 = vld [vmem:[%s4642_s3 + $0x90] sm:$0xff] }
  0xce   :  { %1622 = vmatmul.bf16.vlgmr.msra.gmra.mxu3 %v3499_v61  ;;  %1636 = vmatmul.bf16.vlgmr.msra.gmra.mxu2 %v3715_v40  ;;  %v3186_v61 = vld [vmem:[%s4642_s3 + $0x78] sm:$0xff]  ;;  %v1316_v40 = vadd.f32 %v1315_v20, %v1302_v46 }
  0xcf   :  { %1942 = vmatpush.bf16.msrb.mxu3 %v3178_v33  ;;  %1956 = vmatpush.bf16.msrb.mxu1 %v3186_v61  ;;  %v1360_v0 = vadd.f32 %v1359_v58, %v1346_v57  ;;  %v3191_v61 = vld [vmem:[%s4642_s3 + $0xa0] sm:$0xff]  ;;  %v233_v58 = vperm.slane %v4515_v27, 2 }
  0xd0   :  { %v1330_v55 = vadd.f32 %v1329_v36, %v1316_v40  ;;  %1970 = vmatpush.bf16.msrb.mxu2 %v3194_v31  ;;  %v3190_v40 = vld [vmem:[%s4642_s3 + $0x98] sm:$0xff]  ;;  %v3195_v31 = vld [vmem:[%s4642_s3 + $0xc0] sm:$0xff] }
  0xd2   :  { %v1344_v59 = vadd.f32 %v1343_v56, %v1330_v55 }
  0xd3   :  { %1943 = vmatpush.bf16.msrb.mxu3 %v3177_v38  ;;  %1957 = vmatpush.bf16.msrb.mxu1 %v3185_v54  ;;  %v1387_v15 = vpop.f32.mrf.mxu3  ;;  %v3187_v54 = vld [vmem:[%s4642_s3 + $0x80] sm:$0xff] }
  0xd4   :  { %2835 = vmatmul.msk.bf16.vlgmr.msra.gmra.mxu1 %vm1274_vm0, %v3618_v53  ;;  %v1358_v1 = vadd.f32 %v1357_v44, %v1344_v59  ;;  %v1373_v53 = vpop.f32.mrf.mxu2  ;;  %v1388_v24 = vadd.f32 %v1387_v15, %v232_v21  ;;  %1971 = vmatpush.bf16.msrb.mxu2 %v3193_v42  ;;  %v3192_v44 = vld [vmem:[%s4642_s3 + $0xa8] sm:$0xff]  ;;  %v3197_v21 = vld [vmem:[%s4642_s3 + $0xd0] sm:$0xff] }
  0xd5   :  { %v1374_v5 = vadd.f32 %v1373_v53, %v1360_v0 }
  0xd6   :  { %v1372_v7 = vadd.f32 %v1371_v49, %v1358_v1 }
  0xd7   :  { %1944 = vmatpush.bf16.msrb.mxu3 %v3176_v45  ;;  %1958 = vmatpush.bf16.msrb.mxu1 %v3184_v63  ;;  %v1674_v10 = vmax.f32 %v1374_v5, 0.0  ;;  %v3201_v63 = vld [vmem:[%s4642_s3 + $0xf0] sm:$0xff] }
  0xd8   :  { %v1670_v11 = vmax.f32 %v1372_v7, 0.0  ;;  %1972 = vmatpush.bf16.msrb.mxu2 %v3192_v44  ;;  %v3200_v7 = vld [vmem:[%s4642_s3 + $0xe8] sm:$0xff] }
  0xda   :  { %v1678_v13 = vpack.c.bf16 %v1674_v10, %v1670_v11  ;;  %v3199_v10 = vld [vmem:[%s4642_s3 + $0xe0] sm:$0xff] }
  0xdb   :  { %1945 = vmatpush.bf16.msrb.mxu3 %v3175_v41  ;;  %1959 = vmatpush.bf16.msrb.mxu1 %v3183_v3 }
  0xdc   :  { %v1399_v14 = vpop.f32.mrf.mxu2  ;;  %1973 = vmatpush.bf16.msrb.mxu2 %v3191_v61 }
  0xdd   :  { %v1400_v26 = vadd.f32 %v1399_v14, %v1386_v23 }
  0xdf   :  { %1946 = vmatpush.bf16.msrb.mxu3 %v3174_v52  ;;  %1960 = vmatpush.bf16.msrb.mxu1 %v3182_v9  ;;  %v3188_v52 = vld [vmem:[%s4642_s3 + $0x88] sm:$0xff] }
  0xe0   :  { %1974 = vmatpush.bf16.msrb.mxu2 %v3190_v40 }
  0xe1   :  { %v1427_v22 = vpop.f32.mrf.mxu1 }
  0xe2   :  { %v1413_v20 = vpop.f32.mrf.mxu0 }
  0xe3   :  { %1947 = vmatpush.bf16.msrb.mxu3 %v3173_v62  ;;  %1961 = vmatpush.bf16.msrb.mxu1 %v3181_v12  ;;  %v1414_v29 = vadd.f32 %v1413_v20, %v1400_v26  ;;  %v3202_v62 = vld [vmem:[%s4642_s3 + $0xf8] sm:$0xff] }
  0xe4   :  { %v1401_v19 = vpop.f32.mrf.mxu2  ;;  %1975 = vmatpush.bf16.msrb.mxu2 %v3189_v50  ;;  %1984 = vmatpush.bf16.msrb.mxu0 %v3202_v62 }
  0xe5   :  { %v1402_v28 = vadd.f32 %v1401_v19, %v1388_v24  ;;  %v1428_v34 = vadd.f32 %v1427_v22, %v1414_v29 }
  0xe7   :  { %1948 = vmatpush.bf16.msrb.mxu3 %v3172_v4  ;;  %1962 = vmatpush.bf16.msrb.mxu1 %v3180_v16  ;;  %v3198_v16 = vld [vmem:[%s4642_s3 + $0xd8] sm:$0xff] }
  0xe8   :  { %1976 = vmatpush.bf16.msrb.mxu2 %v3188_v52  ;;  %1985 = vmatpush.bf16.msrb.mxu0 %v3201_v63 }
  0xe9   :  { %v1441_v18 = vpop.f32.mrf.mxu3  ;;  %v1429_v32 = vpop.f32.mrf.mxu1 }
  0xea   :  { %v1415_v60 = vpop.f32.mrf.mxu0  ;;  %v1442_v35 = vadd.f32 %v1441_v18, %v1428_v34 }
  0xeb   :  { %1949 = vmatpush.bf16.msrb.mxu3 %v3171_v8  ;;  %1963 = vmatpush.bf16.msrb.mxu1 %v3179_v17  ;;  %v1416_v30 = vadd.f32 %v1415_v60, %v1402_v28 }
  0xec   :  { %1977 = vmatpush.bf16.msrb.mxu2 %v3187_v54  ;;  %1986 = vmatpush.bf16.msrb.mxu0 %v3200_v7 }
  0xed   :  { %v1430_v36 = vadd.f32 %v1429_v32, %v1416_v30 }
  0xee   :  { %1950 = vmatmul.bf16.vlgmr.msrb.gmra.mxu3 %v1678_v13 }
  0xf0   :  { %1987 = vmatpush.bf16.msrb.mxu0 %v3199_v10 }
  0xf1   :  { %v1443_v2 = vpop.f32.mrf.mxu3  ;;  %v1455_v25 = vpop.f32.mrf.mxu2 }
  0xf2   :  { %v1456_v38 = vadd.f32 %v1455_v25, %v1442_v35  ;;  %v1444_v39 = vadd.f32 %v1443_v2, %v1430_v36  ;;  %v3196_v25 = vld [vmem:[%s4642_s3 + $0xc8] sm:$0xff] }
  0xf4   :  { %1988 = vmatpush.bf16.msrb.mxu0 %v3198_v16 }
  0xf8   :  { %1989 = vmatpush.bf16.msrb.mxu0 %v3197_v21 }
  0xf9   :  { %v1469_v33 = vpop.f32.mrf.mxu3  ;;  %v1457_v37 = vpop.f32.mrf.mxu2 }
  0xfa   :  { %v1458_v43 = vadd.f32 %v1457_v37, %v1444_v39  ;;  %v1470_v56 = vadd.f32 %v1469_v33, %v1456_v38  ;;  %v234_v33 = vperm.slane %v4515_v27, 3 }
  0xfc   :  { %v1671_v47 = vmax.f32 %v1470_v56, 0.0  ;;  %1990 = vmatpush.bf16.msrb.mxu0 %v3196_v25 }
 0x100   :  { %1991 = vmatpush.bf16.msrb.mxu0 %v3195_v31 }
 0x101   :  { %v1471_v45 = vpop.f32.mrf.mxu3  ;;  %v1483_v51 = vpop.f32.mrf.mxu1 }
 0x102   :  { %v1472_v46 = vadd.f32 %v1471_v45, %v1458_v43  ;;  %v1511_v49 = vpop.f32.mrf.mxu0  ;;  %v1484_v0 = vadd.f32 %v1483_v51, %v233_v58 }
 0x104   :  { %v1675_v48 = vmax.f32 %v1472_v46, 0.0 }
 0x106   :  { %v1679_v41 = vpack.c.bf16 %v1675_v48, %v1671_v47 }
 0x108   :  { %1964 = vmatmul.bf16.vlgmr.msrb.gmra.mxu1 %v1679_v41 }
 0x109   :  { %v1485_v59 = vpop.f32.mrf.mxu1 }
 0x10a   :  { %v1513_v57 = vpop.f32.mrf.mxu0  ;;  %v1486_v5 = vadd.f32 %v1485_v59, %v233_v58 }
 0x111   :  { %v1497_v55 = vpop.f32.mrf.mxu3  ;;  %v1525_v3 = vpop.f32.mrf.mxu2 }
 0x112   :  { %v1567_v1 = vpop.f32.mrf.mxu0  ;;  %v1498_v4 = vadd.f32 %v1497_v55, %v1484_v0 }
 0x114   :  { %v1512_v8 = vadd.f32 %v1511_v49, %v1498_v4 }
 0x116   :  { %v1526_v12 = vadd.f32 %v1525_v3, %v1512_v8 }
 0x119   :  { %v1499_v53 = vpop.f32.mrf.mxu3  ;;  %v1527_v15 = vpop.f32.mrf.mxu2 }
 0x11a   :  { %v1500_v9 = vadd.f32 %v1499_v53, %v1486_v5  ;;  %v1569_v14 = vpop.f32.mrf.mxu0 }
 0x11c   :  { %v1514_v13 = vadd.f32 %v1513_v57, %v1500_v9 }
 0x11e   :  { %v1528_v19 = vadd.f32 %v1527_v15, %v1514_v13 }
 0x121   :  { %v1539_v6 = vpop.f32.mrf.mxu1 }
 0x122   :  { %v1540_v17 = vadd.f32 %v1539_v6, %v1526_v12 }
 0x129   :  { %v1541_v18 = vpop.f32.mrf.mxu1 }
 0x12a   :  { %v1542_v22 = vadd.f32 %v1541_v18, %v1528_v19  ;;  %v1595_v60 = vpop.f32.mrf.mxu0 }
 0x131   :  { %v1553_v11 = vpop.f32.mrf.mxu3  ;;  %v1581_v28 = vpop.f32.mrf.mxu2 }
 0x132   :  { %v1554_v20 = vadd.f32 %v1553_v11, %v1540_v17  ;;  %v1582_v35 = vadd.f32 %v1581_v28, %v234_v33  ;;  %v1597_v36 = vpop.f32.mrf.mxu0 }
 0x134   :  { %v1568_v2 = vadd.f32 %v1567_v1, %v1554_v20  ;;  %v1596_v38 = vadd.f32 %v1595_v60, %v1582_v35  ;;  %v3203_v1 = vld [vmem:[%s4643_s4] ss:$0 sm:$0xff] }
 0x136   :  { %v1672_v29 = vmax.f32 %v1568_v2, 0.0 }
 0x139   :  { %v1555_v23 = vpop.f32.mrf.mxu3  ;;  %v1583_v37 = vpop.f32.mrf.mxu2 }
 0x13a   :  { %v1556_v24 = vadd.f32 %v1555_v23, %v1542_v22  ;;  %v1584_v56 = vadd.f32 %v1583_v37, %v234_v33 }
 0x13c   :  { %v1570_v26 = vadd.f32 %v1569_v14, %v1556_v24  ;;  %v1598_v47 = vadd.f32 %v1597_v36, %v1584_v56 }
 0x13e   :  { %v1676_v30 = vmax.f32 %v1570_v26, 0.0 }
 0x140   :  { %v1680_v32 = vpack.c.bf16 %v1676_v30, %v1672_v29 }
 0x141   :  { %v1609_v34 = vpop.f32.mrf.mxu1 }
 0x142   :  { %1978 = vmatmul.bf16.vlgmr.msrb.gmra.mxu2 %v1680_v32  ;;  %v1610_v42 = vadd.f32 %v1609_v34, %v1596_v38 }
 0x149   :  { %v1611_v39 = vpop.f32.mrf.mxu1  ;;  %v1651_v46 = vpop.f32.mrf.mxu0 }
 0x14a   :  { %v1612_v61 = vadd.f32 %v1611_v39, %v1598_v47 }
 0x151   :  { %v1623_v43 = vpop.f32.mrf.mxu3  ;;  %v1637_v45 = vpop.f32.mrf.mxu2 }
 0x152   :  { %v1624_v44 = vadd.f32 %v1623_v43, %v1610_v42  ;;  %v1665_v41 = vpop.f32.mrf.mxu1  ;;  %v1653_v52 = vpop.f32.mrf.mxu0 }
 0x154   :  { %v1638_v48 = vadd.f32 %v1637_v45, %v1624_v44 }
 0x156   :  { %v1652_v27 = vadd.f32 %v1651_v46, %v1638_v48 }
 0x158   :  { %v1666_v54 = vadd.f32 %v1665_v41, %v1652_v27 }
 0x159   :  { %v1625_v40 = vpop.f32.mrf.mxu3  ;;  %v1639_v50 = vpop.f32.mrf.mxu2 }
 0x15a   :  { %v1626_v49 = vadd.f32 %v1625_v40, %v1612_v61  ;;  %v1667_v57 = vpop.f32.mrf.mxu1  ;;  %v1673_v59 = vmax.f32 %v1666_v54, 0.0 }
 0x15c   :  { %v1640_v51 = vadd.f32 %v1639_v50, %v1626_v49 }
 0x15e   :  { %v1654_v55 = vadd.f32 %v1653_v52, %v1640_v51 }
 0x160   :  { %v1668_v58 = vadd.f32 %v1667_v57, %v1654_v55 }
 0x162   :  { %v1677_v62 = vmax.f32 %v1668_v58, 0.0 }
 0x164   :  { %v1681_v63 = vpack.c.bf16 %v1677_v62, %v1673_v59 }
 0x166   :  { %1992 = vmatmul.bf16.vlgmr.msrb.gmra.mxu0 %v1681_v63 }
 0x171   :  { %v1951_v0 = vpop.f32.mrf.mxu3 }
 0x172   :  { %v1952_v4 = vadd.f32 %v3203_v1, %v1951_v0 }
 0x179   :  { %v1953_v7 = vpop.f32.mrf.mxu3 }
 0x17a   :  { %v1954_v11 = vadd.f32 %v3203_v1, %v1953_v7 }
 0x185   :  { %v1965_v3 = vpop.f32.mrf.mxu1 }
 0x186   :  { %v1966_v5 = vadd.f32 %v1965_v3, %v1952_v4 }
 0x18d   :  { %v1967_v10 = vpop.f32.mrf.mxu1 }
 0x18e   :  { %v1968_v13 = vadd.f32 %v1967_v10, %v1954_v11 }
 0x1c5   :  { %v1979_v53 = vpop.f32.mrf.mxu2 }
 0x1c6   :  { %v1980_v6 = vadd.f32 %v1979_v53, %v1966_v5 }
 0x1cd   :  { %v1981_v12 = vpop.f32.mrf.mxu2 }
 0x1ce   :  { %v1982_v14 = vadd.f32 %v1981_v12, %v1968_v13 }
 0x1e3   :  { %v1993_v8 = vpop.f32.mrf.mxu0 }
 0x1e4   :  { %v1994_v9 = vadd.f32 %v1993_v8, %v1980_v6 }
 0x1e6   :  { %1998 = vst [vmem:[%s4644_s5] sm:$0xff] %v1994_v9 }
 0x1eb   :  { %v1995_v15 = vpop.f32.mrf.mxu0 }
 0x1ec   :  { %v1996_v16 = vadd.f32 %v1995_v15, %v1982_v14 }
 0x1ee   :  { %1999 = vst [vmem:[%s4644_s5 + $0x8] sm:$0xff] %v1996_v16 }

</bundles_post_ra>
